<compile_context>
chip_gen: v7x
topology: tpu7x:2x2x1
jax: 0.10.0
libtpu: 0.0.40
codegen_flags: <defaults>
</compile_context>

<pallas_src>
import functools

import jax
import jax.numpy as jnp
from jax.experimental import pallas as pl
from jax.experimental.pallas import tpu as pltpu


# --------------------------------------------------------------------------- #
# helpers
# --------------------------------------------------------------------------- #
def _pick_tile(dim, prefs=(512, 256, 128)):
    """Largest preferred tile evenly dividing `dim`; falls back to the whole dim
    (small toy shapes end up as a single full block)."""
    for t in prefs:
        if dim >= t and dim % t == 0:
            return t
    return dim


def _params(*sem):
    return pltpu.CompilerParams(dimension_semantics=sem)


def _layernorm(x, g, b):
    mu = jnp.mean(x, axis=-1, keepdims=True)
    var = jnp.mean(jnp.square(x - mu), axis=-1, keepdims=True)
    return (x - mu) * jax.lax.rsqrt(var + 1e-5) * g + b


# --------------------------------------------------------------------------- #
# kernels
# --------------------------------------------------------------------------- #
def _ln_linear_kernel(x_ref, g_ref, b_ref, w_ref, bias_ref, o_ref):
    # LayerNorm fused as a prologue of the (bf16) matmul.
    ln = _layernorm(x_ref[...], g_ref[...], b_ref[...])
    o_ref[...] = (
        jnp.dot(ln.astype(w_ref.dtype), w_ref[...], preferred_element_type=jnp.float32)
        + bias_ref[...]
    ).astype(o_ref.dtype)


def _linear_kernel(x_ref, w_ref, o_ref):
    o_ref[...] = jnp.dot(
        x_ref[...].astype(w_ref.dtype), w_ref[...], preferred_element_type=jnp.float32
    ).astype(o_ref.dtype)


def _linear_residual_kernel(x_ref, w_ref, bias_ref, res_ref, o_ref):
    # matmul + bias + residual-add fused in the epilogue (no extra HBM round trip).
    o_ref[...] = (
        res_ref[...]
        + jnp.dot(x_ref[...].astype(w_ref.dtype), w_ref[...],
                  preferred_element_type=jnp.float32)
        + bias_ref[...]
    ).astype(o_ref.dtype)


def _layernorm_kernel(x_ref, g_ref, b_ref, o_ref):
    o_ref[...] = _layernorm(x_ref[...], g_ref[...], b_ref[...]).astype(o_ref.dtype)


def _mlp_kernel(x_ref, g_ref, b_ref, fcw_ref, fcb_ref, pw_ref, pb_ref, o_ref,
                lnx_ref, acc_ref):
    # grid = (row tiles, hidden tiles).  Hidden (4W) is the reduction axis.
    h = pl.program_id(1)

    @pl.when(h == 0)
    def _():
        lnx_ref[...] = _layernorm(
            x_ref[...], g_ref[...], b_ref[...]).astype(lnx_ref.dtype)
        acc_ref[...] = jnp.zeros_like(acc_ref)

    pre = jnp.dot(lnx_ref[...], fcw_ref[...],
                  preferred_element_type=jnp.float32) + fcb_ref[...]
    act = pre * jax.nn.sigmoid(1.702 * pre)            # QuickGELU, kept in f32
    acc_ref[...] += jnp.dot(act.astype(pw_ref.dtype), pw_ref[...],
                            preferred_element_type=jnp.float32)

    @pl.when(h == pl.num_programs(1) - 1)
    def _():
        o_ref[...] = (x_ref[...] + acc_ref[...] + pb_ref[...]).astype(o_ref.dtype)


def _attention_kernel(qkv_ref, o_ref, *, heads, causal, scale):
    # One batch element per grid step; head split done in-kernel via static lane
    # slices of the already-loaded q/k/v slabs; per-head outputs concatenated so
    # the output store is one lane-dense write (avoids narrow masked stores).
    # Causal mask generated with iota (no mask DMA from HBM).
    # TODO(synk): for sequences much longer than CLIP's (<=257 tokens) this should
    # become a kv-tiled flash-attention kernel with online softmax.
    S = qkv_ref.shape[1]
    W = qkv_ref.shape[2] // 3
    Dh = W // heads
    if causal:
        row = jax.lax.broadcasted_iota(jnp.int32, (S, S), 0)
        col = jax.lax.broadcasted_iota(jnp.int32, (S, S), 1)
        neg = jnp.where(col > row, -1e9, 0.0).astype(jnp.float32)

    q_all = qkv_ref[0, :, 0:W].astype(jnp.bfloat16)
    k_all = qkv_ref[0, :, W:2 * W].astype(jnp.bfloat16)
    v_all = qkv_ref[0, :, 2 * W:3 * W].astype(jnp.bfloat16)

    outs = []
    for h in range(heads):
        q = q_all[:, h * Dh:(h + 1) * Dh]
        k = k_all[:, h * Dh:(h + 1) * Dh]
        v = v_all[:, h * Dh:(h + 1) * Dh]
        # q @ k^T (contract last dims), f32 accumulation on the MXU.
        s = jax.lax.dot_general(q, k, (((1,), (1,)), ((), ())),
                                preferred_element_type=jnp.float32) * scale
        if causal:
            s = s + neg
        s = s - jnp.max(s, axis=-1, keepdims=True)
        p = jnp.exp(s)
        p = p * pl.reciprocal(jnp.sum(p, axis=-1, keepdims=True), approx=True)
        o = jnp.dot(p.astype(jnp.bfloat16), v, preferred_element_type=jnp.float32)
        outs.append(o.astype(o_ref.dtype))
    o_ref[0, :, :] = jnp.concatenate(outs, axis=-1)     # single lane-dense store


def _ln_proj_norm_kernel(x_ref, g_ref, b_ref, w_ref, o_ref):
    # LN + projection + L2-normalize fused (rsqrt with eps avoids divide-by-zero).
    ln = _layernorm(x_ref[...], g_ref[...], b_ref[...])
    f = jnp.dot(ln.astype(w_ref.dtype), w_ref[...], preferred_element_type=jnp.float32)
    ss = jnp.sum(f * f, axis=-1, keepdims=True)
    o_ref[...] = f * jax.lax.rsqrt(ss + 1e-12)


# --------------------------------------------------------------------------- #
# pallas_call wrappers
# --------------------------------------------------------------------------- #
def ln_linear(x, g, b, w, bias):
    M, K = x.shape
    N = w.shape[1]
    tm, tn = _pick_tile(M), _pick_tile(N)
    return pl.pallas_call(
        _ln_linear_kernel,
        grid=(M // tm, N // tn),
        in_specs=[
            pl.BlockSpec((tm, K), lambda i, j: (i, 0)),
            pl.BlockSpec((1, K), lambda i, j: (0, 0)),
            pl.BlockSpec((1, K), lambda i, j: (0, 0)),
            pl.BlockSpec((K, tn), lambda i, j: (0, j)),
            pl.BlockSpec((1, tn), lambda i, j: (0, j)),
        ],
        out_specs=pl.BlockSpec((tm, tn), lambda i, j: (i, j)),
        out_shape=jax.ShapeDtypeStruct((M, N), jnp.float32),
        compiler_params=_params("parallel", "parallel"),
    )(x, g, b, w, bias)


def linear(x, w):
    M, K = x.shape
    N = w.shape[1]
    tm, tn = _pick_tile(M), _pick_tile(N)
    return pl.pallas_call(
        _linear_kernel,
        grid=(M // tm, N // tn),
        in_specs=[
            pl.BlockSpec((tm, K), lambda i, j: (i, 0)),
            pl.BlockSpec((K, tn), lambda i, j: (0, j)),
        ],
        out_specs=pl.BlockSpec((tm, tn), lambda i, j: (i, j)),
        out_shape=jax.ShapeDtypeStruct((M, N), jnp.float32),
        compiler_params=_params("parallel", "parallel"),
    )(x, w)


def linear_residual(x, w, bias, res):
    M, K = x.shape
    N = w.shape[1]
    tm, tn = _pick_tile(M), _pick_tile(N)
    return pl.pallas_call(
        _linear_residual_kernel,
        grid=(M // tm, N // tn),
        in_specs=[
            pl.BlockSpec((tm, K), lambda i, j: (i, 0)),
            pl.BlockSpec((K, tn), lambda i, j: (0, j)),
            pl.BlockSpec((1, tn), lambda i, j: (0, j)),
            pl.BlockSpec((tm, tn), lambda i, j: (i, j)),
        ],
        out_specs=pl.BlockSpec((tm, tn), lambda i, j: (i, j)),
        out_shape=jax.ShapeDtypeStruct((M, N), jnp.float32),
        compiler_params=_params("parallel", "parallel"),
    )(x, w, bias, res)


def layernorm(x, g, b):
    M, K = x.shape
    tm = _pick_tile(M)
    return pl.pallas_call(
        _layernorm_kernel,
        grid=(M // tm,),
        in_specs=[
            pl.BlockSpec((tm, K), lambda i: (i, 0)),
            pl.BlockSpec((1, K), lambda i: (0, 0)),
            pl.BlockSpec((1, K), lambda i: (0, 0)),
        ],
        out_specs=pl.BlockSpec((tm, K), lambda i: (i, 0)),
        out_shape=jax.ShapeDtypeStruct((M, K), jnp.float32),
        compiler_params=_params("parallel"),
    )(x, g, b)


def mlp_block(x, g, b, fc_w, fc_b, proj_w, proj_b):
    M, W = x.shape
    H = fc_w.shape[1]
    tm, th = _pick_tile(M), _pick_tile(H)
    return pl.pallas_call(
        _mlp_kernel,
        grid=(M // tm, H // th),
        in_specs=[
            pl.BlockSpec((tm, W), lambda i, h: (i, 0)),
            pl.BlockSpec((1, W), lambda i, h: (0, 0)),
            pl.BlockSpec((1, W), lambda i, h: (0, 0)),
            pl.BlockSpec((W, th), lambda i, h: (0, h)),
            pl.BlockSpec((1, th), lambda i, h: (0, h)),
            pl.BlockSpec((th, W), lambda i, h: (h, 0)),
            pl.BlockSpec((1, W), lambda i, h: (0, 0)),
        ],
        out_specs=pl.BlockSpec((tm, W), lambda i, h: (i, 0)),
        out_shape=jax.ShapeDtypeStruct((M, W), jnp.float32),
        scratch_shapes=[
            pltpu.VMEM((tm, W), jnp.bfloat16),   # cached LayerNorm(x)
            pltpu.VMEM((tm, W), jnp.float32),    # f32 accumulator over hidden tiles
        ],
        compiler_params=_params("parallel", "arbitrary"),
    )(x, g, b, fc_w, fc_b, proj_w, proj_b)


def attention(qkv, *, heads, causal, scale):
    B, S, W3 = qkv.shape
    W = W3 // 3
    kern = functools.partial(_attention_kernel, heads=heads, causal=causal, scale=scale)
    return pl.pallas_call(
        kern,
        grid=(B,),
        in_specs=[pl.BlockSpec((1, S, W3), lambda b: (b, 0, 0))],
        out_specs=pl.BlockSpec((1, S, W), lambda b: (b, 0, 0)),
        out_shape=jax.ShapeDtypeStruct((B, S, W), jnp.float32),
        compiler_params=_params("parallel"),
    )(qkv)


def ln_proj_norm(x, g, b, w):
    M, K = x.shape
    N = w.shape[1]
    tm = _pick_tile(M)
    return pl.pallas_call(
        _ln_proj_norm_kernel,
        grid=(M // tm,),
        in_specs=[
            pl.BlockSpec((tm, K), lambda i: (i, 0)),
            pl.BlockSpec((1, K), lambda i: (0, 0)),
            pl.BlockSpec((1, K), lambda i: (0, 0)),
            pl.BlockSpec((K, N), lambda i: (0, 0)),
        ],
        out_specs=pl.BlockSpec((tm, N), lambda i: (i, 0)),
        out_shape=jax.ShapeDtypeStruct((M, N), jnp.float32),
        compiler_params=_params("parallel"),
    )(x, g, b, w)


# --------------------------------------------------------------------------- #
# transformer residual block (pre-LN, as in CLIP's ResidualAttentionBlock)
# --------------------------------------------------------------------------- #
def resblock_forward(x2d, B, S, heads, blk, causal):
    W = x2d.shape[-1]
    Dh = W // heads
    # (a) LN1 + QKV projection
    qkv = ln_linear(x2d, blk["ln1_g"], blk["ln1_b"], blk["in_proj_w"], blk["in_proj_b"])
    # (b) attention (head split/merge + mask in-kernel)
    attn_out = attention(qkv.reshape(B, S, 3 * W),
                         heads=heads, causal=causal, scale=Dh ** -0.5)
    # (c) out_proj + bias + residual
    x2d = linear_residual(attn_out.reshape(B * S, W),
                          blk["out_proj_w"], blk["out_proj_b"], x2d)
    # (d) LN2 + fc + QuickGELU + proj + bias + residual
    x2d = mlp_block(x2d, blk["ln2_g"], blk["ln2_b"],
                    blk["fc_w"], blk["fc_b"], blk["proj_w"], blk["proj_b"])
    return x2d


# --------------------------------------------------------------------------- #
# parameter init (matches the std's from CLIP.initialize_parameters)
# --------------------------------------------------------------------------- #
def _init_resblock(key, width, layers):
    proj_std = width ** -0.5 * (2 * layers) ** -0.5
    attn_std = width ** -0.5
    fc_std = (2 * width) ** -0.5
    k = jax.random.split(key, 4)
    f32, bf16 = jnp.float32, jnp.bfloat16
    return dict(
        ln1_g=jnp.ones((1, width), f32),
        ln1_b=jnp.zeros((1, width), f32),
        # stored transposed for x @ W, matmul weights kept in bf16
        in_proj_w=(attn_std * jax.random.normal(k[0], (3 * width, width), f32)).T.astype(bf16),
        in_proj_b=jnp.zeros((1, 3 * width), f32),
        out_proj_w=(proj_std * jax.random.normal(k[1], (width, width), f32)).T.astype(bf16),
        out_proj_b=jnp.zeros((1, width), f32),
        ln2_g=jnp.ones((1, width), f32),
        ln2_b=jnp.zeros((1, width), f32),
        fc_w=(fc_std * jax.random.normal(k[2], (4 * width, width), f32)).T.astype(bf16),
        fc_b=jnp.zeros((1, 4 * width), f32),
        proj_w=(proj_std * jax.random.normal(k[3], (width, 4 * width), f32)).T.astype(bf16),
        proj_b=jnp.zeros((1, width), f32),
    )


def init_clip_params(key, *, embed_dim, context_length, vocab_size,
                     text_width, text_layers, vision_width, vision_layers,
                     image_channels, patch_size, image_size):
    keys = iter(jax.random.split(key, 64))
    f32, bf16 = jnp.float32, jnp.bfloat16
    p = {}

    # ---- text tower ----
    p["token_embedding"] = 0.02 * jax.random.normal(
        next(keys), (vocab_size, text_width), f32)
    p["positional_embedding"] = 0.01 * jax.random.normal(
        next(keys), (context_length, text_width), f32)
    p["text_blocks"] = [_init_resblock(next(keys), text_width, text_layers)
                        for _ in range(text_layers)]
    p["ln_final_g"] = jnp.ones((1, text_width), f32)
    p["ln_final_b"] = jnp.zeros((1, text_width), f32)
    p["text_projection"] = (text_width ** -0.5 * jax.random.normal(
        next(keys), (text_width, embed_dim), f32)).astype(bf16)
    # causal mask is generated inside the attention kernel (iota) -- no mask param.

    # ---- vision tower (ViT-style) ----
    p["conv1_w"] = (vision_width ** -0.5 * jax.random.normal(
        next(keys), (vision_width, image_channels * patch_size * patch_size), f32)
    ).T.astype(bf16)
    p["class_embedding"] = vision_width ** -0.5 * jax.random.normal(
        next(keys), (vision_width,), f32)
    n_tokens = (image_size // patch_size) ** 2 + 1          # derived from image_size
    p["vis_positional_embedding"] = vision_width ** -0.5 * jax.random.normal(
        next(keys), (n_tokens, vision_width), f32)
    p["ln_pre_g"] = jnp.ones((1, vision_width), f32)
    p["ln_pre_b"] = jnp.zeros((1, vision_width), f32)
    p["vision_blocks"] = [_init_resblock(next(keys), vision_width, vision_layers)
                          for _ in range(vision_layers)]
    p["ln_post_g"] = jnp.ones((1, vision_width), f32)
    p["ln_post_b"] = jnp.zeros((1, vision_width), f32)
    p["vis_proj"] = (vision_width ** -0.5 * jax.random.normal(
        next(keys), (vision_width, embed_dim), f32)).astype(bf16)
    return p


# --------------------------------------------------------------------------- #
# CLIP forward
# --------------------------------------------------------------------------- #
def encode_text(text, p, cfg):
    B, L = text.shape
    W = p["token_embedding"].shape[1]
    x = p["token_embedding"][text] + p["positional_embedding"][:L]   # gather + add (glue)
    x2d = x.reshape(B * L, W)
    for blk in p["text_blocks"]:
        x2d = resblock_forward(x2d, B, L, cfg["text_heads"], blk, causal=True)
    x = x2d.reshape(B, L, W)
    eot = jnp.argmax(text, axis=-1)                                   # x[arange, argmax]
    pooled = x[jnp.arange(B), eot]                                    # (B, W) gather (glue)
    # LayerNorm is per-token, so ln_final commutes with the gather: fuse LN + proj + L2 norm.
    return ln_proj_norm(pooled, p["ln_final_g"], p["ln_final_b"], p["text_projection"])


def encode_image(image, p, cfg):
    B, C, H, Wimg = image.shape
    ps = cfg["patch_size"]
    Wv = p["conv1_w"].shape[1]
    gh, gw = H // ps, Wimg // ps
    n = gh * gw
    # patch extraction (equivalent to stride=ps bias-free Conv2d): layout glue
    patches = (
        image.reshape(B, C, gh, ps, gw, ps)
        .transpose(0, 2, 4, 1, 3, 5)
        .reshape(B * n, C * ps * ps)
    ).astype(jnp.float32)
    x2d = linear(patches, p["conv1_w"])                               # (B*n, Wv)
    x = x2d.reshape(B, n, Wv)
    cls = jnp.broadcast_to(p["class_embedding"][None, None, :], (B, 1, Wv))
    x = jnp.concatenate([cls, x], axis=1) + p["vis_positional_embedding"][None]
    S = n + 1
    x2d = layernorm(x.reshape(B * S, Wv), p["ln_pre_g"], p["ln_pre_b"])
    for blk in p["vision_blocks"]:
        x2d = resblock_forward(x2d, B, S, cfg["vision_heads"], blk, causal=False)
    x = x2d.reshape(B, S, Wv)
    cls_tok = x[:, 0, :]                                              # (B, Wv) glue
    return ln_proj_norm(cls_tok, p["ln_post_g"], p["ln_post_b"], p["vis_proj"])


def clip_forward(image, text, p, cfg):
    # features come out of the tail kernels already L2-normalized
    image_features = encode_image(image, p, cfg)
    text_features = encode_text(text, p, cfg)
    return image_features, text_features


# --------------------------------------------------------------------------- #
if __name__ == "__main__":
    key = jax.random.PRNGKey(0)
    k_param, k_img, k_txt = jax.random.split(key, 3)

    EMBED_DIM = 16
    CONTEXT_LENGTH = 8
    VOCAB_SIZE = 64
    IMAGE_SIZE = 16
    PATCH_SIZE = 8

    cfg = dict(text_heads=4, vision_heads=4, patch_size=PATCH_SIZE)

    params = init_clip_params(
        k_param,
        embed_dim=EMBED_DIM,
        context_length=CONTEXT_LENGTH,
        vocab_size=VOCAB_SIZE,
        text_width=32,
        text_layers=2,
        vision_width=32,
        vision_layers=2,
        image_channels=3,
        patch_size=PATCH_SIZE,
        image_size=IMAGE_SIZE,
    )

    image = jax.random.normal(k_img, (2, 3, IMAGE_SIZE, IMAGE_SIZE), jnp.float32)  # NCHW
    text = jax.random.randint(k_txt, (2, CONTEXT_LENGTH), 0, VOCAB_SIZE, dtype=jnp.int32)

    forward = jax.jit(functools.partial(clip_forward, cfg=cfg))
    img_f, txt_f = forward(image, text, params)
    jax.block_until_ready((img_f, txt_f))

    assert img_f.shape == (2, EMBED_DIM) and txt_f.shape == (2, EMBED_DIM)
    assert bool(jnp.all(jnp.isfinite(img_f))) and bool(jnp.all(jnp.isfinite(txt_f)))
    print("KERNEL_OK")
</pallas_src>

<mosaic_0001>
module attributes {stable_mosaic.version = 11 : i64} {
  func.func @_layernorm_kernel(%arg0: i32, %arg1: memref<10x32xf32, #tpu.memory_space<vmem>>, %arg2: memref<1x32xf32, #tpu.memory_space<vmem>>, %arg3: memref<1x32xf32, #tpu.memory_space<vmem>>, %arg4: memref<10x32xf32, #tpu.memory_space<vmem>>) attributes {dimension_semantics = [#tpu.dimension_semantics<parallel>], iteration_bounds = array<i64: 1>, scalar_prefetch = 0 : i64, scratch_operands = 0 : i64, tpu.core_type = #tpu.core_type<tc>, window_params = [{transform_indices = @transform_0, window_bounds = array<i64: 10, 32>}, {pipeline_mode = #tpu.pipeline_mode<synchronous>, transform_indices = @transform_1, window_bounds = array<i64: 1, 32>}, {pipeline_mode = #tpu.pipeline_mode<synchronous>, transform_indices = @transform_2, window_bounds = array<i64: 1, 32>}, {transform_indices = @transform_3, window_bounds = array<i64: 10, 32>}]} {
    %c0 = arith.constant 0 : index
    %c0_0 = arith.constant 0 : index
    %0 = vector.load %arg1[%c0, %c0_0] : memref<10x32xf32, #tpu.memory_space<vmem>>, vector<10x32xf32>
    %c0_1 = arith.constant 0 : index
    %c0_2 = arith.constant 0 : index
    %1 = vector.load %arg2[%c0_1, %c0_2] : memref<1x32xf32, #tpu.memory_space<vmem>>, vector<1x32xf32>
    %c0_3 = arith.constant 0 : index
    %c0_4 = arith.constant 0 : index
    %2 = vector.load %arg3[%c0_3, %c0_4] : memref<1x32xf32, #tpu.memory_space<vmem>>, vector<1x32xf32>
    %cst = arith.constant dense<0.000000e+00> : vector<10xf32>
    %3 = vector.multi_reduction <add>, %0, %cst [1] : vector<10x32xf32> to vector<10xf32>
    %4 = vector.shape_cast %3 : vector<10xf32> to vector<10x1xf32>
    %cst_5 = arith.constant 3.200000e+01 : f32
    %5 = vector.broadcast %cst_5 : f32 to vector<10x1xf32>
    %6 = arith.divf %4, %5 : vector<10x1xf32>
    %7 = vector.broadcast %6 : vector<10x1xf32> to vector<10x32xf32>
    %8 = arith.subf %0, %7 : vector<10x32xf32>
    %9 = arith.mulf %8, %8 : vector<10x32xf32>
    %cst_6 = arith.constant dense<0.000000e+00> : vector<10xf32>
    %10 = vector.multi_reduction <add>, %9, %cst_6 [1] : vector<10x32xf32> to vector<10xf32>
    %11 = vector.shape_cast %10 : vector<10xf32> to vector<10x1xf32>
    %cst_7 = arith.constant 3.200000e+01 : f32
    %12 = vector.broadcast %cst_7 : f32 to vector<10x1xf32>
    %13 = arith.divf %11, %12 : vector<10x1xf32>
    %14 = vector.broadcast %6 : vector<10x1xf32> to vector<10x32xf32>
    %15 = arith.subf %0, %14 : vector<10x32xf32>
    %cst_8 = arith.constant 9.99999974E-6 : f32
    %16 = vector.broadcast %cst_8 : f32 to vector<10x1xf32>
    %17 = arith.addf %13, %16 : vector<10x1xf32>
    %18 = math.rsqrt %17 : vector<10x1xf32>
    %19 = vector.broadcast %18 : vector<10x1xf32> to vector<10x32xf32>
    %20 = arith.mulf %15, %19 : vector<10x32xf32>
    %21 = vector.broadcast %1 : vector<1x32xf32> to vector<10x32xf32>
    %22 = arith.mulf %20, %21 : vector<10x32xf32>
    %23 = vector.broadcast %2 : vector<1x32xf32> to vector<10x32xf32>
    %24 = arith.addf %22, %23 : vector<10x32xf32>
    %c0_9 = arith.constant 0 : index
    %c0_10 = arith.constant 0 : index
    %25 = vector.load %arg4[%c0_9, %c0_10] : memref<10x32xf32, #tpu.memory_space<vmem>>, vector<10x32xf32>
    tpu.vector_store %arg4[%c0_9, %c0_10], %24 {strides = array<i32>} : memref<10x32xf32, #tpu.memory_space<vmem>>, vector<10x32xf32>,
    return
  }
  func.func @transform_0(%arg0: i32) -> (i32, i32) {
    %c0_i32 = arith.constant 0 : i32
    %c0_i32_0 = arith.constant 0 : i32
    return %arg0, %c0_i32 : i32, i32
  }
  func.func @transform_1(%arg0: i32) -> (i32, i32) {
    %c0_i32 = arith.constant 0 : i32
    %c0_i32_0 = arith.constant 0 : i32
    %c0_i32_1 = arith.constant 0 : i32
    return %c0_i32, %c0_i32_0 : i32, i32
  }
  func.func @transform_2(%arg0: i32) -> (i32, i32) {
    %c0_i32 = arith.constant 0 : i32
    %c0_i32_0 = arith.constant 0 : i32
    %c0_i32_1 = arith.constant 0 : i32
    return %c0_i32, %c0_i32_0 : i32, i32
  }
  func.func @transform_3(%arg0: i32) -> (i32, i32) {
    %c0_i32 = arith.constant 0 : i32
    %c0_i32_0 = arith.constant 0 : i32
    return %arg0, %c0_i32 : i32, i32
  }
}

module attributes {stable_mosaic.version = 11 : i64} {
  func.func @_ln_linear_kernel(%arg0: i32, %arg1: i32, %arg2: memref<10x32xf32, #tpu.memory_space<vmem>>, %arg3: memref<1x32xf32, #tpu.memory_space<vmem>>, %arg4: memref<1x32xf32, #tpu.memory_space<vmem>>, %arg5: memref<32x96xbf16, #tpu.memory_space<vmem>>, %arg6: memref<1x96xf32, #tpu.memory_space<vmem>>, %arg7: memref<10x96xf32, #tpu.memory_space<vmem>>) attributes {dimension_semantics = [#tpu.dimension_semantics<parallel>, #tpu.dimension_semantics<parallel>], iteration_bounds = array<i64: 1, 1>, scalar_prefetch = 0 : i64, scratch_operands = 0 : i64, tpu.core_type = #tpu.core_type<tc>, window_params = [{transform_indices = @transform_0, window_bounds = array<i64: 10, 32>}, {pipeline_mode = #tpu.pipeline_mode<synchronous>, transform_indices = @transform_1, window_bounds = array<i64: 1, 32>}, {pipeline_mode = #tpu.pipeline_mode<synchronous>, transform_indices = @transform_2, window_bounds = array<i64: 1, 32>}, {transform_indices = @transform_3, window_bounds = array<i64: 32, 96>}, {transform_indices = @transform_4, window_bounds = array<i64: 1, 96>}, {transform_indices = @transform_5, window_bounds = array<i64: 10, 96>}]} {
    %c0 = arith.constant 0 : index
    %c0_0 = arith.constant 0 : index
    %0 = vector.load %arg2[%c0, %c0_0] : memref<10x32xf32, #tpu.memory_space<vmem>>, vector<10x32xf32>
    %c0_1 = arith.constant 0 : index
    %c0_2 = arith.constant 0 : index
    %1 = vector.load %arg3[%c0_1, %c0_2] : memref<1x32xf32, #tpu.memory_space<vmem>>, vector<1x32xf32>
    %c0_3 = arith.constant 0 : index
    %c0_4 = arith.constant 0 : index
    %2 = vector.load %arg4[%c0_3, %c0_4] : memref<1x32xf32, #tpu.memory_space<vmem>>, vector<1x32xf32>
    %cst = arith.constant dense<0.000000e+00> : vector<10xf32>
    %3 = vector.multi_reduction <add>, %0, %cst [1] : vector<10x32xf32> to vector<10xf32>
    %4 = vector.shape_cast %3 : vector<10xf32> to vector<10x1xf32>
    %cst_5 = arith.constant 3.200000e+01 : f32
    %5 = vector.broadcast %cst_5 : f32 to vector<10x1xf32>
    %6 = arith.divf %4, %5 : vector<10x1xf32>
    %7 = vector.broadcast %6 : vector<10x1xf32> to vector<10x32xf32>
    %8 = arith.subf %0, %7 : vector<10x32xf32>
    %9 = arith.mulf %8, %8 : vector<10x32xf32>
    %cst_6 = arith.constant dense<0.000000e+00> : vector<10xf32>
    %10 = vector.multi_reduction <add>, %9, %cst_6 [1] : vector<10x32xf32> to vector<10xf32>
    %11 = vector.shape_cast %10 : vector<10xf32> to vector<10x1xf32>
    %cst_7 = arith.constant 3.200000e+01 : f32
    %12 = vector.broadcast %cst_7 : f32 to vector<10x1xf32>
    %13 = arith.divf %11, %12 : vector<10x1xf32>
    %14 = vector.broadcast %6 : vector<10x1xf32> to vector<10x32xf32>
    %15 = arith.subf %0, %14 : vector<10x32xf32>
    %cst_8 = arith.constant 9.99999974E-6 : f32
    %16 = vector.broadcast %cst_8 : f32 to vector<10x1xf32>
    %17 = arith.addf %13, %16 : vector<10x1xf32>
    %18 = math.rsqrt %17 : vector<10x1xf32>
    %19 = vector.broadcast %18 : vector<10x1xf32> to vector<10x32xf32>
    %20 = arith.mulf %15, %19 : vector<10x32xf32>
    %21 = vector.broadcast %1 : vector<1x32xf32> to vector<10x32xf32>
    %22 = arith.mulf %20, %21 : vector<10x32xf32>
    %23 = vector.broadcast %2 : vector<1x32xf32> to vector<10x32xf32>
    %24 = arith.addf %22, %23 : vector<10x32xf32>
    %25 = arith.truncf %24 : vector<10x32xf32> to vector<10x32xbf16>
    %c0_9 = arith.constant 0 : index
    %c0_10 = arith.constant 0 : index
    %26 = vector.load %arg5[%c0_9, %c0_10] : memref<32x96xbf16, #tpu.memory_space<vmem>>, vector<32x96xbf16>
    %cst_11 = arith.constant dense<0.000000e+00> : vector<10x96xf32>
    %27 = tpu.matmul %25, %26, %cst_11 {dimension_numbers = #tpu.dot_dimension_numbers<[1], [0], [0], [1], [0, 0, 1, 1], [], []>} : vector<10x32xbf16>, vector<32x96xbf16>, vector<10x96xf32> -> vector<10x96xf32>
    %c0_12 = arith.constant 0 : index
    %c0_13 = arith.constant 0 : index
    %28 = vector.load %arg6[%c0_12, %c0_13] : memref<1x96xf32, #tpu.memory_space<vmem>>, vector<1x96xf32>
    %29 = vector.broadcast %28 : vector<1x96xf32> to vector<10x96xf32>
    %30 = arith.addf %27, %29 : vector<10x96xf32>
    %c0_14 = arith.constant 0 : index
    %c0_15 = arith.constant 0 : index
    %31 = vector.load %arg7[%c0_14, %c0_15] : memref<10x96xf32, #tpu.memory_space<vmem>>, vector<10x96xf32>
    tpu.vector_store %arg7[%c0_14, %c0_15], %30 {strides = array<i32>} : memref<10x96xf32, #tpu.memory_space<vmem>>, vector<10x96xf32>,
    return
  }
  func.func @transform_0(%arg0: i32, %arg1: i32) -> (i32, i32) {
    %c0_i32 = arith.constant 0 : i32
    %c0_i32_0 = arith.constant 0 : i32
    return %arg0, %c0_i32 : i32, i32
  }
  func.func @transform_1(%arg0: i32, %arg1: i32) -> (i32, i32) {
    %c0_i32 = arith.constant 0 : i32
    %c0_i32_0 = arith.constant 0 : i32
    %c0_i32_1 = arith.constant 0 : i32
    return %c0_i32, %c0_i32_0 : i32, i32
  }
  func.func @transform_2(%arg0: i32, %arg1: i32) -> (i32, i32) {
    %c0_i32 = arith.constant 0 : i32
    %c0_i32_0 = arith.constant 0 : i32
    %c0_i32_1 = arith.constant 0 : i32
    return %c0_i32, %c0_i32_0 : i32, i32
  }
  func.func @transform_3(%arg0: i32, %arg1: i32) -> (i32, i32) {
    %c0_i32 = arith.constant 0 : i32
    %c0_i32_0 = arith.constant 0 : i32
    return %c0_i32, %arg1 : i32, i32
  }
  func.func @transform_4(%arg0: i32, %arg1: i32) -> (i32, i32) {
    %c0_i32 = arith.constant 0 : i32
    %c0_i32_0 = arith.constant 0 : i32
    return %c0_i32, %arg1 : i32, i32
  }
  func.func @transform_5(%arg0: i32, %arg1: i32) -> (i32, i32) {
    %c0_i32 = arith.constant 0 : i32
    return %arg0, %arg1 : i32, i32
  }
}

module attributes {stable_mosaic.version = 11 : i64} {
  func.func @_linear_kernel(%arg0: i32, %arg1: i32, %arg2: memref<8x192xf32, #tpu.memory_space<vmem>>, %arg3: memref<192x32xbf16, #tpu.memory_space<vmem>>, %arg4: memref<8x32xf32, #tpu.memory_space<vmem>>) attributes {dimension_semantics = [#tpu.dimension_semantics<parallel>, #tpu.dimension_semantics<parallel>], iteration_bounds = array<i64: 1, 1>, scalar_prefetch = 0 : i64, scratch_operands = 0 : i64, tpu.core_type = #tpu.core_type<tc>, window_params = [{transform_indices = @transform_0, window_bounds = array<i64: 8, 192>}, {transform_indices = @transform_1, window_bounds = array<i64: 192, 32>}, {transform_indices = @transform_2, window_bounds = array<i64: 8, 32>}]} {
    %c0 = arith.constant 0 : index
    %c0_0 = arith.constant 0 : index
    %0 = vector.load %arg2[%c0, %c0_0] : memref<8x192xf32, #tpu.memory_space<vmem>>, vector<8x192xf32>
    %1 = arith.truncf %0 : vector<8x192xf32> to vector<8x192xbf16>
    %c0_1 = arith.constant 0 : index
    %c0_2 = arith.constant 0 : index
    %2 = vector.load %arg3[%c0_1, %c0_2] : memref<192x32xbf16, #tpu.memory_space<vmem>>, vector<192x32xbf16>
    %cst = arith.constant dense<0.000000e+00> : vector<8x32xf32>
    %3 = tpu.matmul %1, %2, %cst {dimension_numbers = #tpu.dot_dimension_numbers<[1], [0], [0], [1], [0, 0, 1, 1], [], []>} : vector<8x192xbf16>, vector<192x32xbf16>, vector<8x32xf32> -> vector<8x32xf32>
    %c0_3 = arith.constant 0 : index
    %c0_4 = arith.constant 0 : index
    %4 = vector.load %arg4[%c0_3, %c0_4] : memref<8x32xf32, #tpu.memory_space<vmem>>, vector<8x32xf32>
    tpu.vector_store %arg4[%c0_3, %c0_4], %3 {strides = array<i32>} : memref<8x32xf32, #tpu.memory_space<vmem>>, vector<8x32xf32>,
    return
  }
  func.func @transform_0(%arg0: i32, %arg1: i32) -> (i32, i32) {
    %c0_i32 = arith.constant 0 : i32
    %c0_i32_0 = arith.constant 0 : i32
    return %arg0, %c0_i32 : i32, i32
  }
  func.func @transform_1(%arg0: i32, %arg1: i32) -> (i32, i32) {
    %c0_i32 = arith.constant 0 : i32
    %c0_i32_0 = arith.constant 0 : i32
    return %c0_i32, %arg1 : i32, i32
  }
  func.func @transform_2(%arg0: i32, %arg1: i32) -> (i32, i32) {
    %c0_i32 = arith.constant 0 : i32
    return %arg0, %arg1 : i32, i32
  }
}

module attributes {stable_mosaic.version = 11 : i64} {
  func.func @_attention_kernel(%arg0: i32, %arg1: memref<1x5x96xf32, #tpu.memory_space<vmem>>, %arg2: memref<1x5x32xf32, #tpu.memory_space<vmem>>) attributes {dimension_semantics = [#tpu.dimension_semantics<parallel>], iteration_bounds = array<i64: 2>, scalar_prefetch = 0 : i64, scratch_operands = 0 : i64, tpu.core_type = #tpu.core_type<tc>, window_params = [{transform_indices = @transform_0, window_bounds = array<i64: 1, 5, 96>}, {transform_indices = @transform_1, window_bounds = array<i64: 1, 5, 32>}]} {
    %c0 = arith.constant 0 : index
    %c0_0 = arith.constant 0 : index
    %c0_1 = arith.constant 0 : index
    %0 = vector.load %arg1[%c0, %c0_0, %c0_1] : memref<1x5x96xf32, #tpu.memory_space<vmem>>, vector<1x5x32xf32>
    %1 = vector.shape_cast %0 : vector<1x5x32xf32> to vector<5x32xf32>
    %2 = arith.truncf %1 : vector<5x32xf32> to vector<5x32xbf16>
    %c0_2 = arith.constant 0 : index
    %c0_3 = arith.constant 0 : index
    %c32 = arith.constant 32 : index
    %3 = vector.load %arg1[%c0_2, %c0_3, %c32] : memref<1x5x96xf32, #tpu.memory_space<vmem>>, vector<1x5x32xf32>
    %4 = vector.shape_cast %3 : vector<1x5x32xf32> to vector<5x32xf32>
    %5 = arith.truncf %4 : vector<5x32xf32> to vector<5x32xbf16>
    %c0_4 = arith.constant 0 : index
    %c0_5 = arith.constant 0 : index
    %c64 = arith.constant 64 : index
    %6 = vector.load %arg1[%c0_4, %c0_5, %c64] : memref<1x5x96xf32, #tpu.memory_space<vmem>>, vector<1x5x32xf32>
    %7 = vector.shape_cast %6 : vector<1x5x32xf32> to vector<5x32xf32>
    %8 = arith.truncf %7 : vector<5x32xf32> to vector<5x32xbf16>
    %9 = vector.extract_strided_slice %2 {offsets = [0, 0], sizes = [5, 8], strides = [1, 1]} : vector<5x32xbf16> to vector<5x8xbf16>
    %10 = vector.extract_strided_slice %5 {offsets = [0, 0], sizes = [5, 8], strides = [1, 1]} : vector<5x32xbf16> to vector<5x8xbf16>
    %11 = vector.extract_strided_slice %8 {offsets = [0, 0], sizes = [5, 8], strides = [1, 1]} : vector<5x32xbf16> to vector<5x8xbf16>
    %cst = arith.constant dense<0.000000e+00> : vector<5x5xf32>
    %12 = tpu.matmul %9, %10, %cst {dimension_numbers = #tpu.dot_dimension_numbers<[1], [1], [0], [0], [0, 0, 1, 0], [], []>} : vector<5x8xbf16>, vector<5x8xbf16>, vector<5x5xf32> -> vector<5x5xf32>
    %cst_6 = arith.constant 0.353553385 : f32
    %13 = vector.broadcast %cst_6 : f32 to vector<5x5xf32>
    %14 = arith.mulf %12, %13 : vector<5x5xf32>
    %cst_7 = arith.constant dense<0xFF800000> : vector<5xf32>
    %15 = vector.multi_reduction <maximumf>, %14, %cst_7 [1] : vector<5x5xf32> to vector<5xf32>
    %16 = vector.shape_cast %15 : vector<5xf32> to vector<5x1xf32>
    %17 = vector.broadcast %16 : vector<5x1xf32> to vector<5x5xf32>
    %18 = arith.subf %14, %17 : vector<5x5xf32>
    %19 = math.exp %18 : vector<5x5xf32>
    %cst_8 = arith.constant dense<0.000000e+00> : vector<5xf32>
    %20 = vector.multi_reduction <add>, %19, %cst_8 [1] : vector<5x5xf32> to vector<5xf32>
    %21 = vector.shape_cast %20 : vector<5xf32> to vector<5x1xf32>
    %22 = tpu.reciprocal %21 {approx = true} : vector<5x1xf32> -> vector<5x1xf32>
    %23 = vector.broadcast %22 : vector<5x1xf32> to vector<5x5xf32>
    %24 = arith.mulf %19, %23 : vector<5x5xf32>
    %25 = arith.truncf %24 : vector<5x5xf32> to vector<5x5xbf16>
    %cst_9 = arith.constant dense<0.000000e+00> : vector<5x8xf32>
    %26 = tpu.matmul %25, %11, %cst_9 {dimension_numbers = #tpu.dot_dimension_numbers<[1], [0], [0], [1], [0, 0, 1, 1], [], []>} : vector<5x5xbf16>, vector<5x8xbf16>, vector<5x8xf32> -> vector<5x8xf32>
    %27 = vector.extract_strided_slice %2 {offsets = [0, 8], sizes = [5, 8], strides = [1, 1]} : vector<5x32xbf16> to vector<5x8xbf16>
    %28 = vector.extract_strided_slice %5 {offsets = [0, 8], sizes = [5, 8], strides = [1, 1]} : vector<5x32xbf16> to vector<5x8xbf16>
    %29 = vector.extract_strided_slice %8 {offsets = [0, 8], sizes = [5, 8], strides = [1, 1]} : vector<5x32xbf16> to vector<5x8xbf16>
    %cst_10 = arith.constant dense<0.000000e+00> : vector<5x5xf32>
    %30 = tpu.matmul %27, %28, %cst_10 {dimension_numbers = #tpu.dot_dimension_numbers<[1], [1], [0], [0], [0, 0, 1, 0], [], []>} : vector<5x8xbf16>, vector<5x8xbf16>, vector<5x5xf32> -> vector<5x5xf32>
    %cst_11 = arith.constant 0.353553385 : f32
    %31 = vector.broadcast %cst_11 : f32 to vector<5x5xf32>
    %32 = arith.mulf %30, %31 : vector<5x5xf32>
    %cst_12 = arith.constant dense<0xFF800000> : vector<5xf32>
    %33 = vector.multi_reduction <maximumf>, %32, %cst_12 [1] : vector<5x5xf32> to vector<5xf32>
    %34 = vector.shape_cast %33 : vector<5xf32> to vector<5x1xf32>
    %35 = vector.broadcast %34 : vector<5x1xf32> to vector<5x5xf32>
    %36 = arith.subf %32, %35 : vector<5x5xf32>
    %37 = math.exp %36 : vector<5x5xf32>
    %cst_13 = arith.constant dense<0.000000e+00> : vector<5xf32>
    %38 = vector.multi_reduction <add>, %37, %cst_13 [1] : vector<5x5xf32> to vector<5xf32>
    %39 = vector.shape_cast %38 : vector<5xf32> to vector<5x1xf32>
    %40 = tpu.reciprocal %39 {approx = true} : vector<5x1xf32> -> vector<5x1xf32>
    %41 = vector.broadcast %40 : vector<5x1xf32> to vector<5x5xf32>
    %42 = arith.mulf %37, %41 : vector<5x5xf32>
    %43 = arith.truncf %42 : vector<5x5xf32> to vector<5x5xbf16>
    %cst_14 = arith.constant dense<0.000000e+00> : vector<5x8xf32>
    %44 = tpu.matmul %43, %29, %cst_14 {dimension_numbers = #tpu.dot_dimension_numbers<[1], [0], [0], [1], [0, 0, 1, 1], [], []>} : vector<5x5xbf16>, vector<5x8xbf16>, vector<5x8xf32> -> vector<5x8xf32>
    %45 = vector.extract_strided_slice %2 {offsets = [0, 16], sizes = [5, 8], strides = [1, 1]} : vector<5x32xbf16> to vector<5x8xbf16>
    %46 = vector.extract_strided_slice %5 {offsets = [0, 16], sizes = [5, 8], strides = [1, 1]} : vector<5x32xbf16> to vector<5x8xbf16>
    %47 = vector.extract_strided_slice %8 {offsets = [0, 16], sizes = [5, 8], strides = [1, 1]} : vector<5x32xbf16> to vector<5x8xbf16>
    %cst_15 = arith.constant dense<0.000000e+00> : vector<5x5xf32>
    %48 = tpu.matmul %45, %46, %cst_15 {dimension_numbers = #tpu.dot_dimension_numbers<[1], [1], [0], [0], [0, 0, 1, 0], [], []>} : vector<5x8xbf16>, vector<5x8xbf16>, vector<5x5xf32> -> vector<5x5xf32>
    %cst_16 = arith.constant 0.353553385 : f32
    %49 = vector.broadcast %cst_16 : f32 to vector<5x5xf32>
    %50 = arith.mulf %48, %49 : vector<5x5xf32>
    %cst_17 = arith.constant dense<0xFF800000> : vector<5xf32>
    %51 = vector.multi_reduction <maximumf>, %50, %cst_17 [1] : vector<5x5xf32> to vector<5xf32>
    %52 = vector.shape_cast %51 : vector<5xf32> to vector<5x1xf32>
    %53 = vector.broadcast %52 : vector<5x1xf32> to vector<5x5xf32>
    %54 = arith.subf %50, %53 : vector<5x5xf32>
    %55 = math.exp %54 : vector<5x5xf32>
    %cst_18 = arith.constant dense<0.000000e+00> : vector<5xf32>
    %56 = vector.multi_reduction <add>, %55, %cst_18 [1] : vector<5x5xf32> to vector<5xf32>
    %57 = vector.shape_cast %56 : vector<5xf32> to vector<5x1xf32>
    %58 = tpu.reciprocal %57 {approx = true} : vector<5x1xf32> -> vector<5x1xf32>
    %59 = vector.broadcast %58 : vector<5x1xf32> to vector<5x5xf32>
    %60 = arith.mulf %55, %59 : vector<5x5xf32>
    %61 = arith.truncf %60 : vector<5x5xf32> to vector<5x5xbf16>
    %cst_19 = arith.constant dense<0.000000e+00> : vector<5x8xf32>
    %62 = tpu.matmul %61, %47, %cst_19 {dimension_numbers = #tpu.dot_dimension_numbers<[1], [0], [0], [1], [0, 0, 1, 1], [], []>} : vector<5x5xbf16>, vector<5x8xbf16>, vector<5x8xf32> -> vector<5x8xf32>
    %63 = vector.extract_strided_slice %2 {offsets = [0, 24], sizes = [5, 8], strides = [1, 1]} : vector<5x32xbf16> to vector<5x8xbf16>
    %64 = vector.extract_strided_slice %5 {offsets = [0, 24], sizes = [5, 8], strides = [1, 1]} : vector<5x32xbf16> to vector<5x8xbf16>
    %65 = vector.extract_strided_slice %8 {offsets = [0, 24], sizes = [5, 8], strides = [1, 1]} : vector<5x32xbf16> to vector<5x8xbf16>
    %cst_20 = arith.constant dense<0.000000e+00> : vector<5x5xf32>
    %66 = tpu.matmul %63, %64, %cst_20 {dimension_numbers = #tpu.dot_dimension_numbers<[1], [1], [0], [0], [0, 0, 1, 0], [], []>} : vector<5x8xbf16>, vector<5x8xbf16>, vector<5x5xf32> -> vector<5x5xf32>
    %cst_21 = arith.constant 0.353553385 : f32
    %67 = vector.broadcast %cst_21 : f32 to vector<5x5xf32>
    %68 = arith.mulf %66, %67 : vector<5x5xf32>
    %cst_22 = arith.constant dense<0xFF800000> : vector<5xf32>
    %69 = vector.multi_reduction <maximumf>, %68, %cst_22 [1] : vector<5x5xf32> to vector<5xf32>
    %70 = vector.shape_cast %69 : vector<5xf32> to vector<5x1xf32>
    %71 = vector.broadcast %70 : vector<5x1xf32> to vector<5x5xf32>
    %72 = arith.subf %68, %71 : vector<5x5xf32>
    %73 = math.exp %72 : vector<5x5xf32>
    %cst_23 = arith.constant dense<0.000000e+00> : vector<5xf32>
    %74 = vector.multi_reduction <add>, %73, %cst_23 [1] : vector<5x5xf32> to vector<5xf32>
    %75 = vector.shape_cast %74 : vector<5xf32> to vector<5x1xf32>
    %76 = tpu.reciprocal %75 {approx = true} : vector<5x1xf32> -> vector<5x1xf32>
    %77 = vector.broadcast %76 : vector<5x1xf32> to vector<5x5xf32>
    %78 = arith.mulf %73, %77 : vector<5x5xf32>
    %79 = arith.truncf %78 : vector<5x5xf32> to vector<5x5xbf16>
    %cst_24 = arith.constant dense<0.000000e+00> : vector<5x8xf32>
    %80 = tpu.matmul %79, %65, %cst_24 {dimension_numbers = #tpu.dot_dimension_numbers<[1], [0], [0], [1], [0, 0, 1, 1], [], []>} : vector<5x5xbf16>, vector<5x8xbf16>, vector<5x8xf32> -> vector<5x8xf32>
    %81 = tpu.concatenate %26, %44, %62, %80 in 1 : vector<5x8xf32>, vector<5x8xf32>, vector<5x8xf32>, vector<5x8xf32> -> vector<5x32xf32>
    %c0_25 = arith.constant 0 : index
    %c0_26 = arith.constant 0 : index
    %c0_27 = arith.constant 0 : index
    %82 = vector.load %arg2[%c0_25, %c0_26, %c0_27] : memref<1x5x32xf32, #tpu.memory_space<vmem>>, vector<1x5x32xf32>
    %83 = vector.shape_cast %82 : vector<1x5x32xf32> to vector<5x32xf32>
    %84 = vector.shape_cast %81 : vector<5x32xf32> to vector<1x5x32xf32>
    tpu.vector_store %arg2[%c0_25, %c0_26, %c0_27], %84 {strides = array<i32>} : memref<1x5x32xf32, #tpu.memory_space<vmem>>, vector<1x5x32xf32>,
    return
  }
  func.func @transform_0(%arg0: i32) -> (i32, i32, i32) {
    %c0_i32 = arith.constant 0 : i32
    %c0_i32_0 = arith.constant 0 : i32
    %c0_i32_1 = arith.constant 0 : i32
    return %arg0, %c0_i32, %c0_i32_0 : i32, i32, i32
  }
  func.func @transform_1(%arg0: i32) -> (i32, i32, i32) {
    %c0_i32 = arith.constant 0 : i32
    %c0_i32_0 = arith.constant 0 : i32
    %c0_i32_1 = arith.constant 0 : i32
    return %arg0, %c0_i32, %c0_i32_0 : i32, i32, i32
  }
}

module attributes {stable_mosaic.version = 11 : i64} {
  func.func @_mlp_kernel(%arg0: i32, %arg1: i32, %arg2: memref<10x32xf32, #tpu.memory_space<vmem>>, %arg3: memref<1x32xf32, #tpu.memory_space<vmem>>, %arg4: memref<1x32xf32, #tpu.memory_space<vmem>>, %arg5: memref<32x128xbf16, #tpu.memory_space<vmem>>, %arg6: memref<1x128xf32, #tpu.memory_space<vmem>>, %arg7: memref<128x32xbf16, #tpu.memory_space<vmem>>, %arg8: memref<1x32xf32, #tpu.memory_space<vmem>>, %arg9: memref<10x32xf32, #tpu.memory_space<vmem>>, %arg10: memref<10x32xbf16, #tpu.memory_space<vmem>>, %arg11: memref<10x32xf32, #tpu.memory_space<vmem>>) attributes {dimension_semantics = [#tpu.dimension_semantics<parallel>, #tpu.dimension_semantics<arbitrary>], iteration_bounds = array<i64: 1, 1>, scalar_prefetch = 0 : i64, scratch_operands = 2 : i64, tpu.core_type = #tpu.core_type<tc>, window_params = [{transform_indices = @transform_0, window_bounds = array<i64: 10, 32>}, {pipeline_mode = #tpu.pipeline_mode<synchronous>, transform_indices = @transform_1, window_bounds = array<i64: 1, 32>}, {pipeline_mode = #tpu.pipeline_mode<synchronous>, transform_indices = @transform_2, window_bounds = array<i64: 1, 32>}, {transform_indices = @transform_3, window_bounds = array<i64: 32, 128>}, {transform_indices = @transform_4, window_bounds = array<i64: 1, 128>}, {transform_indices = @transform_5, window_bounds = array<i64: 128, 32>}, {pipeline_mode = #tpu.pipeline_mode<synchronous>, transform_indices = @transform_6, window_bounds = array<i64: 1, 32>}, {transform_indices = @transform_7, window_bounds = array<i64: 10, 32>}]} {
    %c0_i32 = arith.constant 0 : i32
    %0 = arith.cmpi eq, %arg1, %c0_i32 : i32
    %1 = arith.extui %0 : i1 to i32
    %c0_i32_0 = arith.constant 0 : i32
    %2 = arith.cmpi ne, %1, %c0_i32_0 : i32
    scf.if %2 {
      %c0_17 = arith.constant 0 : index
      %c0_18 = arith.constant 0 : index
      %26 = vector.load %arg2[%c0_17, %c0_18] : memref<10x32xf32, #tpu.memory_space<vmem>>, vector<10x32xf32>
      %c0_19 = arith.constant 0 : index
      %c0_20 = arith.constant 0 : index
      %27 = vector.load %arg3[%c0_19, %c0_20] : memref<1x32xf32, #tpu.memory_space<vmem>>, vector<1x32xf32>
      %c0_21 = arith.constant 0 : index
      %c0_22 = arith.constant 0 : index
      %28 = vector.load %arg4[%c0_21, %c0_22] : memref<1x32xf32, #tpu.memory_space<vmem>>, vector<1x32xf32>
      %cst_23 = arith.constant dense<0.000000e+00> : vector<10xf32>
      %29 = vector.multi_reduction <add>, %26, %cst_23 [1] : vector<10x32xf32> to vector<10xf32>
      %30 = vector.shape_cast %29 : vector<10xf32> to vector<10x1xf32>
      %cst_24 = arith.constant 3.200000e+01 : f32
      %31 = vector.broadcast %cst_24 : f32 to vector<10x1xf32>
      %32 = arith.divf %30, %31 : vector<10x1xf32>
      %33 = vector.broadcast %32 : vector<10x1xf32> to vector<10x32xf32>
      %34 = arith.subf %26, %33 : vector<10x32xf32>
      %35 = arith.mulf %34, %34 : vector<10x32xf32>
      %cst_25 = arith.constant dense<0.000000e+00> : vector<10xf32>
      %36 = vector.multi_reduction <add>, %35, %cst_25 [1] : vector<10x32xf32> to vector<10xf32>
      %37 = vector.shape_cast %36 : vector<10xf32> to vector<10x1xf32>
      %cst_26 = arith.constant 3.200000e+01 : f32
      %38 = vector.broadcast %cst_26 : f32 to vector<10x1xf32>
      %39 = arith.divf %37, %38 : vector<10x1xf32>
      %40 = vector.broadcast %32 : vector<10x1xf32> to vector<10x32xf32>
      %41 = arith.subf %26, %40 : vector<10x32xf32>
      %cst_27 = arith.constant 9.99999974E-6 : f32
      %42 = vector.broadcast %cst_27 : f32 to vector<10x1xf32>
      %43 = arith.addf %39, %42 : vector<10x1xf32>
      %44 = math.rsqrt %43 : vector<10x1xf32>
      %45 = vector.broadcast %44 : vector<10x1xf32> to vector<10x32xf32>
      %46 = arith.mulf %41, %45 : vector<10x32xf32>
      %47 = vector.broadcast %27 : vector<1x32xf32> to vector<10x32xf32>
      %48 = arith.mulf %46, %47 : vector<10x32xf32>
      %49 = vector.broadcast %28 : vector<1x32xf32> to vector<10x32xf32>
      %50 = arith.addf %48, %49 : vector<10x32xf32>
      %51 = arith.truncf %50 : vector<10x32xf32> to vector<10x32xbf16>
      %c0_28 = arith.constant 0 : index
      %c0_29 = arith.constant 0 : index
      %52 = vector.load %arg10[%c0_28, %c0_29] : memref<10x32xbf16, #tpu.memory_space<vmem>>, vector<10x32xbf16>
      tpu.vector_store %arg10[%c0_28, %c0_29], %51 {strides = array<i32>} : memref<10x32xbf16, #tpu.memory_space<vmem>>, vector<10x32xbf16>,
      %cst_30 = arith.constant 0.000000e+00 : f32
      %53 = vector.broadcast %cst_30 : f32 to vector<10x32xf32>
      %c0_31 = arith.constant 0 : index
      %c0_32 = arith.constant 0 : index
      %54 = vector.load %arg11[%c0_31, %c0_32] : memref<10x32xf32, #tpu.memory_space<vmem>>, vector<10x32xf32>
      tpu.vector_store %arg11[%c0_31, %c0_32], %53 {strides = array<i32>} : memref<10x32xf32, #tpu.memory_space<vmem>>, vector<10x32xf32>,
    } else {
    }
    %c0 = arith.constant 0 : index
    %c0_1 = arith.constant 0 : index
    %3 = vector.load %arg10[%c0, %c0_1] : memref<10x32xbf16, #tpu.memory_space<vmem>>, vector<10x32xbf16>
    %c0_2 = arith.constant 0 : index
    %c0_3 = arith.constant 0 : index
    %4 = vector.load %arg5[%c0_2, %c0_3] : memref<32x128xbf16, #tpu.memory_space<vmem>>, vector<32x128xbf16>
    %cst = arith.constant dense<0.000000e+00> : vector<10x128xf32>
    %5 = tpu.matmul %3, %4, %cst {dimension_numbers = #tpu.dot_dimension_numbers<[1], [0], [0], [1], [0, 0, 1, 1], [], []>} : vector<10x32xbf16>, vector<32x128xbf16>, vector<10x128xf32> -> vector<10x128xf32>
    %c0_4 = arith.constant 0 : index
    %c0_5 = arith.constant 0 : index
    %6 = vector.load %arg6[%c0_4, %c0_5] : memref<1x128xf32, #tpu.memory_space<vmem>>, vector<1x128xf32>
    %7 = vector.broadcast %6 : vector<1x128xf32> to vector<10x128xf32>
    %8 = arith.addf %5, %7 : vector<10x128xf32>
    %cst_6 = arith.constant 1.702000e+00 : f32
    %9 = vector.broadcast %cst_6 : f32 to vector<10x128xf32>
    %10 = arith.mulf %9, %8 : vector<10x128xf32>
    %11 = arith.negf %10 : vector<10x128xf32>
    %12 = math.exp %11 : vector<10x128xf32>
    %cst_7 = arith.constant 1.000000e+00 : f32
    %13 = vector.broadcast %cst_7 : f32 to vector<10x128xf32>
    %14 = arith.addf %13, %12 : vector<10x128xf32>
    %15 = arith.divf %13, %14 : vector<10x128xf32>
    %16 = arith.mulf %8, %15 : vector<10x128xf32>
    %c0_8 = arith.constant 0 : index
    %c0_9 = arith.constant 0 : index
    %17 = vector.load %arg11[%c0_8, %c0_9] : memref<10x32xf32, #tpu.memory_space<vmem>>, vector<10x32xf32>
    %18 = arith.truncf %16 : vector<10x128xf32> to vector<10x128xbf16>
    %c0_10 = arith.constant 0 : index
    %c0_11 = arith.constant 0 : index
    %19 = vector.load %arg7[%c0_10, %c0_11] : memref<128x32xbf16, #tpu.memory_space<vmem>>, vector<128x32xbf16>
    %cst_12 = arith.constant dense<0.000000e+00> : vector<10x32xf32>
    %20 = tpu.matmul %18, %19, %cst_12 {dimension_numbers = #tpu.dot_dimension_numbers<[1], [0], [0], [1], [0, 0, 1, 1], [], []>} : vector<10x128xbf16>, vector<128x32xbf16>, vector<10x32xf32> -> vector<10x32xf32>
    %21 = arith.addf %17, %20 : vector<10x32xf32>
    %c0_13 = arith.constant 0 : index
    %c0_14 = arith.constant 0 : index
    %22 = vector.load %arg11[%c0_13, %c0_14] : memref<10x32xf32, #tpu.memory_space<vmem>>, vector<10x32xf32>
    tpu.vector_store %arg11[%c0_13, %c0_14], %21 {strides = array<i32>} : memref<10x32xf32, #tpu.memory_space<vmem>>, vector<10x32xf32>,
    %c0_i32_15 = arith.constant 0 : i32
    %23 = arith.cmpi eq, %arg1, %c0_i32_15 : i32
    %24 = arith.extui %23 : i1 to i32
    %c0_i32_16 = arith.constant 0 : i32
    %25 = arith.cmpi ne, %24, %c0_i32_16 : i32
    scf.if %25 {
      %c0_17 = arith.constant 0 : index
      %c0_18 = arith.constant 0 : index
      %26 = vector.load %arg2[%c0_17, %c0_18] : memref<10x32xf32, #tpu.memory_space<vmem>>, vector<10x32xf32>
      %c0_19 = arith.constant 0 : index
      %c0_20 = arith.constant 0 : index
      %27 = vector.load %arg11[%c0_19, %c0_20] : memref<10x32xf32, #tpu.memory_space<vmem>>, vector<10x32xf32>
      %28 = arith.addf %26, %27 : vector<10x32xf32>
      %c0_21 = arith.constant 0 : index
      %c0_22 = arith.constant 0 : index
      %29 = vector.load %arg8[%c0_21, %c0_22] : memref<1x32xf32, #tpu.memory_space<vmem>>, vector<1x32xf32>
      %30 = vector.broadcast %29 : vector<1x32xf32> to vector<10x32xf32>
      %31 = arith.addf %28, %30 : vector<10x32xf32>
      %c0_23 = arith.constant 0 : index
      %c0_24 = arith.constant 0 : index
      %32 = vector.load %arg9[%c0_23, %c0_24] : memref<10x32xf32, #tpu.memory_space<vmem>>, vector<10x32xf32>
      tpu.vector_store %arg9[%c0_23, %c0_24], %31 {strides = array<i32>} : memref<10x32xf32, #tpu.memory_space<vmem>>, vector<10x32xf32>,
    } else {
    }
    return
  }
  func.func @transform_0(%arg0: i32, %arg1: i32) -> (i32, i32) {
    %c0_i32 = arith.constant 0 : i32
    %c0_i32_0 = arith.constant 0 : i32
    return %arg0, %c0_i32 : i32, i32
  }
  func.func @transform_1(%arg0: i32, %arg1: i32) -> (i32, i32) {
    %c0_i32 = arith.constant 0 : i32
    %c0_i32_0 = arith.constant 0 : i32
    %c0_i32_1 = arith.constant 0 : i32
    return %c0_i32, %c0_i32_0 : i32, i32
  }
  func.func @transform_2(%arg0: i32, %arg1: i32) -> (i32, i32) {
    %c0_i32 = arith.constant 0 : i32
    %c0_i32_0 = arith.constant 0 : i32
    %c0_i32_1 = arith.constant 0 : i32
    return %c0_i32, %c0_i32_0 : i32, i32
  }
  func.func @transform_3(%arg0: i32, %arg1: i32) -> (i32, i32) {
    %c0_i32 = arith.constant 0 : i32
    %c0_i32_0 = arith.constant 0 : i32
    return %c0_i32, %arg1 : i32, i32
  }
  func.func @transform_4(%arg0: i32, %arg1: i32) -> (i32, i32) {
    %c0_i32 = arith.constant 0 : i32
    %c0_i32_0 = arith.constant 0 : i32
    return %c0_i32, %arg1 : i32, i32
  }
  func.func @transform_5(%arg0: i32, %arg1: i32) -> (i32, i32) {
    %c0_i32 = arith.constant 0 : i32
    %c0_i32_0 = arith.constant 0 : i32
    return %arg1, %c0_i32 : i32, i32
  }
  func.func @transform_6(%arg0: i32, %arg1: i32) -> (i32, i32) {
    %c0_i32 = arith.constant 0 : i32
    %c0_i32_0 = arith.constant 0 : i32
    %c0_i32_1 = arith.constant 0 : i32
    return %c0_i32, %c0_i32_0 : i32, i32
  }
  func.func @transform_7(%arg0: i32, %arg1: i32) -> (i32, i32) {
    %c0_i32 = arith.constant 0 : i32
    %c0_i32_0 = arith.constant 0 : i32
    return %arg0, %c0_i32 : i32, i32
  }
}

module attributes {stable_mosaic.version = 11 : i64} {
  func.func @_ln_proj_norm_kernel(%arg0: i32, %arg1: memref<2x32xf32, #tpu.memory_space<vmem>>, %arg2: memref<1x32xf32, #tpu.memory_space<vmem>>, %arg3: memref<1x32xf32, #tpu.memory_space<vmem>>, %arg4: memref<32x16xbf16, #tpu.memory_space<vmem>>, %arg5: memref<2x16xf32, #tpu.memory_space<vmem>>) attributes {dimension_semantics = [#tpu.dimension_semantics<parallel>], iteration_bounds = array<i64: 1>, scalar_prefetch = 0 : i64, scratch_operands = 0 : i64, tpu.core_type = #tpu.core_type<tc>, window_params = [{transform_indices = @transform_0, window_bounds = array<i64: 2, 32>}, {pipeline_mode = #tpu.pipeline_mode<synchronous>, transform_indices = @transform_1, window_bounds = array<i64: 1, 32>}, {pipeline_mode = #tpu.pipeline_mode<synchronous>, transform_indices = @transform_2, window_bounds = array<i64: 1, 32>}, {pipeline_mode = #tpu.pipeline_mode<synchronous>, transform_indices = @transform_3, window_bounds = array<i64: 32, 16>}, {transform_indices = @transform_4, window_bounds = array<i64: 2, 16>}]} {
    %c0 = arith.constant 0 : index
    %c0_0 = arith.constant 0 : index
    %0 = vector.load %arg1[%c0, %c0_0] : memref<2x32xf32, #tpu.memory_space<vmem>>, vector<2x32xf32>
    %c0_1 = arith.constant 0 : index
    %c0_2 = arith.constant 0 : index
    %1 = vector.load %arg2[%c0_1, %c0_2] : memref<1x32xf32, #tpu.memory_space<vmem>>, vector<1x32xf32>
    %c0_3 = arith.constant 0 : index
    %c0_4 = arith.constant 0 : index
    %2 = vector.load %arg3[%c0_3, %c0_4] : memref<1x32xf32, #tpu.memory_space<vmem>>, vector<1x32xf32>
    %cst = arith.constant dense<0.000000e+00> : vector<2xf32>
    %3 = vector.multi_reduction <add>, %0, %cst [1] : vector<2x32xf32> to vector<2xf32>
    %4 = vector.shape_cast %3 : vector<2xf32> to vector<2x1xf32>
    %cst_5 = arith.constant 3.200000e+01 : f32
    %5 = vector.broadcast %cst_5 : f32 to vector<2x1xf32>
    %6 = arith.divf %4, %5 : vector<2x1xf32>
    %7 = vector.broadcast %6 : vector<2x1xf32> to vector<2x32xf32>
    %8 = arith.subf %0, %7 : vector<2x32xf32>
    %9 = arith.mulf %8, %8 : vector<2x32xf32>
    %cst_6 = arith.constant dense<0.000000e+00> : vector<2xf32>
    %10 = vector.multi_reduction <add>, %9, %cst_6 [1] : vector<2x32xf32> to vector<2xf32>
    %11 = vector.shape_cast %10 : vector<2xf32> to vector<2x1xf32>
    %cst_7 = arith.constant 3.200000e+01 : f32
    %12 = vector.broadcast %cst_7 : f32 to vector<2x1xf32>
    %13 = arith.divf %11, %12 : vector<2x1xf32>
    %14 = vector.broadcast %6 : vector<2x1xf32> to vector<2x32xf32>
    %15 = arith.subf %0, %14 : vector<2x32xf32>
    %cst_8 = arith.constant 9.99999974E-6 : f32
    %16 = vector.broadcast %cst_8 : f32 to vector<2x1xf32>
    %17 = arith.addf %13, %16 : vector<2x1xf32>
    %18 = math.rsqrt %17 : vector<2x1xf32>
    %19 = vector.broadcast %18 : vector<2x1xf32> to vector<2x32xf32>
    %20 = arith.mulf %15, %19 : vector<2x32xf32>
    %21 = vector.broadcast %1 : vector<1x32xf32> to vector<2x32xf32>
    %22 = arith.mulf %20, %21 : vector<2x32xf32>
    %23 = vector.broadcast %2 : vector<1x32xf32> to vector<2x32xf32>
    %24 = arith.addf %22, %23 : vector<2x32xf32>
    %25 = arith.truncf %24 : vector<2x32xf32> to vector<2x32xbf16>
    %c0_9 = arith.constant 0 : index
    %c0_10 = arith.constant 0 : index
    %26 = vector.load %arg4[%c0_9, %c0_10] : memref<32x16xbf16, #tpu.memory_space<vmem>>, vector<32x16xbf16>
    %cst_11 = arith.constant dense<0.000000e+00> : vector<2x16xf32>
    %27 = tpu.matmul %25, %26, %cst_11 {dimension_numbers = #tpu.dot_dimension_numbers<[1], [0], [0], [1], [0, 0, 1, 1], [], []>} : vector<2x32xbf16>, vector<32x16xbf16>, vector<2x16xf32> -> vector<2x16xf32>
    %28 = arith.mulf %27, %27 : vector<2x16xf32>
    %cst_12 = arith.constant dense<0.000000e+00> : vector<2xf32>
    %29 = vector.multi_reduction <add>, %28, %cst_12 [1] : vector<2x16xf32> to vector<2xf32>
    %30 = vector.shape_cast %29 : vector<2xf32> to vector<2x1xf32>
    %cst_13 = arith.constant 9.99999996E-13 : f32
    %31 = vector.broadcast %cst_13 : f32 to vector<2x1xf32>
    %32 = arith.addf %30, %31 : vector<2x1xf32>
    %33 = math.rsqrt %32 : vector<2x1xf32>
    %34 = vector.broadcast %33 : vector<2x1xf32> to vector<2x16xf32>
    %35 = arith.mulf %27, %34 : vector<2x16xf32>
    %c0_14 = arith.constant 0 : index
    %c0_15 = arith.constant 0 : index
    %36 = vector.load %arg5[%c0_14, %c0_15] : memref<2x16xf32, #tpu.memory_space<vmem>>, vector<2x16xf32>
    tpu.vector_store %arg5[%c0_14, %c0_15], %35 {strides = array<i32>} : memref<2x16xf32, #tpu.memory_space<vmem>>, vector<2x16xf32>,
    return
  }
  func.func @transform_0(%arg0: i32) -> (i32, i32) {
    %c0_i32 = arith.constant 0 : i32
    %c0_i32_0 = arith.constant 0 : i32
    return %arg0, %c0_i32 : i32, i32
  }
  func.func @transform_1(%arg0: i32) -> (i32, i32) {
    %c0_i32 = arith.constant 0 : i32
    %c0_i32_0 = arith.constant 0 : i32
    %c0_i32_1 = arith.constant 0 : i32
    return %c0_i32, %c0_i32_0 : i32, i32
  }
  func.func @transform_2(%arg0: i32) -> (i32, i32) {
    %c0_i32 = arith.constant 0 : i32
    %c0_i32_0 = arith.constant 0 : i32
    %c0_i32_1 = arith.constant 0 : i32
    return %c0_i32, %c0_i32_0 : i32, i32
  }
  func.func @transform_3(%arg0: i32) -> (i32, i32) {
    %c0_i32 = arith.constant 0 : i32
    %c0_i32_0 = arith.constant 0 : i32
    %c0_i32_1 = arith.constant 0 : i32
    return %c0_i32, %c0_i32_0 : i32, i32
  }
  func.func @transform_4(%arg0: i32) -> (i32, i32) {
    %c0_i32 = arith.constant 0 : i32
    %c0_i32_0 = arith.constant 0 : i32
    return %arg0, %c0_i32 : i32, i32
  }
}

module attributes {stable_mosaic.version = 11 : i64} {
  func.func @_linear_residual_kernel(%arg0: i32, %arg1: i32, %arg2: memref<10x32xf32, #tpu.memory_space<vmem>>, %arg3: memref<32x32xbf16, #tpu.memory_space<vmem>>, %arg4: memref<1x32xf32, #tpu.memory_space<vmem>>, %arg5: memref<10x32xf32, #tpu.memory_space<vmem>>, %arg6: memref<10x32xf32, #tpu.memory_space<vmem>>) attributes {dimension_semantics = [#tpu.dimension_semantics<parallel>, #tpu.dimension_semantics<parallel>], iteration_bounds = array<i64: 1, 1>, scalar_prefetch = 0 : i64, scratch_operands = 0 : i64, tpu.core_type = #tpu.core_type<tc>, window_params = [{transform_indices = @transform_0, window_bounds = array<i64: 10, 32>}, {transform_indices = @transform_1, window_bounds = array<i64: 32, 32>}, {transform_indices = @transform_2, window_bounds = array<i64: 1, 32>}, {transform_indices = @transform_3, window_bounds = array<i64: 10, 32>}, {transform_indices = @transform_4, window_bounds = array<i64: 10, 32>}]} {
    %c0 = arith.constant 0 : index
    %c0_0 = arith.constant 0 : index
    %0 = vector.load %arg5[%c0, %c0_0] : memref<10x32xf32, #tpu.memory_space<vmem>>, vector<10x32xf32>
    %c0_1 = arith.constant 0 : index
    %c0_2 = arith.constant 0 : index
    %1 = vector.load %arg2[%c0_1, %c0_2] : memref<10x32xf32, #tpu.memory_space<vmem>>, vector<10x32xf32>
    %2 = arith.truncf %1 : vector<10x32xf32> to vector<10x32xbf16>
    %c0_3 = arith.constant 0 : index
    %c0_4 = arith.constant 0 : index
    %3 = vector.load %arg3[%c0_3, %c0_4] : memref<32x32xbf16, #tpu.memory_space<vmem>>, vector<32x32xbf16>
    %cst = arith.constant dense<0.000000e+00> : vector<10x32xf32>
    %4 = tpu.matmul %2, %3, %cst {dimension_numbers = #tpu.dot_dimension_numbers<[1], [0], [0], [1], [0, 0, 1, 1], [], []>} : vector<10x32xbf16>, vector<32x32xbf16>, vector<10x32xf32> -> vector<10x32xf32>
    %5 = arith.addf %0, %4 : vector<10x32xf32>
    %c0_5 = arith.constant 0 : index
    %c0_6 = arith.constant 0 : index
    %6 = vector.load %arg4[%c0_5, %c0_6] : memref<1x32xf32, #tpu.memory_space<vmem>>, vector<1x32xf32>
    %7 = vector.broadcast %6 : vector<1x32xf32> to vector<10x32xf32>
    %8 = arith.addf %5, %7 : vector<10x32xf32>
    %c0_7 = arith.constant 0 : index
    %c0_8 = arith.constant 0 : index
    %9 = vector.load %arg6[%c0_7, %c0_8] : memref<10x32xf32, #tpu.memory_space<vmem>>, vector<10x32xf32>
    tpu.vector_store %arg6[%c0_7, %c0_8], %8 {strides = array<i32>} : memref<10x32xf32, #tpu.memory_space<vmem>>, vector<10x32xf32>,
    return
  }
  func.func @transform_0(%arg0: i32, %arg1: i32) -> (i32, i32) {
    %c0_i32 = arith.constant 0 : i32
    %c0_i32_0 = arith.constant 0 : i32
    return %arg0, %c0_i32 : i32, i32
  }
  func.func @transform_1(%arg0: i32, %arg1: i32) -> (i32, i32) {
    %c0_i32 = arith.constant 0 : i32
    %c0_i32_0 = arith.constant 0 : i32
    return %c0_i32, %arg1 : i32, i32
  }
  func.func @transform_2(%arg0: i32, %arg1: i32) -> (i32, i32) {
    %c0_i32 = arith.constant 0 : i32
    %c0_i32_0 = arith.constant 0 : i32
    return %c0_i32, %arg1 : i32, i32
  }
  func.func @transform_3(%arg0: i32, %arg1: i32) -> (i32, i32) {
    %c0_i32 = arith.constant 0 : i32
    return %arg0, %arg1 : i32, i32
  }
  func.func @transform_4(%arg0: i32, %arg1: i32) -> (i32, i32) {
    %c0_i32 = arith.constant 0 : i32
    return %arg0, %arg1 : i32, i32
  }
}

module attributes {stable_mosaic.version = 11 : i64} {
  func.func @_ln_linear_kernel(%arg0: i32, %arg1: i32, %arg2: memref<16x32xf32, #tpu.memory_space<vmem>>, %arg3: memref<1x32xf32, #tpu.memory_space<vmem>>, %arg4: memref<1x32xf32, #tpu.memory_space<vmem>>, %arg5: memref<32x96xbf16, #tpu.memory_space<vmem>>, %arg6: memref<1x96xf32, #tpu.memory_space<vmem>>, %arg7: memref<16x96xf32, #tpu.memory_space<vmem>>) attributes {dimension_semantics = [#tpu.dimension_semantics<parallel>, #tpu.dimension_semantics<parallel>], iteration_bounds = array<i64: 1, 1>, scalar_prefetch = 0 : i64, scratch_operands = 0 : i64, tpu.core_type = #tpu.core_type<tc>, window_params = [{transform_indices = @transform_0, window_bounds = array<i64: 16, 32>}, {pipeline_mode = #tpu.pipeline_mode<synchronous>, transform_indices = @transform_1, window_bounds = array<i64: 1, 32>}, {pipeline_mode = #tpu.pipeline_mode<synchronous>, transform_indices = @transform_2, window_bounds = array<i64: 1, 32>}, {transform_indices = @transform_3, window_bounds = array<i64: 32, 96>}, {transform_indices = @transform_4, window_bounds = array<i64: 1, 96>}, {transform_indices = @transform_5, window_bounds = array<i64: 16, 96>}]} {
    %c0 = arith.constant 0 : index
    %c0_0 = arith.constant 0 : index
    %0 = vector.load %arg2[%c0, %c0_0] : memref<16x32xf32, #tpu.memory_space<vmem>>, vector<16x32xf32>
    %c0_1 = arith.constant 0 : index
    %c0_2 = arith.constant 0 : index
    %1 = vector.load %arg3[%c0_1, %c0_2] : memref<1x32xf32, #tpu.memory_space<vmem>>, vector<1x32xf32>
    %c0_3 = arith.constant 0 : index
    %c0_4 = arith.constant 0 : index
    %2 = vector.load %arg4[%c0_3, %c0_4] : memref<1x32xf32, #tpu.memory_space<vmem>>, vector<1x32xf32>
    %cst = arith.constant dense<0.000000e+00> : vector<16xf32>
    %3 = vector.multi_reduction <add>, %0, %cst [1] : vector<16x32xf32> to vector<16xf32>
    %4 = vector.shape_cast %3 : vector<16xf32> to vector<16x1xf32>
    %cst_5 = arith.constant 3.200000e+01 : f32
    %5 = vector.broadcast %cst_5 : f32 to vector<16x1xf32>
    %6 = arith.divf %4, %5 : vector<16x1xf32>
    %7 = vector.broadcast %6 : vector<16x1xf32> to vector<16x32xf32>
    %8 = arith.subf %0, %7 : vector<16x32xf32>
    %9 = arith.mulf %8, %8 : vector<16x32xf32>
    %cst_6 = arith.constant dense<0.000000e+00> : vector<16xf32>
    %10 = vector.multi_reduction <add>, %9, %cst_6 [1] : vector<16x32xf32> to vector<16xf32>
    %11 = vector.shape_cast %10 : vector<16xf32> to vector<16x1xf32>
    %cst_7 = arith.constant 3.200000e+01 : f32
    %12 = vector.broadcast %cst_7 : f32 to vector<16x1xf32>
    %13 = arith.divf %11, %12 : vector<16x1xf32>
    %14 = vector.broadcast %6 : vector<16x1xf32> to vector<16x32xf32>
    %15 = arith.subf %0, %14 : vector<16x32xf32>
    %cst_8 = arith.constant 9.99999974E-6 : f32
    %16 = vector.broadcast %cst_8 : f32 to vector<16x1xf32>
    %17 = arith.addf %13, %16 : vector<16x1xf32>
    %18 = math.rsqrt %17 : vector<16x1xf32>
    %19 = vector.broadcast %18 : vector<16x1xf32> to vector<16x32xf32>
    %20 = arith.mulf %15, %19 : vector<16x32xf32>
    %21 = vector.broadcast %1 : vector<1x32xf32> to vector<16x32xf32>
    %22 = arith.mulf %20, %21 : vector<16x32xf32>
    %23 = vector.broadcast %2 : vector<1x32xf32> to vector<16x32xf32>
    %24 = arith.addf %22, %23 : vector<16x32xf32>
    %25 = arith.truncf %24 : vector<16x32xf32> to vector<16x32xbf16>
    %c0_9 = arith.constant 0 : index
    %c0_10 = arith.constant 0 : index
    %26 = vector.load %arg5[%c0_9, %c0_10] : memref<32x96xbf16, #tpu.memory_space<vmem>>, vector<32x96xbf16>
    %cst_11 = arith.constant dense<0.000000e+00> : vector<16x96xf32>
    %27 = tpu.matmul %25, %26, %cst_11 {dimension_numbers = #tpu.dot_dimension_numbers<[1], [0], [0], [1], [0, 0, 1, 1], [], []>} : vector<16x32xbf16>, vector<32x96xbf16>, vector<16x96xf32> -> vector<16x96xf32>
    %c0_12 = arith.constant 0 : index
    %c0_13 = arith.constant 0 : index
    %28 = vector.load %arg6[%c0_12, %c0_13] : memref<1x96xf32, #tpu.memory_space<vmem>>, vector<1x96xf32>
    %29 = vector.broadcast %28 : vector<1x96xf32> to vector<16x96xf32>
    %30 = arith.addf %27, %29 : vector<16x96xf32>
    %c0_14 = arith.constant 0 : index
    %c0_15 = arith.constant 0 : index
    %31 = vector.load %arg7[%c0_14, %c0_15] : memref<16x96xf32, #tpu.memory_space<vmem>>, vector<16x96xf32>
    tpu.vector_store %arg7[%c0_14, %c0_15], %30 {strides = array<i32>} : memref<16x96xf32, #tpu.memory_space<vmem>>, vector<16x96xf32>,
    return
  }
  func.func @transform_0(%arg0: i32, %arg1: i32) -> (i32, i32) {
    %c0_i32 = arith.constant 0 : i32
    %c0_i32_0 = arith.constant 0 : i32
    return %arg0, %c0_i32 : i32, i32
  }
  func.func @transform_1(%arg0: i32, %arg1: i32) -> (i32, i32) {
    %c0_i32 = arith.constant 0 : i32
    %c0_i32_0 = arith.constant 0 : i32
    %c0_i32_1 = arith.constant 0 : i32
    return %c0_i32, %c0_i32_0 : i32, i32
  }
  func.func @transform_2(%arg0: i32, %arg1: i32) -> (i32, i32) {
    %c0_i32 = arith.constant 0 : i32
    %c0_i32_0 = arith.constant 0 : i32
    %c0_i32_1 = arith.constant 0 : i32
    return %c0_i32, %c0_i32_0 : i32, i32
  }
  func.func @transform_3(%arg0: i32, %arg1: i32) -> (i32, i32) {
    %c0_i32 = arith.constant 0 : i32
    %c0_i32_0 = arith.constant 0 : i32
    return %c0_i32, %arg1 : i32, i32
  }
  func.func @transform_4(%arg0: i32, %arg1: i32) -> (i32, i32) {
    %c0_i32 = arith.constant 0 : i32
    %c0_i32_0 = arith.constant 0 : i32
    return %c0_i32, %arg1 : i32, i32
  }
  func.func @transform_5(%arg0: i32, %arg1: i32) -> (i32, i32) {
    %c0_i32 = arith.constant 0 : i32
    return %arg0, %arg1 : i32, i32
  }
}

module attributes {stable_mosaic.version = 11 : i64} {
  func.func @_linear_residual_kernel(%arg0: i32, %arg1: i32, %arg2: memref<16x32xf32, #tpu.memory_space<vmem>>, %arg3: memref<32x32xbf16, #tpu.memory_space<vmem>>, %arg4: memref<1x32xf32, #tpu.memory_space<vmem>>, %arg5: memref<16x32xf32, #tpu.memory_space<vmem>>, %arg6: memref<16x32xf32, #tpu.memory_space<vmem>>) attributes {dimension_semantics = [#tpu.dimension_semantics<parallel>, #tpu.dimension_semantics<parallel>], iteration_bounds = array<i64: 1, 1>, scalar_prefetch = 0 : i64, scratch_operands = 0 : i64, tpu.core_type = #tpu.core_type<tc>, window_params = [{transform_indices = @transform_0, window_bounds = array<i64: 16, 32>}, {transform_indices = @transform_1, window_bounds = array<i64: 32, 32>}, {transform_indices = @transform_2, window_bounds = array<i64: 1, 32>}, {transform_indices = @transform_3, window_bounds = array<i64: 16, 32>}, {transform_indices = @transform_4, window_bounds = array<i64: 16, 32>}]} {
    %c0 = arith.constant 0 : index
    %c0_0 = arith.constant 0 : index
    %0 = vector.load %arg5[%c0, %c0_0] : memref<16x32xf32, #tpu.memory_space<vmem>>, vector<16x32xf32>
    %c0_1 = arith.constant 0 : index
    %c0_2 = arith.constant 0 : index
    %1 = vector.load %arg2[%c0_1, %c0_2] : memref<16x32xf32, #tpu.memory_space<vmem>>, vector<16x32xf32>
    %2 = arith.truncf %1 : vector<16x32xf32> to vector<16x32xbf16>
    %c0_3 = arith.constant 0 : index
    %c0_4 = arith.constant 0 : index
    %3 = vector.load %arg3[%c0_3, %c0_4] : memref<32x32xbf16, #tpu.memory_space<vmem>>, vector<32x32xbf16>
    %cst = arith.constant dense<0.000000e+00> : vector<16x32xf32>
    %4 = tpu.matmul %2, %3, %cst {dimension_numbers = #tpu.dot_dimension_numbers<[1], [0], [0], [1], [0, 0, 1, 1], [], []>} : vector<16x32xbf16>, vector<32x32xbf16>, vector<16x32xf32> -> vector<16x32xf32>
    %5 = arith.addf %0, %4 : vector<16x32xf32>
    %c0_5 = arith.constant 0 : index
    %c0_6 = arith.constant 0 : index
    %6 = vector.load %arg4[%c0_5, %c0_6] : memref<1x32xf32, #tpu.memory_space<vmem>>, vector<1x32xf32>
    %7 = vector.broadcast %6 : vector<1x32xf32> to vector<16x32xf32>
    %8 = arith.addf %5, %7 : vector<16x32xf32>
    %c0_7 = arith.constant 0 : index
    %c0_8 = arith.constant 0 : index
    %9 = vector.load %arg6[%c0_7, %c0_8] : memref<16x32xf32, #tpu.memory_space<vmem>>, vector<16x32xf32>
    tpu.vector_store %arg6[%c0_7, %c0_8], %8 {strides = array<i32>} : memref<16x32xf32, #tpu.memory_space<vmem>>, vector<16x32xf32>,
    return
  }
  func.func @transform_0(%arg0: i32, %arg1: i32) -> (i32, i32) {
    %c0_i32 = arith.constant 0 : i32
    %c0_i32_0 = arith.constant 0 : i32
    return %arg0, %c0_i32 : i32, i32
  }
  func.func @transform_1(%arg0: i32, %arg1: i32) -> (i32, i32) {
    %c0_i32 = arith.constant 0 : i32
    %c0_i32_0 = arith.constant 0 : i32
    return %c0_i32, %arg1 : i32, i32
  }
  func.func @transform_2(%arg0: i32, %arg1: i32) -> (i32, i32) {
    %c0_i32 = arith.constant 0 : i32
    %c0_i32_0 = arith.constant 0 : i32
    return %c0_i32, %arg1 : i32, i32
  }
  func.func @transform_3(%arg0: i32, %arg1: i32) -> (i32, i32) {
    %c0_i32 = arith.constant 0 : i32
    return %arg0, %arg1 : i32, i32
  }
  func.func @transform_4(%arg0: i32, %arg1: i32) -> (i32, i32) {
    %c0_i32 = arith.constant 0 : i32
    return %arg0, %arg1 : i32, i32
  }
}

module attributes {stable_mosaic.version = 11 : i64} {
  func.func @_attention_kernel(%arg0: i32, %arg1: memref<1x8x96xf32, #tpu.memory_space<vmem>>, %arg2: memref<1x8x32xf32, #tpu.memory_space<vmem>>) attributes {dimension_semantics = [#tpu.dimension_semantics<parallel>], iteration_bounds = array<i64: 2>, scalar_prefetch = 0 : i64, scratch_operands = 0 : i64, tpu.core_type = #tpu.core_type<tc>, window_params = [{transform_indices = @transform_0, window_bounds = array<i64: 1, 8, 96>}, {transform_indices = @transform_1, window_bounds = array<i64: 1, 8, 32>}]} {
    %0 = tpu.iota {dimensions = array<i32: 0>} : vector<8x8xi32>
    %1 = tpu.iota {dimensions = array<i32: 1>} : vector<8x8xi32>
    %2 = arith.cmpi sgt, %1, %0 : vector<8x8xi32>
    %cst = arith.constant -1.000000e+09 : f32
    %cst_0 = arith.constant 0.000000e+00 : f32
    %3 = vector.broadcast %cst : f32 to vector<8x8xf32>
    %4 = vector.broadcast %cst_0 : f32 to vector<8x8xf32>
    %5 = arith.select %2, %3, %4 : vector<8x8xi1>, vector<8x8xf32>
    %c0 = arith.constant 0 : index
    %c0_1 = arith.constant 0 : index
    %c0_2 = arith.constant 0 : index
    %6 = vector.load %arg1[%c0, %c0_1, %c0_2] : memref<1x8x96xf32, #tpu.memory_space<vmem>>, vector<1x8x32xf32>
    %7 = vector.shape_cast %6 : vector<1x8x32xf32> to vector<8x32xf32>
    %8 = arith.truncf %7 : vector<8x32xf32> to vector<8x32xbf16>
    %c0_3 = arith.constant 0 : index
    %c0_4 = arith.constant 0 : index
    %c32 = arith.constant 32 : index
    %9 = vector.load %arg1[%c0_3, %c0_4, %c32] : memref<1x8x96xf32, #tpu.memory_space<vmem>>, vector<1x8x32xf32>
    %10 = vector.shape_cast %9 : vector<1x8x32xf32> to vector<8x32xf32>
    %11 = arith.truncf %10 : vector<8x32xf32> to vector<8x32xbf16>
    %c0_5 = arith.constant 0 : index
    %c0_6 = arith.constant 0 : index
    %c64 = arith.constant 64 : index
    %12 = vector.load %arg1[%c0_5, %c0_6, %c64] : memref<1x8x96xf32, #tpu.memory_space<vmem>>, vector<1x8x32xf32>
    %13 = vector.shape_cast %12 : vector<1x8x32xf32> to vector<8x32xf32>
    %14 = arith.truncf %13 : vector<8x32xf32> to vector<8x32xbf16>
    %15 = vector.extract_strided_slice %8 {offsets = [0, 0], sizes = [8, 8], strides = [1, 1]} : vector<8x32xbf16> to vector<8x8xbf16>
    %16 = vector.extract_strided_slice %11 {offsets = [0, 0], sizes = [8, 8], strides = [1, 1]} : vector<8x32xbf16> to vector<8x8xbf16>
    %17 = vector.extract_strided_slice %14 {offsets = [0, 0], sizes = [8, 8], strides = [1, 1]} : vector<8x32xbf16> to vector<8x8xbf16>
    %cst_7 = arith.constant dense<0.000000e+00> : vector<8x8xf32>
    %18 = tpu.matmul %15, %16, %cst_7 {dimension_numbers = #tpu.dot_dimension_numbers<[1], [1], [0], [0], [0, 0, 1, 0], [], []>} : vector<8x8xbf16>, vector<8x8xbf16>, vector<8x8xf32> -> vector<8x8xf32>
    %cst_8 = arith.constant 0.353553385 : f32
    %19 = vector.broadcast %cst_8 : f32 to vector<8x8xf32>
    %20 = arith.mulf %18, %19 : vector<8x8xf32>
    %21 = arith.addf %20, %5 : vector<8x8xf32>
    %cst_9 = arith.constant dense<0xFF800000> : vector<8xf32>
    %22 = vector.multi_reduction <maximumf>, %21, %cst_9 [1] : vector<8x8xf32> to vector<8xf32>
    %23 = vector.shape_cast %22 : vector<8xf32> to vector<8x1xf32>
    %24 = vector.broadcast %23 : vector<8x1xf32> to vector<8x8xf32>
    %25 = arith.subf %21, %24 : vector<8x8xf32>
    %26 = math.exp %25 : vector<8x8xf32>
    %cst_10 = arith.constant dense<0.000000e+00> : vector<8xf32>
    %27 = vector.multi_reduction <add>, %26, %cst_10 [1] : vector<8x8xf32> to vector<8xf32>
    %28 = vector.shape_cast %27 : vector<8xf32> to vector<8x1xf32>
    %29 = tpu.reciprocal %28 {approx = true} : vector<8x1xf32> -> vector<8x1xf32>
    %30 = vector.broadcast %29 : vector<8x1xf32> to vector<8x8xf32>
    %31 = arith.mulf %26, %30 : vector<8x8xf32>
    %32 = arith.truncf %31 : vector<8x8xf32> to vector<8x8xbf16>
    %cst_11 = arith.constant dense<0.000000e+00> : vector<8x8xf32>
    %33 = tpu.matmul %32, %17, %cst_11 {dimension_numbers = #tpu.dot_dimension_numbers<[1], [0], [0], [1], [0, 0, 1, 1], [], []>} : vector<8x8xbf16>, vector<8x8xbf16>, vector<8x8xf32> -> vector<8x8xf32>
    %34 = vector.extract_strided_slice %8 {offsets = [0, 8], sizes = [8, 8], strides = [1, 1]} : vector<8x32xbf16> to vector<8x8xbf16>
    %35 = vector.extract_strided_slice %11 {offsets = [0, 8], sizes = [8, 8], strides = [1, 1]} : vector<8x32xbf16> to vector<8x8xbf16>
    %36 = vector.extract_strided_slice %14 {offsets = [0, 8], sizes = [8, 8], strides = [1, 1]} : vector<8x32xbf16> to vector<8x8xbf16>
    %cst_12 = arith.constant dense<0.000000e+00> : vector<8x8xf32>
    %37 = tpu.matmul %34, %35, %cst_12 {dimension_numbers = #tpu.dot_dimension_numbers<[1], [1], [0], [0], [0, 0, 1, 0], [], []>} : vector<8x8xbf16>, vector<8x8xbf16>, vector<8x8xf32> -> vector<8x8xf32>
    %cst_13 = arith.constant 0.353553385 : f32
    %38 = vector.broadcast %cst_13 : f32 to vector<8x8xf32>
    %39 = arith.mulf %37, %38 : vector<8x8xf32>
    %40 = arith.addf %39, %5 : vector<8x8xf32>
    %cst_14 = arith.constant dense<0xFF800000> : vector<8xf32>
    %41 = vector.multi_reduction <maximumf>, %40, %cst_14 [1] : vector<8x8xf32> to vector<8xf32>
    %42 = vector.shape_cast %41 : vector<8xf32> to vector<8x1xf32>
    %43 = vector.broadcast %42 : vector<8x1xf32> to vector<8x8xf32>
    %44 = arith.subf %40, %43 : vector<8x8xf32>
    %45 = math.exp %44 : vector<8x8xf32>
    %cst_15 = arith.constant dense<0.000000e+00> : vector<8xf32>
    %46 = vector.multi_reduction <add>, %45, %cst_15 [1] : vector<8x8xf32> to vector<8xf32>
    %47 = vector.shape_cast %46 : vector<8xf32> to vector<8x1xf32>
    %48 = tpu.reciprocal %47 {approx = true} : vector<8x1xf32> -> vector<8x1xf32>
    %49 = vector.broadcast %48 : vector<8x1xf32> to vector<8x8xf32>
    %50 = arith.mulf %45, %49 : vector<8x8xf32>
    %51 = arith.truncf %50 : vector<8x8xf32> to vector<8x8xbf16>
    %cst_16 = arith.constant dense<0.000000e+00> : vector<8x8xf32>
    %52 = tpu.matmul %51, %36, %cst_16 {dimension_numbers = #tpu.dot_dimension_numbers<[1], [0], [0], [1], [0, 0, 1, 1], [], []>} : vector<8x8xbf16>, vector<8x8xbf16>, vector<8x8xf32> -> vector<8x8xf32>
    %53 = vector.extract_strided_slice %8 {offsets = [0, 16], sizes = [8, 8], strides = [1, 1]} : vector<8x32xbf16> to vector<8x8xbf16>
    %54 = vector.extract_strided_slice %11 {offsets = [0, 16], sizes = [8, 8], strides = [1, 1]} : vector<8x32xbf16> to vector<8x8xbf16>
    %55 = vector.extract_strided_slice %14 {offsets = [0, 16], sizes = [8, 8], strides = [1, 1]} : vector<8x32xbf16> to vector<8x8xbf16>
    %cst_17 = arith.constant dense<0.000000e+00> : vector<8x8xf32>
    %56 = tpu.matmul %53, %54, %cst_17 {dimension_numbers = #tpu.dot_dimension_numbers<[1], [1], [0], [0], [0, 0, 1, 0], [], []>} : vector<8x8xbf16>, vector<8x8xbf16>, vector<8x8xf32> -> vector<8x8xf32>
    %cst_18 = arith.constant 0.353553385 : f32
    %57 = vector.broadcast %cst_18 : f32 to vector<8x8xf32>
    %58 = arith.mulf %56, %57 : vector<8x8xf32>
    %59 = arith.addf %58, %5 : vector<8x8xf32>
    %cst_19 = arith.constant dense<0xFF800000> : vector<8xf32>
    %60 = vector.multi_reduction <maximumf>, %59, %cst_19 [1] : vector<8x8xf32> to vector<8xf32>
    %61 = vector.shape_cast %60 : vector<8xf32> to vector<8x1xf32>
    %62 = vector.broadcast %61 : vector<8x1xf32> to vector<8x8xf32>
    %63 = arith.subf %59, %62 : vector<8x8xf32>
    %64 = math.exp %63 : vector<8x8xf32>
    %cst_20 = arith.constant dense<0.000000e+00> : vector<8xf32>
    %65 = vector.multi_reduction <add>, %64, %cst_20 [1] : vector<8x8xf32> to vector<8xf32>
    %66 = vector.shape_cast %65 : vector<8xf32> to vector<8x1xf32>
    %67 = tpu.reciprocal %66 {approx = true} : vector<8x1xf32> -> vector<8x1xf32>
    %68 = vector.broadcast %67 : vector<8x1xf32> to vector<8x8xf32>
    %69 = arith.mulf %64, %68 : vector<8x8xf32>
    %70 = arith.truncf %69 : vector<8x8xf32> to vector<8x8xbf16>
    %cst_21 = arith.constant dense<0.000000e+00> : vector<8x8xf32>
    %71 = tpu.matmul %70, %55, %cst_21 {dimension_numbers = #tpu.dot_dimension_numbers<[1], [0], [0], [1], [0, 0, 1, 1], [], []>} : vector<8x8xbf16>, vector<8x8xbf16>, vector<8x8xf32> -> vector<8x8xf32>
    %72 = vector.extract_strided_slice %8 {offsets = [0, 24], sizes = [8, 8], strides = [1, 1]} : vector<8x32xbf16> to vector<8x8xbf16>
    %73 = vector.extract_strided_slice %11 {offsets = [0, 24], sizes = [8, 8], strides = [1, 1]} : vector<8x32xbf16> to vector<8x8xbf16>
    %74 = vector.extract_strided_slice %14 {offsets = [0, 24], sizes = [8, 8], strides = [1, 1]} : vector<8x32xbf16> to vector<8x8xbf16>
    %cst_22 = arith.constant dense<0.000000e+00> : vector<8x8xf32>
    %75 = tpu.matmul %72, %73, %cst_22 {dimension_numbers = #tpu.dot_dimension_numbers<[1], [1], [0], [0], [0, 0, 1, 0], [], []>} : vector<8x8xbf16>, vector<8x8xbf16>, vector<8x8xf32> -> vector<8x8xf32>
    %cst_23 = arith.constant 0.353553385 : f32
    %76 = vector.broadcast %cst_23 : f32 to vector<8x8xf32>
    %77 = arith.mulf %75, %76 : vector<8x8xf32>
    %78 = arith.addf %77, %5 : vector<8x8xf32>
    %cst_24 = arith.constant dense<0xFF800000> : vector<8xf32>
    %79 = vector.multi_reduction <maximumf>, %78, %cst_24 [1] : vector<8x8xf32> to vector<8xf32>
    %80 = vector.shape_cast %79 : vector<8xf32> to vector<8x1xf32>
    %81 = vector.broadcast %80 : vector<8x1xf32> to vector<8x8xf32>
    %82 = arith.subf %78, %81 : vector<8x8xf32>
    %83 = math.exp %82 : vector<8x8xf32>
    %cst_25 = arith.constant dense<0.000000e+00> : vector<8xf32>
    %84 = vector.multi_reduction <add>, %83, %cst_25 [1] : vector<8x8xf32> to vector<8xf32>
    %85 = vector.shape_cast %84 : vector<8xf32> to vector<8x1xf32>
    %86 = tpu.reciprocal %85 {approx = true} : vector<8x1xf32> -> vector<8x1xf32>
    %87 = vector.broadcast %86 : vector<8x1xf32> to vector<8x8xf32>
    %88 = arith.mulf %83, %87 : vector<8x8xf32>
    %89 = arith.truncf %88 : vector<8x8xf32> to vector<8x8xbf16>
    %cst_26 = arith.constant dense<0.000000e+00> : vector<8x8xf32>
    %90 = tpu.matmul %89, %74, %cst_26 {dimension_numbers = #tpu.dot_dimension_numbers<[1], [0], [0], [1], [0, 0, 1, 1], [], []>} : vector<8x8xbf16>, vector<8x8xbf16>, vector<8x8xf32> -> vector<8x8xf32>
    %91 = tpu.concatenate %33, %52, %71, %90 in 1 : vector<8x8xf32>, vector<8x8xf32>, vector<8x8xf32>, vector<8x8xf32> -> vector<8x32xf32>
    %c0_27 = arith.constant 0 : index
    %c0_28 = arith.constant 0 : index
    %c0_29 = arith.constant 0 : index
    %92 = vector.load %arg2[%c0_27, %c0_28, %c0_29] : memref<1x8x32xf32, #tpu.memory_space<vmem>>, vector<1x8x32xf32>
    %93 = vector.shape_cast %92 : vector<1x8x32xf32> to vector<8x32xf32>
    %94 = vector.shape_cast %91 : vector<8x32xf32> to vector<1x8x32xf32>
    tpu.vector_store %arg2[%c0_27, %c0_28, %c0_29], %94 {strides = array<i32>} : memref<1x8x32xf32, #tpu.memory_space<vmem>>, vector<1x8x32xf32>,
    return
  }
  func.func @transform_0(%arg0: i32) -> (i32, i32, i32) {
    %c0_i32 = arith.constant 0 : i32
    %c0_i32_0 = arith.constant 0 : i32
    %c0_i32_1 = arith.constant 0 : i32
    return %arg0, %c0_i32, %c0_i32_0 : i32, i32, i32
  }
  func.func @transform_1(%arg0: i32) -> (i32, i32, i32) {
    %c0_i32 = arith.constant 0 : i32
    %c0_i32_0 = arith.constant 0 : i32
    %c0_i32_1 = arith.constant 0 : i32
    return %arg0, %c0_i32, %c0_i32_0 : i32, i32, i32
  }
}

module attributes {stable_mosaic.version = 11 : i64} {
  func.func @_mlp_kernel(%arg0: i32, %arg1: i32, %arg2: memref<16x32xf32, #tpu.memory_space<vmem>>, %arg3: memref<1x32xf32, #tpu.memory_space<vmem>>, %arg4: memref<1x32xf32, #tpu.memory_space<vmem>>, %arg5: memref<32x128xbf16, #tpu.memory_space<vmem>>, %arg6: memref<1x128xf32, #tpu.memory_space<vmem>>, %arg7: memref<128x32xbf16, #tpu.memory_space<vmem>>, %arg8: memref<1x32xf32, #tpu.memory_space<vmem>>, %arg9: memref<16x32xf32, #tpu.memory_space<vmem>>, %arg10: memref<16x32xbf16, #tpu.memory_space<vmem>>, %arg11: memref<16x32xf32, #tpu.memory_space<vmem>>) attributes {dimension_semantics = [#tpu.dimension_semantics<parallel>, #tpu.dimension_semantics<arbitrary>], iteration_bounds = array<i64: 1, 1>, scalar_prefetch = 0 : i64, scratch_operands = 2 : i64, tpu.core_type = #tpu.core_type<tc>, window_params = [{transform_indices = @transform_0, window_bounds = array<i64: 16, 32>}, {pipeline_mode = #tpu.pipeline_mode<synchronous>, transform_indices = @transform_1, window_bounds = array<i64: 1, 32>}, {pipeline_mode = #tpu.pipeline_mode<synchronous>, transform_indices = @transform_2, window_bounds = array<i64: 1, 32>}, {transform_indices = @transform_3, window_bounds = array<i64: 32, 128>}, {transform_indices = @transform_4, window_bounds = array<i64: 1, 128>}, {transform_indices = @transform_5, window_bounds = array<i64: 128, 32>}, {pipeline_mode = #tpu.pipeline_mode<synchronous>, transform_indices = @transform_6, window_bounds = array<i64: 1, 32>}, {transform_indices = @transform_7, window_bounds = array<i64: 16, 32>}]} {
    %c0_i32 = arith.constant 0 : i32
    %0 = arith.cmpi eq, %arg1, %c0_i32 : i32
    %1 = arith.extui %0 : i1 to i32
    %c0_i32_0 = arith.constant 0 : i32
    %2 = arith.cmpi ne, %1, %c0_i32_0 : i32
    scf.if %2 {
      %c0_17 = arith.constant 0 : index
      %c0_18 = arith.constant 0 : index
      %26 = vector.load %arg2[%c0_17, %c0_18] : memref<16x32xf32, #tpu.memory_space<vmem>>, vector<16x32xf32>
      %c0_19 = arith.constant 0 : index
      %c0_20 = arith.constant 0 : index
      %27 = vector.load %arg3[%c0_19, %c0_20] : memref<1x32xf32, #tpu.memory_space<vmem>>, vector<1x32xf32>
      %c0_21 = arith.constant 0 : index
      %c0_22 = arith.constant 0 : index
      %28 = vector.load %arg4[%c0_21, %c0_22] : memref<1x32xf32, #tpu.memory_space<vmem>>, vector<1x32xf32>
      %cst_23 = arith.constant dense<0.000000e+00> : vector<16xf32>
      %29 = vector.multi_reduction <add>, %26, %cst_23 [1] : vector<16x32xf32> to vector<16xf32>
      %30 = vector.shape_cast %29 : vector<16xf32> to vector<16x1xf32>
      %cst_24 = arith.constant 3.200000e+01 : f32
      %31 = vector.broadcast %cst_24 : f32 to vector<16x1xf32>
      %32 = arith.divf %30, %31 : vector<16x1xf32>
      %33 = vector.broadcast %32 : vector<16x1xf32> to vector<16x32xf32>
      %34 = arith.subf %26, %33 : vector<16x32xf32>
      %35 = arith.mulf %34, %34 : vector<16x32xf32>
      %cst_25 = arith.constant dense<0.000000e+00> : vector<16xf32>
      %36 = vector.multi_reduction <add>, %35, %cst_25 [1] : vector<16x32xf32> to vector<16xf32>
      %37 = vector.shape_cast %36 : vector<16xf32> to vector<16x1xf32>
      %cst_26 = arith.constant 3.200000e+01 : f32
      %38 = vector.broadcast %cst_26 : f32 to vector<16x1xf32>
      %39 = arith.divf %37, %38 : vector<16x1xf32>
      %40 = vector.broadcast %32 : vector<16x1xf32> to vector<16x32xf32>
      %41 = arith.subf %26, %40 : vector<16x32xf32>
      %cst_27 = arith.constant 9.99999974E-6 : f32
      %42 = vector.broadcast %cst_27 : f32 to vector<16x1xf32>
      %43 = arith.addf %39, %42 : vector<16x1xf32>
      %44 = math.rsqrt %43 : vector<16x1xf32>
      %45 = vector.broadcast %44 : vector<16x1xf32> to vector<16x32xf32>
      %46 = arith.mulf %41, %45 : vector<16x32xf32>
      %47 = vector.broadcast %27 : vector<1x32xf32> to vector<16x32xf32>
      %48 = arith.mulf %46, %47 : vector<16x32xf32>
      %49 = vector.broadcast %28 : vector<1x32xf32> to vector<16x32xf32>
      %50 = arith.addf %48, %49 : vector<16x32xf32>
      %51 = arith.truncf %50 : vector<16x32xf32> to vector<16x32xbf16>
      %c0_28 = arith.constant 0 : index
      %c0_29 = arith.constant 0 : index
      %52 = vector.load %arg10[%c0_28, %c0_29] : memref<16x32xbf16, #tpu.memory_space<vmem>>, vector<16x32xbf16>
      tpu.vector_store %arg10[%c0_28, %c0_29], %51 {strides = array<i32>} : memref<16x32xbf16, #tpu.memory_space<vmem>>, vector<16x32xbf16>,
      %cst_30 = arith.constant 0.000000e+00 : f32
      %53 = vector.broadcast %cst_30 : f32 to vector<16x32xf32>
      %c0_31 = arith.constant 0 : index
      %c0_32 = arith.constant 0 : index
      %54 = vector.load %arg11[%c0_31, %c0_32] : memref<16x32xf32, #tpu.memory_space<vmem>>, vector<16x32xf32>
      tpu.vector_store %arg11[%c0_31, %c0_32], %53 {strides = array<i32>} : memref<16x32xf32, #tpu.memory_space<vmem>>, vector<16x32xf32>,
    } else {
    }
    %c0 = arith.constant 0 : index
    %c0_1 = arith.constant 0 : index
    %3 = vector.load %arg10[%c0, %c0_1] : memref<16x32xbf16, #tpu.memory_space<vmem>>, vector<16x32xbf16>
    %c0_2 = arith.constant 0 : index
    %c0_3 = arith.constant 0 : index
    %4 = vector.load %arg5[%c0_2, %c0_3] : memref<32x128xbf16, #tpu.memory_space<vmem>>, vector<32x128xbf16>
    %cst = arith.constant dense<0.000000e+00> : vector<16x128xf32>
    %5 = tpu.matmul %3, %4, %cst {dimension_numbers = #tpu.dot_dimension_numbers<[1], [0], [0], [1], [0, 0, 1, 1], [], []>} : vector<16x32xbf16>, vector<32x128xbf16>, vector<16x128xf32> -> vector<16x128xf32>
    %c0_4 = arith.constant 0 : index
    %c0_5 = arith.constant 0 : index
    %6 = vector.load %arg6[%c0_4, %c0_5] : memref<1x128xf32, #tpu.memory_space<vmem>>, vector<1x128xf32>
    %7 = vector.broadcast %6 : vector<1x128xf32> to vector<16x128xf32>
    %8 = arith.addf %5, %7 : vector<16x128xf32>
    %cst_6 = arith.constant 1.702000e+00 : f32
    %9 = vector.broadcast %cst_6 : f32 to vector<16x128xf32>
    %10 = arith.mulf %9, %8 : vector<16x128xf32>
    %11 = arith.negf %10 : vector<16x128xf32>
    %12 = math.exp %11 : vector<16x128xf32>
    %cst_7 = arith.constant 1.000000e+00 : f32
    %13 = vector.broadcast %cst_7 : f32 to vector<16x128xf32>
    %14 = arith.addf %13, %12 : vector<16x128xf32>
    %15 = arith.divf %13, %14 : vector<16x128xf32>
    %16 = arith.mulf %8, %15 : vector<16x128xf32>
    %c0_8 = arith.constant 0 : index
    %c0_9 = arith.constant 0 : index
    %17 = vector.load %arg11[%c0_8, %c0_9] : memref<16x32xf32, #tpu.memory_space<vmem>>, vector<16x32xf32>
    %18 = arith.truncf %16 : vector<16x128xf32> to vector<16x128xbf16>
    %c0_10 = arith.constant 0 : index
    %c0_11 = arith.constant 0 : index
    %19 = vector.load %arg7[%c0_10, %c0_11] : memref<128x32xbf16, #tpu.memory_space<vmem>>, vector<128x32xbf16>
    %cst_12 = arith.constant dense<0.000000e+00> : vector<16x32xf32>
    %20 = tpu.matmul %18, %19, %cst_12 {dimension_numbers = #tpu.dot_dimension_numbers<[1], [0], [0], [1], [0, 0, 1, 1], [], []>} : vector<16x128xbf16>, vector<128x32xbf16>, vector<16x32xf32> -> vector<16x32xf32>
    %21 = arith.addf %17, %20 : vector<16x32xf32>
    %c0_13 = arith.constant 0 : index
    %c0_14 = arith.constant 0 : index
    %22 = vector.load %arg11[%c0_13, %c0_14] : memref<16x32xf32, #tpu.memory_space<vmem>>, vector<16x32xf32>
    tpu.vector_store %arg11[%c0_13, %c0_14], %21 {strides = array<i32>} : memref<16x32xf32, #tpu.memory_space<vmem>>, vector<16x32xf32>,
    %c0_i32_15 = arith.constant 0 : i32
    %23 = arith.cmpi eq, %arg1, %c0_i32_15 : i32
    %24 = arith.extui %23 : i1 to i32
    %c0_i32_16 = arith.constant 0 : i32
    %25 = arith.cmpi ne, %24, %c0_i32_16 : i32
    scf.if %25 {
      %c0_17 = arith.constant 0 : index
      %c0_18 = arith.constant 0 : index
      %26 = vector.load %arg2[%c0_17, %c0_18] : memref<16x32xf32, #tpu.memory_space<vmem>>, vector<16x32xf32>
      %c0_19 = arith.constant 0 : index
      %c0_20 = arith.constant 0 : index
      %27 = vector.load %arg11[%c0_19, %c0_20] : memref<16x32xf32, #tpu.memory_space<vmem>>, vector<16x32xf32>
      %28 = arith.addf %26, %27 : vector<16x32xf32>
      %c0_21 = arith.constant 0 : index
      %c0_22 = arith.constant 0 : index
      %29 = vector.load %arg8[%c0_21, %c0_22] : memref<1x32xf32, #tpu.memory_space<vmem>>, vector<1x32xf32>
      %30 = vector.broadcast %29 : vector<1x32xf32> to vector<16x32xf32>
      %31 = arith.addf %28, %30 : vector<16x32xf32>
      %c0_23 = arith.constant 0 : index
      %c0_24 = arith.constant 0 : index
      %32 = vector.load %arg9[%c0_23, %c0_24] : memref<16x32xf32, #tpu.memory_space<vmem>>, vector<16x32xf32>
      tpu.vector_store %arg9[%c0_23, %c0_24], %31 {strides = array<i32>} : memref<16x32xf32, #tpu.memory_space<vmem>>, vector<16x32xf32>,
    } else {
    }
    return
  }
  func.func @transform_0(%arg0: i32, %arg1: i32) -> (i32, i32) {
    %c0_i32 = arith.constant 0 : i32
    %c0_i32_0 = arith.constant 0 : i32
    return %arg0, %c0_i32 : i32, i32
  }
  func.func @transform_1(%arg0: i32, %arg1: i32) -> (i32, i32) {
    %c0_i32 = arith.constant 0 : i32
    %c0_i32_0 = arith.constant 0 : i32
    %c0_i32_1 = arith.constant 0 : i32
    return %c0_i32, %c0_i32_0 : i32, i32
  }
  func.func @transform_2(%arg0: i32, %arg1: i32) -> (i32, i32) {
    %c0_i32 = arith.constant 0 : i32
    %c0_i32_0 = arith.constant 0 : i32
    %c0_i32_1 = arith.constant 0 : i32
    return %c0_i32, %c0_i32_0 : i32, i32
  }
  func.func @transform_3(%arg0: i32, %arg1: i32) -> (i32, i32) {
    %c0_i32 = arith.constant 0 : i32
    %c0_i32_0 = arith.constant 0 : i32
    return %c0_i32, %arg1 : i32, i32
  }
  func.func @transform_4(%arg0: i32, %arg1: i32) -> (i32, i32) {
    %c0_i32 = arith.constant 0 : i32
    %c0_i32_0 = arith.constant 0 : i32
    return %c0_i32, %arg1 : i32, i32
  }
  func.func @transform_5(%arg0: i32, %arg1: i32) -> (i32, i32) {
    %c0_i32 = arith.constant 0 : i32
    %c0_i32_0 = arith.constant 0 : i32
    return %arg1, %c0_i32 : i32, i32
  }
  func.func @transform_6(%arg0: i32, %arg1: i32) -> (i32, i32) {
    %c0_i32 = arith.constant 0 : i32
    %c0_i32_0 = arith.constant 0 : i32
    %c0_i32_1 = arith.constant 0 : i32
    return %c0_i32, %c0_i32_0 : i32, i32
  }
  func.func @transform_7(%arg0: i32, %arg1: i32) -> (i32, i32) {
    %c0_i32 = arith.constant 0 : i32
    %c0_i32_0 = arith.constant 0 : i32
    return %arg0, %c0_i32 : i32, i32
  }
}

</mosaic_0001>

<bundles_post_ra>
// kernel: clip_forward.21
= control target key start
LH: loop header
LB: loop body
LE: loop exit
PB: predicated region body
PF: predicated region fallthrough
CT: control target
= control target key end

     0   :  { %vm18_vm0 = vcmask 261120   ;;  %vm22_vm1 = vcmask 254976   ;;  %s119_s0 = inlined_call_operand.vmem [shape: f32[10,32], index: 0, kind: input, shape index: {}]   ;;  %s120_s1 = inlined_call_operand.vmem [shape: f32[1,32], index: 1, kind: input, shape index: {}]   ;;  %s121_s2 = inlined_call_operand.vmem [shape: f32[1,32], index: 2, kind: input, shape index: {}]   ;;  %s122_s3 = inlined_call_operand.vmem [shape: f32[10,32], index: 3, kind: output, shape index: {}]  }
   0x1   :  { %v14_v0 = vld [vmem:[%s119_s0] sm:$0xff]  ;;  %v15_v1 = vld [vmem:[%s119_s0 + $0x8] sm:$0x3] }
   0x2   :  { %v19_v2 = vsel %vm18_vm0, %v14_v0, 0.0  ;;  %v23_v3 = vsel %vm22_vm1, %v15_v1, 0.0  ;;  %v69_v21 = vld [vmem:[%s120_s1] ss:$0 sm:$0xff] }
   0x3   :  { %20 = vadd.xlane.f32.xlu0 %v19_v2  ;;  %v70_v23 = vld [vmem:[%s121_s2] ss:$0 sm:$0xff] }
   0x7   :  { %24 = vadd.xlane.f32.xlu0 %v23_v3 }
  0x90   :  { %v21_v4 = vpop.xlane.xlu0 %20 }
  0x91   :  { %v27_v5 = vmul.f32 0.03125, %v21_v4 }
  0x93   :  { %v29_v6 = vsub.f32 %v14_v0, %v27_v5 }
  0x94   :  { %v25_v7 = vpop.xlane.xlu0 %24 }
  0x95   :  { %v28_v8 = vmul.f32 0.03125, %v25_v7  ;;  %v31_v9 = vmul.f32 %v29_v6, %v29_v6 }
  0x97   :  { %v30_v10 = vsub.f32 %v15_v1, %v28_v8  ;;  %v33_v11 = vsel %vm18_vm0, %v31_v9, 0.0 }
  0x98   :  { %34 = vadd.xlane.f32.xlu1 %v33_v11 }
  0x99   :  { %v32_v12 = vmul.f32 %v30_v10, %v30_v10 }
  0x9b   :  { %v36_v13 = vsel %vm22_vm1, %v32_v12, 0.0 }
  0x9c   :  { %37 = vadd.xlane.f32.xlu1 %v36_v13 }
 0x125   :  { %v35_v14 = vpop.xlane.xlu1 %34 }
 0x126   :  { %v39_v15 = vmul.f32 0.03125, %v35_v14 }
 0x128   :  { %v41_v16 = vadd.f32 1e-05, %v39_v15 }
 0x129   :  { %v38_v17 = vpop.xlane.xlu1 %37 }
 0x12a   :  { %71 = vrsqrt.f32 %v41_v16  ;;  %v40_v18 = vmul.f32 0.03125, %v38_v17 }
 0x12c   :  { %v42_v19 = vadd.f32 1e-05, %v40_v18 }
 0x12e   :  { %73 = vrsqrt.f32 %v42_v19 }
 0x134   :  { %v72_v20 = vpop.eup %71 }
 0x135   :  { %v45_v22 = vmul.f32 %v72_v20, %v29_v6 }
 0x137   :  { %v53_v24 = vmul.f32 %v69_v21, %v45_v22 }
 0x138   :  { %v74_v25 = vpop.eup %73 }
 0x139   :  { %v61_v26 = vadd.f32 %v70_v23, %v53_v24  ;;  %v46_v27 = vmul.f32 %v74_v25, %v30_v10 }
 0x13b   :  { %63 = vst.msk [vmem:[%s122_s3] sm:$0xff] %vm18_vm0, %v61_v26  ;;  %v54_v28 = vmul.f32 %v69_v21, %v46_v27 }
 0x13d   :  { %v62_v29 = vadd.f32 %v70_v23, %v54_v28 }
 0x13f   :  { %64 = vst.msk [vmem:[%s122_s3 + $0x8] sm:$0x3] %vm22_vm1, %v62_v29 }

// kernel: clip_forward.22
= control target key start
LH: loop header
LB: loop body
LE: loop exit
PB: predicated region body
PF: predicated region fallthrough
CT: control target
= control target key end

     0   :  { %vm25_vm0 = vcmask 261120   ;;  %vm29_vm1 = vcmask 254976   ;;  %v171_v15 = vmov 0.0   ;;  %vm172_vm2 = vmmov 0   ;;  %s233_s0 = inlined_call_operand.vmem [shape: f32[10,32], index: 0, kind: input, shape index: {}]   ;;  %s234_s3 = inlined_call_operand.vmem [shape: bf16[32,96], index: 3, kind: input, shape index: {}]   ;;  %s235_s1 = inlined_call_operand.vmem [shape: f32[1,32], index: 1, kind: input, shape index: {}]   ;;  %s236_s2 = inlined_call_operand.vmem [shape: f32[1,32], index: 2, kind: input, shape index: {}]   ;;  %s237_s4 = inlined_call_operand.vmem [shape: f32[1,96], index: 4, kind: input, shape index: {}]   ;;  %s238_s5 = inlined_call_operand.vmem [shape: f32[10,96], index: 5, kind: output, shape index: {}]  }
   0x1   :  { %v21_v0 = vld [vmem:[%s233_s0] sm:$0xff]  ;;  %v22_v1 = vld [vmem:[%s233_s0 + $0x8] sm:$0x3]  ;;  %155 = vmatprep.subr.bf16.mxu0 %v171_v15  ;;  %159 = vmatprep.mubr.msk.bf16.mxu0 %vm172_vm2, %v171_v15  ;;  %vm138_vm3 = vcmask 785408   ;;  %vm140_vm4 = vcmask 779264  }
   0x2   :  { %v26_v2 = vsel %vm25_vm0, %v21_v0, 0.0  ;;  %v30_v3 = vsel %vm29_vm1, %v22_v1, 0.0  ;;  %v165_v14 = vld [vmem:[%s234_s3] sm:$0xff]   ;;  %v166_v16 = vld [vmem:[%s234_s3 + $0x8] sm:$0xff]  }
   0x3   :  { %27 = vadd.xlane.f32.xlu0 %v26_v2  ;;  %156 = vmatpush3.bf16.msra.mxu0 %v165_v14  ;;  %v146_v25 = vld [vmem:[%s235_s1] ss:$0 sm:$0xff] }
   0x4   :  { %157 = vmatprep.subr.bf16.mxu0 %v171_v15  ;;  %v147_v29 = vld [vmem:[%s236_s2] ss:$0 sm:$0xff] }
   0x5   :  { %v148_v34 = vld [vmem:[%s237_s4] ss:$0 sm:$0xff] }
   0x7   :  { %31 = vadd.xlane.f32.xlu0 %v30_v3  ;;  %158 = vmatpush3.bf16.msra.mxu0 %v166_v16 }
  0x90   :  { %v28_v4 = vpop.xlane.xlu0 %27 }
  0x91   :  { %v34_v5 = vmul.f32 0.03125, %v28_v4 }
  0x93   :  { %v36_v6 = vsub.f32 %v21_v0, %v34_v5 }
  0x94   :  { %v32_v7 = vpop.xlane.xlu0 %31 }
  0x95   :  { %v35_v8 = vmul.f32 0.03125, %v32_v7  ;;  %v38_v9 = vmul.f32 %v36_v6, %v36_v6 }
  0x97   :  { %v37_v10 = vsub.f32 %v22_v1, %v35_v8  ;;  %v40_v11 = vsel %vm25_vm0, %v38_v9, 0.0 }
  0x98   :  { %41 = vadd.xlane.f32.xlu1 %v40_v11 }
  0x99   :  { %v39_v12 = vmul.f32 %v37_v10, %v37_v10 }
  0x9b   :  { %v43_v13 = vsel %vm29_vm1, %v39_v12, 0.0 }
  0x9c   :  { %44 = vadd.xlane.f32.xlu1 %v43_v13 }
 0x125   :  { %v42_v17 = vpop.xlane.xlu1 %41 }
 0x126   :  { %v46_v18 = vmul.f32 0.03125, %v42_v17 }
 0x128   :  { %v48_v19 = vadd.f32 1e-05, %v46_v18 }
 0x129   :  { %v45_v20 = vpop.xlane.xlu1 %44 }
 0x12a   :  { %167 = vrsqrt.f32 %v48_v19  ;;  %v47_v21 = vmul.f32 0.03125, %v45_v20 }
 0x12c   :  { %v49_v22 = vadd.f32 1e-05, %v47_v21 }
 0x12e   :  { %169 = vrsqrt.f32 %v49_v22 }
 0x134   :  { %v168_v23 = vpop.eup %167 }
 0x135   :  { %v52_v24 = vmul.f32 %v168_v23, %v36_v6 }
 0x137   :  { %v60_v28 = vmul.f32 %v146_v25, %v52_v24 }
 0x138   :  { %v170_v26 = vpop.eup %169 }
 0x139   :  { %v53_v27 = vmul.f32 %v170_v26, %v37_v10  ;;  %v68_v31 = vadd.f32 %v147_v29, %v60_v28 }
 0x13b   :  { %v61_v30 = vmul.f32 %v146_v25, %v53_v27 }
 0x13d   :  { %v69_v32 = vadd.f32 %v147_v29, %v61_v30 }
 0x13f   :  { %v70_v33 = vpack.c.bf16 %v69_v32, %v68_v31 }
 0x141   :  { %160 = vmatmul.mubr.msk.bf16.vlgmr.msra.gmra.mrb[0].mxu0 %vm25_vm0, %v70_v33 }
 0x214   :  { %v131_v35 = vpop.f32.mrb[0].mxu0 }
 0x215   :  { %v132_v36 = vadd.f32 %v148_v34, %v131_v35  ;;  %v161_v37 = vpop.f32.mrb[1].mxu0 }
 0x216   :  { %v134_v38 = vpop.f32.mrb[2].mxu0 }
 0x217   :  { %139 = vst.msk [vmem:[%s238_s5] sm:$0xff] %vm138_vm3, %v132_v36  ;;  %v135_v39 = vadd.f32 %v148_v34, %v134_v38  ;;  %v162_v40 = vpop.f32.mrb[3].mxu0 }
 0x219   :  { %141 = vst.msk [vmem:[%s238_s5 + $0x8] sm:$0x3] %vm140_vm4, %v135_v39 }

// kernel: clip_forward.20
= control target key start
LH: loop header
LB: loop body
LE: loop exit
PB: predicated region body
PF: predicated region fallthrough
CT: control target
= control target key end

     0   :  { %v188_v0 = vmov 0   ;;  %vm112_vm0 = vcmask 523264   ;;  %vm156_vm1 = vcmask 261120   ;;  %s249_s1 = inlined_call_operand.vmem [shape: bf16[192,32], index: 1, kind: input, shape index: {}]   ;;  %s250_s0 = inlined_call_operand.vmem [shape: f32[8,192], index: 0, kind: input, shape index: {}]   ;;  %s251_s2 = inlined_call_operand.vmem [shape: f32[8,32], index: 2, kind: output, shape index: {}]  }
   0x1   :  { %116 = vmatprep.subr.bf16.mxu0 %v188_v0  ;;  %v176_v1 = vld [vmem:[%s249_s1] sm:$0xff]   ;;  %v177_v2 = vld [vmem:[%s249_s1 + $0x8] sm:$0xff]   ;;  %v178_v3 = vld [vmem:[%s249_s1 + $0x10] sm:$0xff]  }
   0x2   :  { %117 = vmatpush1.bf16.msra.mxu0 %v176_v1  ;;  %v179_v4 = vld [vmem:[%s249_s1 + $0x18] sm:$0xff]   ;;  %v13_v5 = vld [vmem:[%s250_s0 + $0x8] sm:$0xff]  ;;  %v180_v7 = vld [vmem:[%s249_s1 + $0x20] sm:$0xff]  }
   0x3   :  { %118 = vmatprep.subr.bf16.mxu0 %v188_v0  ;;  %v15_v6 = vpack.c.bf16 %v13_v5, %v13_v5  ;;  %v181_v8 = vld [vmem:[%s249_s1 + $0x28] sm:$0xff]   ;;  %v182_v9 = vld [vmem:[%s249_s1 + $0x30] sm:$0xff]   ;;  %v183_v10 = vld [vmem:[%s249_s1 + $0x38] sm:$0xff]  }
   0x4   :  { %v184_v11 = vld [vmem:[%s249_s1 + $0x40] sm:$0xff]   ;;  %v185_v12 = vld [vmem:[%s249_s1 + $0x48] sm:$0xff]   ;;  %v186_v13 = vld [vmem:[%s249_s1 + $0x50] sm:$0xff]  }
   0x5   :  { %174 = vmatprep.mubr.msk.bf16.mxu0 %vm112_vm0, %v15_v6  ;;  %v187_v14 = vld [vmem:[%s249_s1 + $0x58] sm:$0xff]   ;;  %v12_v15 = vld [vmem:[%s250_s0] sm:$0xff] }
   0x6   :  { %119 = vmatpush1.bf16.msra.mxu0 %v177_v2  ;;  %v14_v16 = vpack.c.bf16 %v12_v15, %v12_v15 }
   0x7   :  { %120 = vmatprep.subr.bf16.mxu0 %v188_v0 }
   0xa   :  { %121 = vmatpush1.bf16.msra.mxu0 %v178_v3 }
   0xb   :  { %122 = vmatprep.subr.bf16.mxu0 %v188_v0 }
   0xe   :  { %123 = vmatpush1.bf16.msra.mxu0 %v179_v4 }
   0xf   :  { %124 = vmatprep.subr.bf16.mxu0 %v188_v0 }
  0x12   :  { %125 = vmatpush1.bf16.msra.mxu0 %v180_v7 }
  0x13   :  { %126 = vmatprep.subr.bf16.mxu0 %v188_v0 }
  0x16   :  { %127 = vmatpush1.bf16.msra.mxu0 %v181_v8 }
  0x17   :  { %128 = vmatprep.subr.bf16.mxu0 %v188_v0 }
  0x1a   :  { %129 = vmatpush1.bf16.msra.mxu0 %v182_v9 }
  0x1b   :  { %130 = vmatprep.subr.bf16.mxu0 %v188_v0 }
  0x1e   :  { %131 = vmatpush1.bf16.msra.mxu0 %v183_v10 }
  0x1f   :  { %132 = vmatprep.subr.bf16.mxu0 %v188_v0 }
  0x22   :  { %133 = vmatpush1.bf16.msra.mxu0 %v184_v11 }
  0x23   :  { %134 = vmatprep.subr.bf16.mxu0 %v188_v0 }
  0x26   :  { %135 = vmatpush1.bf16.msra.mxu0 %v185_v12 }
  0x27   :  { %136 = vmatprep.subr.bf16.mxu0 %v188_v0 }
  0x2a   :  { %137 = vmatpush1.bf16.msra.mxu0 %v186_v13 }
  0x2b   :  { %138 = vmatprep.subr.bf16.mxu0 %v188_v0 }
  0x2e   :  { %139 = vmatpush1.bf16.msra.mxu0 %v187_v14 }
  0x31   :  { %149 = vmatmul.mubr.bf16.vlgmr.msra.gmra.mrb[0].mxu0 %v14_v16 }
 0x104   :  { %v150_v17 = vpop.f32.mrb[0].mxu0 }
 0x105   :  { %157 = vst.msk [vmem:[%s251_s2] sm:$0xff] %vm156_vm1, %v150_v17  ;;  %v152_v18 = vpop.f32.mrb[1].mxu0 }
 0x106   :  { %v153_v19 = vpop.f32.mrb[2].mxu0 }
 0x107   :  { %v154_v20 = vpop.f32.mrb[3].mxu0 }

// kernel: clip_forward.23
= control target key start
LH: loop header
LB: loop body
LE: loop exit
PB: predicated region body
PF: predicated region fallthrough
CT: control target
= control target key end

     0   :  { %s794_s6 = smov 0   ;;  %s886_s0 = inlined_call_operand.vmem [shape: f32[2,5,96], index: 0, kind: input, shape index: {}]   ;;  %s887_s1 = inlined_call_operand.vmem [shape: f32[2,5,32], index: 1, kind: output, shape index: {}]  }
   0x1 LB: > { %s637_s7 = sadd.s32 4294967295, %s765_s6   ;;  %p641_p0 = scmp.ge.s32.totalorder %s765_s6, 1  ;;  %s765_s6 = sphi %s794_s6, %s11_s6  }
   0x2   : > { %p86_p1 = scmp.lt.s32.totalorder %s765_s6, 3 }
   0x4   : > { %p87_p2 = pnand %p641_p0, %p86_p1 }
   0x5   : > { %p104_p3 = scmp.lt.s32.totalorder (!%p87_p2), %s637_s7, 1  ;;  %v767_v0 = vmov (!%p87_p2), 0.0   ;;  %vm768_vm0 = vmmov (!%p87_p2), 0   ;;  %s769_s12 = smov (!%p87_p2), 96   ;;  %vm118_vm1 = vcmask (!%p87_p2), 64512   ;;  %vm166_vm2 = vcmask (!%p87_p2), 36864  }
   0x6   : > { %90 = sbr.rel (%p87_p2) target bundleno = 1557 (0x615), region = 24  ;;  %670 = vmatprep.subr.bf16.mxu0 (!%p87_p2), %v767_v0  ;;  %672 = vmatprep.mubr.msk.bf16.mxu0 (!%p87_p2), %vm768_vm0, %v767_v0  ;;  %s770_s13 = smov (!%p87_p2), 64   ;;  %vm185_vm3 = vcmask (!%p87_p2), 1041408   ;;  %vm186_vm4 = vcmask (!%p87_p2), 1042432   ;;  %v773_v12 = vmov (!%p87_p2), 65535   ;;  %vm181_vm5 = vcmask (!%p87_p2), 39936  }
   0x7   : > { %676 = vmatprep.subr.bf16.mxu1 (!%p87_p2), %v767_v0  ;;  %678 = vmatprep.mubr.msk.bf16.mxu1 (!%p87_p2), %vm768_vm0, %v767_v0  ;;  %s771_s14 = smov (!%p87_p2), 88   ;;  %s772_s15 = smov (!%p87_p2), 72   ;;  %v187_v13 = vsel (!%p87_p2), %vm185_vm3, 4294967295, %v773_v12  ;;  %vm578_vm6 = vcmask (!%p87_p2), 130048   ;;  %vm580_vm7 = vcmask (!%p87_p2), 195584   ;;  %vm582_vm8 = vcmask (!%p87_p2), 258048  }
   0x8   : > { %v829_v14 = vsel (!%p87_p2), %vm186_vm4, %v187_v13, 0  ;;  %s774_s16 = smov (!%p87_p2), 120   ;;  %s775_s17 = smov (!%p87_p2), 80  }
   0x9   : > { %s776_s18 = smov (!%p87_p2), 112   ;;  %s777_s19 = smov (!%p87_p2), 104  }
   0xa   : > { %s778_s20 = smov (!%p87_p2), 56   ;;  %s779_s21 = smov (!%p87_p2), 40  }
   0xb   : > { %s780_s22 = smov (!%p87_p2), 48   ;;  %s781_s23 = smov (!%p87_p2), 8  }
   0xc   : > { %s782_s24 = smov (!%p87_p2), 16   ;;  %s783_s25 = smov (!%p87_p2), 24  }
   0xd   : > { %s889_s7 = smov (!%p104_p3, %s637_s7), 1 }
   0xe   : > { %s642_s8 = sshll.u32 %s889_s7, 3 }
   0xf   : > { %s107_s11 = scalar_lea.vmem %s886_s0, %s642_s8  ;;  %s111_s28 = scalar_lea.vmem %s887_s1, %s642_s8 }
  0x10   : > { %v113_v1 = vld [vmem:[%s107_s11] sm:$0x1f] }
  0x11   : > { %v816_v2 = vpack.c.bf16 %v113_v1, %v113_v1 }
  0x13   : > { %116 = vrot.lane.b32.xlu0 %v816_v2, %s769_s12  ;;  %179 = vrot.lane.b32.xlu1 %v816_v2, %s770_s13 }
  0x17   : > { %234 = vrot.lane.b32.xlu1 %v816_v2, %s771_s14 }
  0x85   : > { %v117_v3 = vpop.permute.xlu0 %116  ;;  %v180_v11 = vpop.permute.xlu1 %179 }
  0x86   : > { %v123_v4 = vsel %vm118_vm1, %v117_v3, 0  ;;  %v190_v15 = vand.u32 %v829_v14, %v180_v11 }
  0x87   : > { %671 = vmatpush3.bf16.xpose.msra.mxu0 %v123_v4 }
  0x88   : > { %688 = vmatprep.subr.bf16.mxu0 %v767_v0  ;;  %677 = vmatpush3.bf16.msra.mxu1 %v190_v15 }
  0x89   : > { %682 = vmatprep.subr.bf16.mxu1 %v767_v0  ;;  %v235_v21 = vpop.permute.xlu1 %234 }
  0x8a   : > { %v240_v27 = vsel %vm118_vm1, %v235_v21, 0 }
  0x8e   : > { %673 = vmatmul.mubr.msk.bf16.vlgmr.msra.gmra.mrb[0].mxu0 %vm118_vm1, %v816_v2 }
  0x8f   : > { %690 = vmatprep.mubr.msk.bf16.mxu0 %vm768_vm0, %v767_v0 }
 0x161   : > { %v159_v5 = vpop.f32.mrb[0].mxu0 }
 0x162   : > { %v165_v6 = vmul.f32 0.35355338, %v159_v5  ;;  %v674_v7 = vpop.f32.mrb[1].mxu0 }
 0x163   : > { %v162_v8 = vpop.f32.mrb[2].mxu0 }
 0x164   : > { %v675_v9 = vpop.f32.mrb[3].mxu0  ;;  %v167_v10 = vsel %vm166_vm2, %v165_v6, -inf }
 0x165   : > { %168 = vmax.xlane.f32.xlu0 %v167_v10 }
 0x17b   : > { %456 = vrot.lane.b32.xlu0 %v816_v2, %s772_s15 }
 0x1f2   : > { %v169_v16 = vpop.xlane.xlu0 %168 }
 0x1f3   : > { %v170_v17 = vsub.f32 %v165_v6, %v169_v16 }
 0x1f5   : > { %v171_v18 = vmul.f32 1.442695, %v170_v17 }
 0x1f6   : > { %v457_v30 = vpop.permute.xlu0 %456 }
 0x1f7   : > { %743 = vpow2.f32 %v171_v18  ;;  %v462_v32 = vsel %vm118_vm1, %v457_v30, 0 }
 0x201   : > { %v744_v19 = vpop.eup %743 }
 0x202   : > { %v173_v20 = vsel %vm166_vm2, %v744_v19, 0.0 }
 0x203   : > { %174 = vadd.xlane.f32.xlu1 %v173_v20 }
 0x214   : > { %232 = vrot.lane.b32.xlu1 %v816_v2, %s774_s16 }
 0x218   : > { %345 = vrot.lane.b32.xlu1 %v816_v2, %s775_s17 }
 0x21c   : > { %343 = vrot.lane.b32.xlu1 %v816_v2, %s776_s18 }
 0x220   : > { %454 = vrot.lane.b32.xlu1 %v816_v2, %s777_s19 }
 0x290   : > { %v175_v22 = vpop.xlane.xlu1 %174 }
 0x291   : > { %745 = vrcp.f32 %v175_v22 }
 0x294   : > { %v233_v25 = vpop.permute.xlu1 %232 }
 0x298   : > { %v346_v28 = vpop.permute.xlu1 %345 }
 0x299   : > { %v351_v29 = vsel %vm118_vm1, %v346_v28, 0 }
 0x29b   : > { %v746_v23 = vpop.eup %745 }
 0x29c   : > { %v177_v24 = vmul.f32 %v746_v23, %v744_v19  ;;  %v344_v31 = vpop.permute.xlu1 %343 }
 0x29e   : > { %v178_v26 = vpack.c.bf16 %v177_v24, %v177_v24 }
 0x2a0   : > { %679 = vmatmul.mubr.msk.bf16.vlgmr.msra.gmra.mrb[0].mxu1 %vm181_vm5, %v178_v26  ;;  %v455_v33 = vpop.permute.xlu1 %454 }
 0x2a1   : > { %683 = vmatpush3.bf16.xpose.msra.mxu1 %v240_v27  ;;  %684 = vmatprep.mubr.msk.bf16.mxu1 %vm768_vm0, %v767_v0 }
 0x2a2   : > { %694 = vmatprep.subr.bf16.mxu1 %v767_v0 }
 0x2a8   : > { %685 = vmatmul.mubr.msk.bf16.vlgmr.msra.gmra.mrb[4].mxu1 %vm118_vm1, %v233_v25 }
 0x2a9   : > { %695 = vmatpush3.bf16.xpose.msra.mxu1 %v351_v29  ;;  %696 = vmatprep.mubr.msk.bf16.mxu1 %vm768_vm0, %v767_v0 }
 0x2aa   : > { %706 = vmatprep.subr.bf16.mxu1 %v767_v0 }
 0x2b0   : > { %697 = vmatmul.mubr.msk.bf16.vlgmr.msra.gmra.mrb[8].mxu1 %vm118_vm1, %v344_v31 }
 0x2b1   : > { %707 = vmatpush3.bf16.xpose.msra.mxu1 %v462_v32  ;;  %708 = vmatprep.mubr.msk.bf16.mxu1 %vm768_vm0, %v767_v0 }
 0x2b8   : > { %709 = vmatmul.mubr.msk.bf16.vlgmr.msra.gmra.mrb[12].mxu1 %vm118_vm1, %v455_v33 }
 0x373   : > { %v853_v34 = vpop.f32.mrb[0].mxu1 }
 0x374   : > { %v680_v35 = vpop.f32.mrb[1].mxu1 }
 0x375   : > { %v229_v36 = vpop.f32.mrb[2].mxu1 }
 0x376   : > { %v681_v37 = vpop.f32.mrb[3].mxu1 }
 0x37b   : > { %v276_v38 = vpop.f32.mrb[4].mxu1 }
 0x37c   : > { %v282_v39 = vmul.f32 0.35355338, %v276_v38  ;;  %v686_v40 = vpop.f32.mrb[5].mxu1 }
 0x37d   : > { %v279_v41 = vpop.f32.mrb[6].mxu1 }
 0x37e   : > { %v687_v42 = vpop.f32.mrb[7].mxu1  ;;  %v283_v43 = vsel %vm166_vm2, %v282_v39, -inf }
 0x37f   : > { %284 = vmax.xlane.f32.xlu1 %v283_v43 }
 0x383   : > { %v387_v44 = vpop.f32.mrb[8].mxu1 }
 0x384   : > { %v393_v45 = vmul.f32 0.35355338, %v387_v44  ;;  %v698_v46 = vpop.f32.mrb[9].mxu1 }
 0x385   : > { %v390_v47 = vpop.f32.mrb[10].mxu1 }
 0x386   : > { %v699_v48 = vpop.f32.mrb[11].mxu1  ;;  %v394_v49 = vsel %vm166_vm2, %v393_v45, -inf }
 0x387   : > { %395 = vmax.xlane.f32.xlu0 %v394_v49 }
 0x38b   : > { %v498_v50 = vpop.f32.mrb[12].mxu1 }
 0x38c   : > { %v504_v51 = vmul.f32 0.35355338, %v498_v50  ;;  %v710_v52 = vpop.f32.mrb[13].mxu1 }
 0x38d   : > { %v501_v53 = vpop.f32.mrb[14].mxu1 }
 0x38e   : > { %v711_v54 = vpop.f32.mrb[15].mxu1  ;;  %v505_v55 = vsel %vm166_vm2, %v504_v51, -inf }
 0x38f   : > { %506 = vmax.xlane.f32.xlu1 %v505_v55 }
 0x3a0   : > { %295 = vrot.lane.b32.xlu1 %v816_v2, %s778_s20 }
 0x40c   : > { %v285_v56 = vpop.xlane.xlu1 %284 }
 0x40d   : > { %v286_v57 = vsub.f32 %v282_v39, %v285_v56 }
 0x40f   : > { %v287_v58 = vmul.f32 1.442695, %v286_v57 }
 0x411   : > { %747 = vpow2.f32 %v287_v58 }
 0x414   : > { %v396_v59 = vpop.xlane.xlu0 %395 }
 0x415   : > { %v397_v60 = vsub.f32 %v393_v45, %v396_v59 }
 0x417   : > { %v398_v61 = vmul.f32 1.442695, %v397_v60 }
 0x419   : > { %749 = vpow2.f32 %v398_v61 }
 0x41b   : > { %v748_v62 = vpop.eup %747 }
 0x41c   : > { %v507_v63 = vpop.xlane.xlu1 %506  ;;  %v289_v1 = vsel %vm166_vm2, %v748_v62, 0.0 }
 0x41d   : > { %v508_v3 = vsub.f32 %v504_v51, %v507_v63  ;;  %290 = vadd.xlane.f32.xlu1 %v289_v1 }
 0x41f   : > { %v509_v4 = vmul.f32 1.442695, %v508_v3 }
 0x420   : > { %v296_v5 = vpop.permute.xlu1 %295 }
 0x421   : > { %751 = vpow2.f32 %v509_v4  ;;  %v301_v6 = vand.u32 %v296_v5, %v829_v14 }
 0x423   : > { %v750_v7 = vpop.eup %749  ;;  %689 = vmatpush3.bf16.msra.mxu0 %v301_v6 }
 0x424   : > { %v400_v8 = vsel %vm166_vm2, %v750_v7, 0.0  ;;  %700 = vmatprep.subr.bf16.mxu0 %v767_v0 }
 0x425   : > { %401 = vadd.xlane.f32.xlu1 %v400_v8 }
 0x42b   : > { %v752_v9 = vpop.eup %751 }
 0x42c   : > { %v511_v10 = vsel %vm166_vm2, %v752_v9, 0.0 }
 0x42d   : > { %512 = vadd.xlane.f32.xlu0 %v511_v10 }
 0x436   : > { %517 = vrot.lane.b32.xlu1 %v816_v2, %s779_s21 }
 0x443   : > { %406 = vrot.lane.b32.xlu0 %v816_v2, %s780_s22 }
 0x4aa   : > { %v291_v11 = vpop.xlane.xlu1 %290 }
 0x4ab   : > { %753 = vrcp.f32 %v291_v11 }
 0x4b2   : > { %v402_v12 = vpop.xlane.xlu1 %401 }
 0x4b3   : > { %755 = vrcp.f32 %v402_v12 }
 0x4b5   : > { %v754_v13 = vpop.eup %753 }
 0x4b6   : > { %v293_v15 = vmul.f32 %v754_v13, %v748_v62  ;;  %v518_v21 = vpop.permute.xlu1 %517 }
 0x4b7   : > { %v523_v22 = vand.u32 %v518_v21, %v829_v14 }
 0x4b8   : > { %v294_v16 = vpack.c.bf16 %v293_v15, %v293_v15 }
 0x4ba   : > { %691 = vmatmul.mubr.msk.bf16.vlgmr.msra.gmra.mrb[4].mxu0 %vm181_vm5, %v294_v16  ;;  %v513_v17 = vpop.xlane.xlu0 %512 }
 0x4bb   : > { %757 = vrcp.f32 %v513_v17  ;;  %702 = vmatprep.mubr.msk.bf16.mxu0 %vm768_vm0, %v767_v0 }
 0x4bd   : > { %v756_v18 = vpop.eup %755 }
 0x4be   : > { %v404_v19 = vmul.f32 %v756_v18, %v750_v7  ;;  %v407_v20 = vpop.permute.xlu0 %406 }
 0x4bf   : > { %v412_v2 = vand.u32 %v407_v20, %v829_v14 }
 0x4c0   : > { %v405_v23 = vpack.c.bf16 %v404_v19, %v404_v19 }
 0x4c1   : > { %701 = vmatpush3.bf16.msra.mxu0 %v412_v2 }
 0x4c2   : > { %712 = vmatprep.subr.bf16.mxu0 %v767_v0 }
 0x4c4   : > { %703 = vmatmul.mubr.msk.bf16.vlgmr.msra.gmra.mrb[8].mxu0 %vm181_vm5, %v405_v23 }
 0x4c5   : > { %v758_v24 = vpop.eup %757  ;;  %713 = vmatpush3.bf16.msra.mxu0 %v523_v22  ;;  %714 = vmatprep.mubr.msk.bf16.mxu0 %vm768_vm0, %v767_v0 }
 0x4c6   : > { %v515_v25 = vmul.f32 %v758_v24, %v752_v9 }
 0x4c8   : > { %v516_v26 = vpack.c.bf16 %v515_v25, %v515_v25 }
 0x4cc   : > { %715 = vmatmul.mubr.msk.bf16.vlgmr.msra.gmra.mrb[12].mxu0 %vm181_vm5, %v516_v26 }
 0x58d   : > { %v337_v27 = vpop.f32.mrb[4].mxu0 }
 0x58e   : > { %566 = vrot.lane.b32.xlu1 %v337_v27, %s781_s23  ;;  %v692_v28 = vpop.f32.mrb[5].mxu0 }
 0x58f   : > { %v340_v29 = vpop.f32.mrb[6].mxu0 }
 0x590   : > { %v693_v14 = vpop.f32.mrb[7].mxu0 }
 0x597   : > { %v448_v30 = vpop.f32.mrb[8].mxu0 }
 0x598   : > { %570 = vrot.lane.b32.xlu0 %v448_v30, %s782_s24  ;;  %v704_v31 = vpop.f32.mrb[9].mxu0 }
 0x599   : > { %v451_v32 = vpop.f32.mrb[10].mxu0 }
 0x59a   : > { %v705_v33 = vpop.f32.mrb[11].mxu0 }
 0x59f   : > { %v559_v35 = vpop.f32.mrb[12].mxu0 }
 0x5a0   : > { %574 = vrot.lane.b32.xlu1 %v559_v35, %s783_s25  ;;  %v716_v0 = vpop.f32.mrb[13].mxu0 }
 0x5a1   : > { %v562_v36 = vpop.f32.mrb[14].mxu0 }
 0x5a2   : > { %v717_v37 = vpop.f32.mrb[15].mxu0 }
 0x600   : > { %v567_v38 = vpop.permute.xlu1 %566 }
 0x601   : > { %v577_v40 = vsel %vm118_vm1, %v853_v34, %v567_v38 }
 0x60a   : > { %v571_v39 = vpop.permute.xlu0 %570 }
 0x60b   : > { %v579_v41 = vsel %vm578_vm6, %v577_v40, %v571_v39 }
 0x612   : > { %v575_v42 = vpop.permute.xlu1 %574 }
 0x613   : > { %v581_v43 = vsel %vm580_vm7, %v579_v41, %v575_v42 }
 0x614   : > { %583 = vst.msk [vmem:[%s111_s28] sm:$0x1f] %vm582_vm8, %v581_v43 }
 0x615 PF: > { %s11_s6 = sadd.s32 1, %s765_s6  }
 0x616   : > { %p8_p4 = scmp.ge.s32.totalorder %s11_s6, 4  }
 0x618   :  { %10 = sbr.rel (!%p8_p4) target bundleno = 1 (0x1), region = 54 }

// kernel: clip_forward.30
= control target key start
LH: loop header
LB: loop body
LE: loop exit
PB: predicated region body
PF: predicated region fallthrough
CT: control target
= control target key end

     0   :  { %vm22_vm0 = vcmask 254976   ;;  %s239_s0 = inlined_call_operand.vmem [shape: f32[2,32], index: 0, kind: input, shape index: {}]   ;;  %s240_s1 = inlined_call_operand.vmem [shape: f32[1,32], index: 1, kind: input, shape index: {}]   ;;  %s241_s2 = inlined_call_operand.vmem [shape: f32[1,32], index: 2, kind: input, shape index: {}]   ;;  %s242_s3 = inlined_call_operand.vmem [shape: bf16[32,16], index: 3, kind: input, shape index: {}]   ;;  %s243_s4 = inlined_call_operand.hbm [shape: f32[2,16], index: 4, kind: output, shape index: {}]  }
   0x1   :  { %v19_v0 = vld [vmem:[%s239_s0] sm:$0x3] }
   0x2   :  { %v23_v1 = vsel %vm22_vm0, %v19_v0, 0.0 }
   0x3   :  { %24 = vadd.xlane.f32.xlu0 %v23_v1 }
   0x4   :  { %9 = vsyncpa [#allocation3], 0  ;;  %v154_v7 = vld [vmem:[%s242_s3] sm:$0xff]   ;;  %v184_v8 = vmov 0.0   ;;  %v155_v9 = vld [vmem:[%s242_s3 + $0x8] sm:$0xff]   ;;  %vm185_vm1 = vmmov 0  }
   0x5   :  { %143 = vmatprep.subr.bf16.mxu0 %v184_v8  ;;  %147 = vmatprep.mubr.msk.bf16.mxu0 %vm185_vm1, %v184_v8  ;;  %v135_v14 = vld [vmem:[%s240_s1] ss:$0 sm:$0xff]  ;;  %vm68_vm2 = vcmask 261120   ;;  %vm113_vm3 = vcmask 123904   ;;  %s186_s1 = smov [#allocation2]  }
   0x6   :  { %144 = vmatpush3.bf16.msra.mxu0 %v154_v7  ;;  %v136_v16 = vld [vmem:[%s241_s2] ss:$0 sm:$0xff]  ;;  %s127_s3 = sshll.u32 %s186_s1, 4  ;;  %s128_s3 = int_to_ptr.vmem [resolvable:$true] %s127_s3 }
   0x7   :  { %145 = vmatprep.subr.bf16.mxu0 %v184_v8  ;;  %s160_s2 = scalar_lea.vmem %s128_s3, 32  ;;  %p165_p1 = scmp.lt.s32.totalorder %s128_s3, %s128_s3 }
   0x8   :  { %p161_p0 = scmp.ne.s32.totalorder %s128_s3, %s160_s2  ;;  %p166_p2 = scmp.lt.s32.totalorder %s160_s2, %s160_s2 }
   0xa   :  { %146 = vmatpush3.bf16.msra.mxu0 %v155_v9  ;;  %p167_p3 = por %p166_p2, %p165_p1 }
   0xc   :  { %p168_p4 = pnand %p167_p3, %p161_p0 }
  0x90   :  { %v25_v2 = vpop.xlane.xlu0 %24 }
  0x91   :  { %v27_v3 = vmul.f32 0.03125, %v25_v2 }
  0x93   :  { %v28_v4 = vsub.f32 %v19_v0, %v27_v3 }
  0x95   :  { %v29_v5 = vmul.f32 %v28_v4, %v28_v4 }
  0x97   :  { %v30_v6 = vsel %vm22_vm0, %v29_v5, 0.0 }
  0x98   :  { %31 = vadd.xlane.f32.xlu0 %v30_v6 }
 0x125   :  { %v32_v10 = vpop.xlane.xlu0 %31 }
 0x126   :  { %v33_v11 = vmul.f32 0.03125, %v32_v10 }
 0x128   :  { %v34_v12 = vadd.f32 1e-05, %v33_v11 }
 0x12a   :  { %156 = vrsqrt.f32 %v34_v12 }
 0x134   :  { %v157_v13 = vpop.eup %156 }
 0x135   :  { %v36_v15 = vmul.f32 %v157_v13, %v28_v4 }
 0x137   :  { %v43_v17 = vmul.f32 %v135_v14, %v36_v15 }
 0x139   :  { %v50_v18 = vadd.f32 %v136_v16, %v43_v17 }
 0x13b   :  { %v51_v19 = vpack.c.bf16 %v50_v18, %v50_v18 }
 0x13d   :  { %148 = vmatmul.mubr.msk.bf16.vlgmr.msra.gmra.mrb[0].mxu0 %vm68_vm2, %v51_v19 }
 0x210   :  { %v106_v20 = vpop.f32.mrb[0].mxu0 }
 0x211   :  { %v149_v21 = vpop.f32.mrb[1].mxu0  ;;  %v112_v22 = vmul.f32 %v106_v20, %v106_v20 }
 0x212   :  { %v109_v23 = vpop.f32.mrb[2].mxu0 }
 0x213   :  { %v150_v24 = vpop.f32.mrb[3].mxu0  ;;  %v114_v25 = vsel %vm113_vm3, %v112_v22, 0.0 }
 0x214   :  { %115 = vadd.xlane.f32.xlu1 %v114_v25 }
 0x2a1   :  { %v116_v26 = vpop.xlane.xlu1 %115 }
 0x2a2   :  { %v117_v27 = vadd.f32 1e-12, %v116_v26 }
 0x2a4   :  { %158 = vrsqrt.f32 %v117_v27 }
 0x2ae   :  { %v159_v28 = vpop.eup %158 }
 0x2af   :  { %v119_v29 = vmul.f32 %v159_v28, %v106_v20 }
 0x2b1   :  { %120 = vst.msk [vmem:[#allocation2] sm:$0x3] %vm113_vm3, %v119_v29 }
 0x2b2   :  { %171 = shalt.err (!%p168_p4)
}
 0x2b3   :  { %s172_s26 = scalar_lea.hbm %s243_s4, 32 }
 0x2b4   :  { %p173_p5 = scmp.ne.s32.totalorder %s243_s4, %s172_s26  ;;  %p176_p6 = scmp.lt.u32.totalorder %s172_s26, %s243_s4 }
 0x2b6   :  { %p178_p7 = pnand %p176_p6, %p173_p5 }
 0x2b8   :  { %181 = shalt.err (!%p178_p7)
}
 0x2b9   :  { %130 = dma.vmem_to_hbm [thread:$0]  %s128_s3, 32, %s243_s4, [#allocation3]  }
 0x2ba   :  { %182 = dma.done.wait [#allocation3], 32  }
 0x2bb   :  { %183 = vsyncadd [#allocation3], 4294967264 }
 0x2bc   :  { %134 = vsyncpa [#allocation3], 1 }

// kernel: clip_forward.25
= control target key start
LH: loop header
LB: loop body
LE: loop exit
PB: predicated region body
PF: predicated region fallthrough
CT: control target
= control target key end

     0   :  { %vm35_vm0 = vcmask 261120   ;;  %vm39_vm1 = vcmask 254976   ;;  %v409_v15 = vmov 0.0   ;;  %vm410_vm2 = vmmov 0   ;;  %s524_s0 = inlined_call_operand.vmem [shape: f32[10,32], index: 0, kind: input, shape index: {}]   ;;  %s525_s3 = inlined_call_operand.vmem [shape: bf16[32,128], index: 3, kind: input, shape index: {}]   ;;  %s526_s1 = inlined_call_operand.vmem [shape: f32[1,32], index: 1, kind: input, shape index: {}]   ;;  %s527_s2 = inlined_call_operand.vmem [shape: f32[1,32], index: 2, kind: input, shape index: {}]   ;;  %s528_s5 = inlined_call_operand.vmem [shape: bf16[128,32], index: 5, kind: input, shape index: {}]   ;;  %s529_s4 = inlined_call_operand.vmem [shape: f32[1,128], index: 4, kind: input, shape index: {}]   ;;  %s530_s6 = inlined_call_operand.vmem [shape: f32[1,32], index: 6, kind: input, shape index: {}]   ;;  %s531_s7 = inlined_call_operand.vmem [shape: f32[10,32], index: 7, kind: output, shape index: {}]  }
   0x1   :  { %v454_v0 = vld [vmem:[%s524_s0] sm:$0xff]  ;;  %v32_v1 = vld [vmem:[%s524_s0 + $0x8] sm:$0x3]  ;;  %356 = vmatprep.subr.bf16.mxu0 %v409_v15  ;;  %92 = vst.msk [vmem:[#allocation3] sm:$0xff] %vm35_vm0, %v409_v15  ;;  %364 = vmatprep.subr.bf16.mxu1 %v409_v15  ;;  %vm88_vm3 = vcmask 257024   ;;  %vm90_vm4 = vcmask 253952  }
   0x2   :  { %v36_v2 = vsel %vm35_vm0, %v454_v0, 0.0  ;;  %v40_v3 = vsel %vm39_vm1, %v32_v1, 0.0  ;;  %v386_v14 = vld [vmem:[%s525_s3] sm:$0xff]   ;;  %93 = vst.msk [vmem:[#allocation3 + $0x8] sm:$0x3] %vm39_vm1, %v409_v15  ;;  %v387_v16 = vld [vmem:[%s525_s3 + $0x8] sm:$0xff]   ;;  %360 = vmatprep.mubr.msk.bf16.mxu0 %vm410_vm2, %v409_v15  ;;  %380 = vmatprep.mubr.msk.bf16.mxu1 %vm410_vm2, %v409_v15 }
   0x3   :  { %37 = vadd.xlane.f32.xlu0 %v36_v2  ;;  %357 = vmatpush3.bf16.msra.mxu0 %v386_v14  ;;  %v322_v24 = vld [vmem:[%s526_s1] ss:$0 sm:$0xff]  ;;  %v390_v37 = vld [vmem:[%s528_s5 + $0x8] sm:$0xff]   ;;  %v391_v38 = vld [vmem:[%s528_s5 + $0x10] sm:$0xff]  }
   0x4   :  { %358 = vmatprep.subr.bf16.mxu0 %v409_v15  ;;  %v323_v26 = vld [vmem:[%s527_s2] ss:$0 sm:$0xff]  ;;  %v392_v39 = vld [vmem:[%s528_s5 + $0x18] sm:$0xff]   ;;  %v394_v41 = vld [vmem:[%s528_s5 + $0x28] sm:$0xff]  }
   0x5   :  { %v389_v36 = vld [vmem:[%s528_s5] sm:$0xff]   ;;  %v395_v42 = vld [vmem:[%s528_s5 + $0x30] sm:$0xff]   ;;  %v396_v43 = vld [vmem:[%s528_s5 + $0x38] sm:$0xff]  }
   0x6   :  { %365 = vmatpush3.bf16.msra.mxu1 %v389_v36  ;;  %v393_v40 = vld [vmem:[%s528_s5 + $0x20] sm:$0xff]  }
   0x7   :  { %41 = vadd.xlane.f32.xlu0 %v40_v3  ;;  %359 = vmatpush3.bf16.msra.mxu0 %v387_v16  ;;  %v326_v44 = vld [vmem:[%s529_s4] ss:$0 sm:$0xff] }
   0x8   :  { %366 = vmatprep.subr.bf16.mxu1 %v409_v15 }
   0x9   :  { %v186_v3 = vld [vmem:[#allocation3 + $0x8] sm:$0x3] }
   0xa   :  { %367 = vmatpush3.bf16.msra.mxu1 %v390_v37 }
   0xb   :  { %368 = vmatprep.subr.bf16.mxu1 %v409_v15 }
   0xe   :  { %369 = vmatpush3.bf16.msra.mxu1 %v391_v38 }
   0xf   :  { %370 = vmatprep.subr.bf16.mxu1 %v409_v15 }
  0x12   :  { %371 = vmatpush3.bf16.msra.mxu1 %v392_v39 }
  0x13   :  { %372 = vmatprep.subr.bf16.mxu1 %v409_v15 }
  0x16   :  { %373 = vmatpush3.bf16.msra.mxu1 %v393_v40 }
  0x17   :  { %374 = vmatprep.subr.bf16.mxu1 %v409_v15 }
  0x1a   :  { %375 = vmatpush3.bf16.msra.mxu1 %v394_v41 }
  0x1b   :  { %376 = vmatprep.subr.bf16.mxu1 %v409_v15 }
  0x1e   :  { %377 = vmatpush3.bf16.msra.mxu1 %v395_v42 }
  0x1f   :  { %378 = vmatprep.subr.bf16.mxu1 %v409_v15 }
  0x22   :  { %379 = vmatpush3.bf16.msra.mxu1 %v396_v43 }
  0x90   :  { %v38_v4 = vpop.xlane.xlu0 %37 }
  0x91   :  { %v44_v5 = vmul.f32 0.03125, %v38_v4 }
  0x93   :  { %v46_v6 = vsub.f32 %v454_v0, %v44_v5 }
  0x94   :  { %v42_v7 = vpop.xlane.xlu0 %41 }
  0x95   :  { %v45_v8 = vmul.f32 0.03125, %v42_v7  ;;  %v48_v9 = vmul.f32 %v46_v6, %v46_v6 }
  0x97   :  { %v47_v10 = vsub.f32 %v32_v1, %v45_v8  ;;  %v50_v11 = vsel %vm35_vm0, %v48_v9, 0.0  ;;  %v185_v1 = vld [vmem:[#allocation3] sm:$0xff] }
  0x98   :  { %51 = vadd.xlane.f32.xlu1 %v50_v11  ;;  %v302_v9 = vld [vmem:[%s524_s0 + $0x8] sm:$0x3]  ;;  %v341_v11 = vld [vmem:[%s530_s6] ss:$0 sm:$0xff] }
  0x99   :  { %v49_v12 = vmul.f32 %v47_v10, %v47_v10 }
  0x9b   :  { %v53_v13 = vsel %vm39_vm1, %v49_v12, 0.0 }
  0x9c   :  { %54 = vadd.xlane.f32.xlu1 %v53_v13 }
 0x125   :  { %v52_v17 = vpop.xlane.xlu1 %51 }
 0x126   :  { %v56_v18 = vmul.f32 0.03125, %v52_v17 }
 0x128   :  { %v58_v19 = vadd.f32 1e-05, %v56_v18 }
 0x129   :  { %v55_v20 = vpop.xlane.xlu1 %54 }
 0x12a   :  { %397 = vrsqrt.f32 %v58_v19  ;;  %v57_v21 = vmul.f32 0.03125, %v55_v20 }
 0x12c   :  { %v59_v22 = vadd.f32 1e-05, %v57_v21 }
 0x12e   :  { %399 = vrsqrt.f32 %v59_v22 }
 0x134   :  { %v398_v23 = vpop.eup %397 }
 0x135   :  { %v62_v25 = vmul.f32 %v398_v23, %v46_v6 }
 0x137   :  { %v70_v27 = vmul.f32 %v322_v24, %v62_v25 }
 0x138   :  { %v400_v28 = vpop.eup %399 }
 0x139   :  { %v78_v29 = vadd.f32 %v323_v26, %v70_v27  ;;  %v63_v30 = vmul.f32 %v400_v28, %v47_v10 }
 0x13b   :  { %v342_v31 = vpack.c.bf16 %v78_v29, %v78_v29  ;;  %v71_v32 = vmul.f32 %v322_v24, %v63_v30 }
 0x13d   :  { %89 = vst.msk [vmem:[#allocation2] sm:$0xf] %vm88_vm3, %v342_v31  ;;  %v79_v33 = vadd.f32 %v323_v26, %v71_v32 }
 0x13f   :  { %v343_v34 = vpack.c.bf16 %v79_v33, %v79_v33 }
 0x141   :  { %91 = vst.msk [vmem:[#allocation2 + $0x4] sm:$0x1] %vm90_vm4, %v343_v34 }
 0x148   :  { %v388_v35 = vld [vmem:[#allocation2] sm:$0x1f]  }
 0x149   :  { %361 = vmatmul.mubr.msk.bf16.vlgmr.msra.gmra.mrb[0].mxu0 %vm35_vm0, %v388_v35 }
 0x21c   :  { %v162_v45 = vpop.f32.mrb[0].mxu0 }
 0x21d   :  { %v163_v46 = vadd.f32 %v326_v44, %v162_v45  ;;  %v362_v47 = vpop.f32.mrb[1].mxu0 }
 0x21e   :  { %v165_v48 = vpop.f32.mrb[2].mxu0 }
 0x21f   :  { %v331_v49 = vmul.f32 -1.702, %v163_v46  ;;  %v166_v50 = vadd.f32 %v326_v44, %v165_v48  ;;  %v363_v51 = vpop.f32.mrb[3].mxu0 }
 0x221   :  { %v173_v52 = vmul.f32 1.442695, %v331_v49  ;;  %v332_v53 = vmul.f32 -1.702, %v166_v50 }
 0x223   :  { %401 = vpow2.f32 %v173_v52  ;;  %v175_v54 = vmul.f32 1.442695, %v332_v53 }
 0x225   :  { %403 = vpow2.f32 %v175_v54 }
 0x22d   :  { %v402_v55 = vpop.eup %401 }
 0x22e   :  { %v177_v56 = vadd.f32 1.0, %v402_v55 }
 0x22f   :  { %v404_v57 = vpop.eup %403 }
 0x230   :  { %405 = vrcp.f32 %v177_v56  ;;  %v178_v58 = vadd.f32 1.0, %v404_v57 }
 0x232   :  { %407 = vrcp.f32 %v178_v58 }
 0x23a   :  { %v406_v59 = vpop.eup %405 }
 0x23b   :  { %v183_v61 = vmul.f32 %v406_v59, %v163_v46 }
 0x23c   :  { %v408_v60 = vpop.eup %407 }
 0x23d   :  { %v184_v62 = vmul.f32 %v408_v60, %v166_v50 }
 0x23f   :  { %v187_v63 = vpack.c.bf16 %v184_v62, %v183_v61 }
 0x241   :  { %381 = vmatmul.mubr.bf16.vlgmr.msra.gmra.mrb[0].mxu1 %v187_v63 }
 0x314   :  { %v286_v2 = vpop.f32.mrb[0].mxu1 }
 0x315   :  { %v293_v4 = vadd.f32 %v286_v2, %v185_v1  ;;  %v382_v5 = vpop.f32.mrb[1].mxu1 }
 0x316   :  { %v289_v6 = vpop.f32.mrb[2].mxu1 }
 0x317   :  { %295 = vst.msk [vmem:[#allocation3] sm:$0xff] %vm35_vm0, %v293_v4  ;;  %v294_v7 = vadd.f32 %v289_v6, %v186_v3  ;;  %v383_v8 = vpop.f32.mrb[3].mxu1 }
 0x319   :  { %297 = vst.msk [vmem:[#allocation3 + $0x8] sm:$0x3] %vm39_vm1, %v294_v7 }
 0x31e   :  { %v303_v10 = vld [vmem:[#allocation3] sm:$0xff] }
 0x31f   :  { %v305_v12 = vadd.f32 %v303_v10, %v454_v0 }
 0x320   :  { %v304_v13 = vld [vmem:[#allocation3 + $0x8] sm:$0x3] }
 0x321   :  { %v314_v14 = vadd.f32 %v341_v11, %v305_v12  ;;  %v306_v15 = vadd.f32 %v304_v13, %v302_v9 }
 0x323   :  { %316 = vst.msk [vmem:[%s531_s7] sm:$0xff] %vm35_vm0, %v314_v14  ;;  %v315_v16 = vadd.f32 %v341_v11, %v306_v15 }
 0x325   :  { %317 = vst.msk [vmem:[%s531_s7 + $0x8] sm:$0x3] %vm39_vm1, %v315_v16 }

// kernel: clip_forward.24
= control target key start
LH: loop header
LB: loop body
LE: loop exit
PB: predicated region body
PF: predicated region fallthrough
CT: control target
= control target key end

     0   :  { %v121_v0 = vmov 0.0   ;;  %vm122_vm0 = vmmov 0   ;;  %vm39_vm1 = vcmask 261120   ;;  %vm96_vm2 = vcmask 254976   ;;  %s177_s1 = inlined_call_operand.vmem [shape: bf16[32,32], index: 1, kind: input, shape index: {}]   ;;  %s178_s0 = inlined_call_operand.vmem [shape: f32[10,32], index: 0, kind: input, shape index: {}]   ;;  %s179_s3 = inlined_call_operand.vmem [shape: f32[10,32], index: 3, kind: input, shape index: {}]   ;;  %s180_s2 = inlined_call_operand.vmem [shape: f32[1,32], index: 2, kind: input, shape index: {}]   ;;  %s181_s4 = inlined_call_operand.vmem [shape: f32[10,32], index: 4, kind: output, shape index: {}]  }
   0x1   :  { %109 = vmatprep.subr.bf16.mxu0 %v121_v0  ;;  %v119_v1 = vld [vmem:[%s177_s1] sm:$0xff]   ;;  %113 = vmatprep.mubr.msk.bf16.mxu0 %vm122_vm0, %v121_v0  ;;  %v120_v2 = vld [vmem:[%s177_s1 + $0x8] sm:$0xff]  }
   0x2   :  { %110 = vmatpush3.bf16.msra.mxu0 %v119_v1  ;;  %v20_v3 = vld [vmem:[%s178_s0] sm:$0xff]  ;;  %v21_v4 = vld [vmem:[%s178_s0 + $0x8] sm:$0x3] }
   0x3   :  { %111 = vmatprep.subr.bf16.mxu0 %v121_v0  ;;  %v22_v5 = vpack.c.bf16 %v21_v4, %v20_v3  ;;  %v18_v6 = vld [vmem:[%s179_s3] sm:$0xff]  ;;  %v19_v9 = vld [vmem:[%s179_s3 + $0x8] sm:$0x3] }
   0x4   :  { %v105_v8 = vld [vmem:[%s180_s2] ss:$0 sm:$0xff] }
   0x6   :  { %112 = vmatpush3.bf16.msra.mxu0 %v120_v2 }
   0x9   :  { %114 = vmatmul.mubr.msk.bf16.vlgmr.msra.gmra.mrb[0].mxu0 %vm39_vm1, %v22_v5 }
  0xdc   :  { %v77_v7 = vpop.f32.mrb[0].mxu0 }
  0xdd   :  { %v84_v10 = vadd.f32 %v77_v7, %v18_v6  ;;  %v115_v11 = vpop.f32.mrb[1].mxu0 }
  0xde   :  { %v80_v12 = vpop.f32.mrb[2].mxu0 }
  0xdf   :  { %v93_v13 = vadd.f32 %v105_v8, %v84_v10  ;;  %v85_v14 = vadd.f32 %v80_v12, %v19_v9  ;;  %v116_v15 = vpop.f32.mrb[3].mxu0 }
  0xe1   :  { %95 = vst.msk [vmem:[%s181_s4] sm:$0xff] %vm39_vm1, %v93_v13  ;;  %v94_v16 = vadd.f32 %v105_v8, %v85_v14 }
  0xe3   :  { %97 = vst.msk [vmem:[%s181_s4 + $0x8] sm:$0x3] %vm96_vm2, %v94_v16 }

// kernel: clip_forward.31
= control target key start
LH: loop header
LB: loop body
LE: loop exit
PB: predicated region body
PF: predicated region fallthrough
CT: control target
= control target key end

     0   :  { %vm25_vm0 = vcmask 261120   ;;  %v169_v15 = vmov 0.0   ;;  %vm170_vm1 = vmmov 0   ;;  %vm137_vm2 = vcmask 785408   ;;  %s233_s0 = inlined_call_operand.vmem [shape: f32[16,32], index: 0, kind: input, shape index: {}]   ;;  %s234_s3 = inlined_call_operand.vmem [shape: bf16[32,96], index: 3, kind: input, shape index: {}]   ;;  %s235_s1 = inlined_call_operand.vmem [shape: f32[1,32], index: 1, kind: input, shape index: {}]   ;;  %s236_s2 = inlined_call_operand.vmem [shape: f32[1,32], index: 2, kind: input, shape index: {}]   ;;  %s237_s4 = inlined_call_operand.vmem [shape: f32[1,96], index: 4, kind: input, shape index: {}]   ;;  %s238_s5 = inlined_call_operand.vmem [shape: f32[16,96], index: 5, kind: output, shape index: {}]  }
   0x1   :  { %v21_v0 = vld [vmem:[%s233_s0] sm:$0xff]  ;;  %v22_v1 = vld [vmem:[%s233_s0 + $0x8] sm:$0xff]  ;;  %153 = vmatprep.subr.bf16.mxu0 %v169_v15  ;;  %157 = vmatprep.mubr.msk.bf16.mxu0 %vm170_vm1, %v169_v15 }
   0x2   :  { %v26_v2 = vsel %vm25_vm0, %v21_v0, 0.0  ;;  %v29_v3 = vsel %vm25_vm0, %v22_v1, 0.0  ;;  %v163_v14 = vld [vmem:[%s234_s3] sm:$0xff]   ;;  %v164_v16 = vld [vmem:[%s234_s3 + $0x8] sm:$0xff]  }
   0x3   :  { %27 = vadd.xlane.f32.xlu0 %v26_v2  ;;  %154 = vmatpush3.bf16.msra.mxu0 %v163_v14  ;;  %v144_v25 = vld [vmem:[%s235_s1] ss:$0 sm:$0xff] }
   0x4   :  { %155 = vmatprep.subr.bf16.mxu0 %v169_v15  ;;  %v145_v29 = vld [vmem:[%s236_s2] ss:$0 sm:$0xff] }
   0x5   :  { %v146_v34 = vld [vmem:[%s237_s4] ss:$0 sm:$0xff] }
   0x7   :  { %30 = vadd.xlane.f32.xlu0 %v29_v3  ;;  %156 = vmatpush3.bf16.msra.mxu0 %v164_v16 }
  0x90   :  { %v28_v4 = vpop.xlane.xlu0 %27 }
  0x91   :  { %v33_v5 = vmul.f32 0.03125, %v28_v4 }
  0x93   :  { %v35_v6 = vsub.f32 %v21_v0, %v33_v5 }
  0x94   :  { %v31_v7 = vpop.xlane.xlu0 %30 }
  0x95   :  { %v34_v8 = vmul.f32 0.03125, %v31_v7  ;;  %v37_v9 = vmul.f32 %v35_v6, %v35_v6 }
  0x97   :  { %v36_v10 = vsub.f32 %v22_v1, %v34_v8  ;;  %v39_v11 = vsel %vm25_vm0, %v37_v9, 0.0 }
  0x98   :  { %40 = vadd.xlane.f32.xlu1 %v39_v11 }
  0x99   :  { %v38_v12 = vmul.f32 %v36_v10, %v36_v10 }
  0x9b   :  { %v42_v13 = vsel %vm25_vm0, %v38_v12, 0.0 }
  0x9c   :  { %43 = vadd.xlane.f32.xlu1 %v42_v13 }
 0x125   :  { %v41_v17 = vpop.xlane.xlu1 %40 }
 0x126   :  { %v45_v18 = vmul.f32 0.03125, %v41_v17 }
 0x128   :  { %v47_v19 = vadd.f32 1e-05, %v45_v18 }
 0x129   :  { %v44_v20 = vpop.xlane.xlu1 %43 }
 0x12a   :  { %165 = vrsqrt.f32 %v47_v19  ;;  %v46_v21 = vmul.f32 0.03125, %v44_v20 }
 0x12c   :  { %v48_v22 = vadd.f32 1e-05, %v46_v21 }
 0x12e   :  { %167 = vrsqrt.f32 %v48_v22 }
 0x134   :  { %v166_v23 = vpop.eup %165 }
 0x135   :  { %v51_v24 = vmul.f32 %v166_v23, %v35_v6 }
 0x137   :  { %v59_v28 = vmul.f32 %v144_v25, %v51_v24 }
 0x138   :  { %v168_v26 = vpop.eup %167 }
 0x139   :  { %v52_v27 = vmul.f32 %v168_v26, %v36_v10  ;;  %v67_v31 = vadd.f32 %v145_v29, %v59_v28 }
 0x13b   :  { %v60_v30 = vmul.f32 %v144_v25, %v52_v27 }
 0x13d   :  { %v68_v32 = vadd.f32 %v145_v29, %v60_v30 }
 0x13f   :  { %v69_v33 = vpack.c.bf16 %v68_v32, %v67_v31 }
 0x141   :  { %158 = vmatmul.mubr.msk.bf16.vlgmr.msra.gmra.mrb[0].mxu0 %vm25_vm0, %v69_v33 }
 0x214   :  { %v130_v35 = vpop.f32.mrb[0].mxu0 }
 0x215   :  { %v131_v36 = vadd.f32 %v146_v34, %v130_v35  ;;  %v159_v37 = vpop.f32.mrb[1].mxu0 }
 0x216   :  { %v133_v38 = vpop.f32.mrb[2].mxu0 }
 0x217   :  { %138 = vst.msk [vmem:[%s238_s5] sm:$0xff] %vm137_vm2, %v131_v36  ;;  %v134_v39 = vadd.f32 %v146_v34, %v133_v38  ;;  %v160_v40 = vpop.f32.mrb[3].mxu0 }
 0x219   :  { %139 = vst.msk [vmem:[%s238_s5 + $0x8] sm:$0xff] %vm137_vm2, %v134_v39 }

// kernel: clip_forward.33
= control target key start
LH: loop header
LB: loop body
LE: loop exit
PB: predicated region body
PF: predicated region fallthrough
CT: control target
= control target key end

     0   :  { %v120_v0 = vmov 0.0   ;;  %vm121_vm0 = vmmov 0   ;;  %vm39_vm1 = vcmask 261120   ;;  %s177_s1 = inlined_call_operand.vmem [shape: bf16[32,32], index: 1, kind: input, shape index: {}]   ;;  %s178_s0 = inlined_call_operand.vmem [shape: f32[16,32], index: 0, kind: input, shape index: {}]   ;;  %s179_s3 = inlined_call_operand.vmem [shape: f32[16,32], index: 3, kind: input, shape index: {}]   ;;  %s180_s2 = inlined_call_operand.vmem [shape: f32[1,32], index: 2, kind: input, shape index: {}]   ;;  %s181_s4 = inlined_call_operand.vmem [shape: f32[16,32], index: 4, kind: output, shape index: {}]  }
   0x1   :  { %108 = vmatprep.subr.bf16.mxu0 %v120_v0  ;;  %v118_v1 = vld [vmem:[%s177_s1] sm:$0xff]   ;;  %112 = vmatprep.mubr.msk.bf16.mxu0 %vm121_vm0, %v120_v0  ;;  %v119_v2 = vld [vmem:[%s177_s1 + $0x8] sm:$0xff]  }
   0x2   :  { %109 = vmatpush3.bf16.msra.mxu0 %v118_v1  ;;  %v20_v3 = vld [vmem:[%s178_s0] sm:$0xff]  ;;  %v21_v4 = vld [vmem:[%s178_s0 + $0x8] sm:$0xff] }
   0x3   :  { %110 = vmatprep.subr.bf16.mxu0 %v120_v0  ;;  %v22_v5 = vpack.c.bf16 %v21_v4, %v20_v3  ;;  %v18_v6 = vld [vmem:[%s179_s3] sm:$0xff]  ;;  %v19_v9 = vld [vmem:[%s179_s3 + $0x8] sm:$0xff] }
   0x4   :  { %v104_v8 = vld [vmem:[%s180_s2] ss:$0 sm:$0xff] }
   0x6   :  { %111 = vmatpush3.bf16.msra.mxu0 %v119_v2 }
   0x9   :  { %113 = vmatmul.mubr.msk.bf16.vlgmr.msra.gmra.mrb[0].mxu0 %vm39_vm1, %v22_v5 }
  0xdc   :  { %v77_v7 = vpop.f32.mrb[0].mxu0 }
  0xdd   :  { %v84_v10 = vadd.f32 %v77_v7, %v18_v6  ;;  %v114_v11 = vpop.f32.mrb[1].mxu0 }
  0xde   :  { %v80_v12 = vpop.f32.mrb[2].mxu0 }
  0xdf   :  { %v93_v13 = vadd.f32 %v104_v8, %v84_v10  ;;  %v85_v14 = vadd.f32 %v80_v12, %v19_v9  ;;  %v115_v15 = vpop.f32.mrb[3].mxu0 }
  0xe1   :  { %95 = vst.msk [vmem:[%s181_s4] sm:$0xff] %vm39_vm1, %v93_v13  ;;  %v94_v16 = vadd.f32 %v104_v8, %v85_v14 }
  0xe3   :  { %96 = vst.msk [vmem:[%s181_s4 + $0x8] sm:$0xff] %vm39_vm1, %v94_v16 }

// kernel: clip_forward.32
= control target key start
LH: loop header
LB: loop body
LE: loop exit
PB: predicated region body
PF: predicated region fallthrough
CT: control target
= control target key end

     0   :  { %s797_s6 = smov 0   ;;  %s894_s0 = inlined_call_operand.vmem [shape: f32[2,8,96], index: 0, kind: input, shape index: {}]   ;;  %s895_s1 = inlined_call_operand.vmem [shape: f32[2,8,32], index: 1, kind: output, shape index: {}]  }
   0x1 LB: > { %s642_s7 = sadd.s32 4294967295, %s769_s6   ;;  %p646_p0 = scmp.ge.s32.totalorder %s769_s6, 1  ;;  %s769_s6 = sphi %s797_s6, %s11_s6  }
   0x2   : > { %p86_p1 = scmp.lt.s32.totalorder %s769_s6, 3 }
   0x4   : > { %p87_p2 = pnand %p646_p0, %p86_p1 }
   0x5   : > { %p104_p3 = scmp.lt.s32.totalorder (!%p87_p2), %s642_s7, 1  ;;  %v771_v0 = vmov (!%p87_p2), 0.0   ;;  %vm772_vm0 = vmmov (!%p87_p2), 0   ;;  %s773_s12 = smov (!%p87_p2), 96   ;;  %vm124_vm1 = vcmask (!%p87_p2), 64512   ;;  %v113_v5 = vlaneseq (!%p87_p2) }
   0x6   : > { %90 = sbr.rel (%p87_p2) target bundleno = 1604 (0x644), region = 24  ;;  %675 = vmatprep.subr.bf16.mxu0 (!%p87_p2), %v771_v0  ;;  %677 = vmatprep.mubr.msk.bf16.mxu0 (!%p87_p2), %vm772_vm0, %v771_v0  ;;  %s774_s13 = smov (!%p87_p2), 64   ;;  %vm190_vm3 = vcmask (!%p87_p2), 1043456   ;;  %vm583_vm4 = vcmask (!%p87_p2), 130048   ;;  %vm585_vm5 = vcmask (!%p87_p2), 195584   ;;  %vm587_vm6 = vcmask (!%p87_p2), 261120  }
   0x7   : > { %681 = vmatprep.subr.bf16.mxu1 (!%p87_p2), %v771_v0  ;;  %683 = vmatprep.mubr.msk.bf16.mxu1 (!%p87_p2), %vm772_vm0, %v771_v0  ;;  %s775_s14 = smov (!%p87_p2), 88   ;;  %v114_v6 = vshrl.u32 (!%p87_p2), %v113_v5, 7  ;;  %v116_v7 = vand.u32 (!%p87_p2), 127, %v113_v5  ;;  %s776_s15 = smov (!%p87_p2), 72  }
   0x8   : > { %s777_s16 = smov (!%p87_p2), 120   ;;  %s778_s17 = smov (!%p87_p2), 80  }
   0x9   : > { %vm117_vm2 = vcmp.gt.s32.totalorder (!%p87_p2), %v116_v7, %v114_v6  ;;  %s779_s18 = smov (!%p87_p2), 112   ;;  %s780_s19 = smov (!%p87_p2), 104  }
   0xa   : > { %v831_v9 = vsel (!%p87_p2), %vm117_vm2, -1e+09, %v771_v0  ;;  %s781_s20 = smov (!%p87_p2), 56   ;;  %s782_s21 = smov (!%p87_p2), 48  }
   0xb   : > { %s783_s22 = smov (!%p87_p2), 40   ;;  %s784_s23 = smov (!%p87_p2), 8  }
   0xc   : > { %s785_s24 = smov (!%p87_p2), 16   ;;  %s786_s25 = smov (!%p87_p2), 24  }
   0xd   : > { %s897_s7 = smov (!%p104_p3, %s642_s7), 1 }
   0xe   : > { %s647_s8 = sshll.u32 %s897_s7, 3 }
   0xf   : > { %s107_s11 = scalar_lea.vmem %s894_s0, %s647_s8  ;;  %s111_s28 = scalar_lea.vmem %s895_s1, %s647_s8 }
  0x10   : > { %v119_v1 = vld [vmem:[%s107_s11] sm:$0xff] }
  0x11   : > { %v819_v2 = vpack.c.bf16 %v119_v1, %v119_v1 }
  0x13   : > { %122 = vrot.lane.b32.xlu0 %v819_v2, %s773_s12  ;;  %185 = vrot.lane.b32.xlu1 %v819_v2, %s774_s13 }
  0x17   : > { %236 = vrot.lane.b32.xlu1 %v819_v2, %s775_s14 }
  0x85   : > { %v123_v3 = vpop.permute.xlu0 %122  ;;  %v186_v16 = vpop.permute.xlu1 %185 }
  0x86   : > { %v129_v4 = vsel %vm124_vm1, %v123_v3, 0  ;;  %v192_v17 = vsel %vm190_vm3, %v186_v16, 0 }
  0x87   : > { %676 = vmatpush3.bf16.xpose.msra.mxu0 %v129_v4  ;;  %682 = vmatpush3.bf16.msra.mxu1 %v192_v17 }
  0x88   : > { %693 = vmatprep.subr.bf16.mxu0 %v771_v0  ;;  %687 = vmatprep.subr.bf16.mxu1 %v771_v0 }
  0x89   : > { %v237_v23 = vpop.permute.xlu1 %236 }
  0x8a   : > { %v242_v29 = vsel %vm124_vm1, %v237_v23, 0 }
  0x8e   : > { %678 = vmatmul.mubr.msk.bf16.vlgmr.msra.gmra.mrb[0].mxu0 %vm124_vm1, %v819_v2 }
  0x8f   : > { %695 = vmatprep.mubr.msk.bf16.mxu0 %vm772_vm0, %v771_v0 }
 0x161   : > { %v165_v8 = vpop.f32.mrb[0].mxu0 }
 0x162   : > { %v171_v10 = vmul.f32 0.35355338, %v165_v8  ;;  %v679_v11 = vpop.f32.mrb[1].mxu0 }
 0x163   : > { %v168_v12 = vpop.f32.mrb[2].mxu0 }
 0x164   : > { %v680_v13 = vpop.f32.mrb[3].mxu0  ;;  %v172_v14 = vadd.f32 %v171_v10, %v831_v9 }
 0x166   : > { %v173_v15 = vsel %vm124_vm1, %v172_v14, -inf }
 0x167   : > { %174 = vmax.xlane.f32.xlu0 %v173_v15 }
 0x17d   : > { %460 = vrot.lane.b32.xlu0 %v819_v2, %s776_s15 }
 0x1f4   : > { %v175_v18 = vpop.xlane.xlu0 %174 }
 0x1f5   : > { %v176_v19 = vsub.f32 %v172_v14, %v175_v18 }
 0x1f7   : > { %v177_v20 = vmul.f32 1.442695, %v176_v19 }
 0x1f8   : > { %v461_v32 = vpop.permute.xlu0 %460 }
 0x1f9   : > { %747 = vpow2.f32 %v177_v20  ;;  %v466_v34 = vsel %vm124_vm1, %v461_v32, 0 }
 0x203   : > { %v748_v21 = vpop.eup %747 }
 0x204   : > { %v179_v22 = vsel %vm124_vm1, %v748_v21, 0.0 }
 0x205   : > { %180 = vadd.xlane.f32.xlu1 %v179_v22 }
 0x216   : > { %234 = vrot.lane.b32.xlu1 %v819_v2, %s777_s16 }
 0x21a   : > { %348 = vrot.lane.b32.xlu1 %v819_v2, %s778_s17 }
 0x21e   : > { %346 = vrot.lane.b32.xlu1 %v819_v2, %s779_s18 }
 0x222   : > { %458 = vrot.lane.b32.xlu1 %v819_v2, %s780_s19 }
 0x292   : > { %v181_v24 = vpop.xlane.xlu1 %180 }
 0x293   : > { %749 = vrcp.f32 %v181_v24 }
 0x296   : > { %v235_v27 = vpop.permute.xlu1 %234 }
 0x29a   : > { %v349_v30 = vpop.permute.xlu1 %348 }
 0x29b   : > { %v354_v31 = vsel %vm124_vm1, %v349_v30, 0 }
 0x29d   : > { %v750_v25 = vpop.eup %749 }
 0x29e   : > { %v183_v26 = vmul.f32 %v750_v25, %v748_v21  ;;  %v347_v33 = vpop.permute.xlu1 %346 }
 0x2a0   : > { %v184_v28 = vpack.c.bf16 %v183_v26, %v183_v26 }
 0x2a2   : > { %684 = vmatmul.mubr.msk.bf16.vlgmr.msra.gmra.mrb[0].mxu1 %vm124_vm1, %v184_v28  ;;  %v459_v35 = vpop.permute.xlu1 %458 }
 0x2a3   : > { %688 = vmatpush3.bf16.xpose.msra.mxu1 %v242_v29  ;;  %689 = vmatprep.mubr.msk.bf16.mxu1 %vm772_vm0, %v771_v0 }
 0x2a4   : > { %699 = vmatprep.subr.bf16.mxu1 %v771_v0 }
 0x2aa   : > { %690 = vmatmul.mubr.msk.bf16.vlgmr.msra.gmra.mrb[4].mxu1 %vm124_vm1, %v235_v27 }
 0x2ab   : > { %700 = vmatpush3.bf16.xpose.msra.mxu1 %v354_v31  ;;  %701 = vmatprep.mubr.msk.bf16.mxu1 %vm772_vm0, %v771_v0 }
 0x2ac   : > { %711 = vmatprep.subr.bf16.mxu1 %v771_v0 }
 0x2b2   : > { %702 = vmatmul.mubr.msk.bf16.vlgmr.msra.gmra.mrb[8].mxu1 %vm124_vm1, %v347_v33 }
 0x2b3   : > { %712 = vmatpush3.bf16.xpose.msra.mxu1 %v466_v34  ;;  %713 = vmatprep.mubr.msk.bf16.mxu1 %vm772_vm0, %v771_v0 }
 0x2ba   : > { %714 = vmatmul.mubr.msk.bf16.vlgmr.msra.gmra.mrb[12].mxu1 %vm124_vm1, %v459_v35 }
 0x375   : > { %v858_v36 = vpop.f32.mrb[0].mxu1 }
 0x376   : > { %v685_v37 = vpop.f32.mrb[1].mxu1 }
 0x377   : > { %v231_v38 = vpop.f32.mrb[2].mxu1 }
 0x378   : > { %v686_v39 = vpop.f32.mrb[3].mxu1 }
 0x37d   : > { %v278_v40 = vpop.f32.mrb[4].mxu1 }
 0x37e   : > { %v284_v41 = vmul.f32 0.35355338, %v278_v40  ;;  %v691_v42 = vpop.f32.mrb[5].mxu1 }
 0x37f   : > { %v281_v43 = vpop.f32.mrb[6].mxu1 }
 0x380   : > { %v692_v44 = vpop.f32.mrb[7].mxu1  ;;  %v285_v45 = vadd.f32 %v284_v41, %v831_v9 }
 0x382   : > { %v286_v46 = vsel %vm124_vm1, %v285_v45, -inf }
 0x383   : > { %287 = vmax.xlane.f32.xlu1 %v286_v46 }
 0x385   : > { %v390_v47 = vpop.f32.mrb[8].mxu1 }
 0x386   : > { %v396_v48 = vmul.f32 0.35355338, %v390_v47  ;;  %v703_v49 = vpop.f32.mrb[9].mxu1 }
 0x387   : > { %v393_v50 = vpop.f32.mrb[10].mxu1 }
 0x388   : > { %v397_v51 = vadd.f32 %v396_v48, %v831_v9  ;;  %v704_v52 = vpop.f32.mrb[11].mxu1 }
 0x38a   : > { %v398_v53 = vsel %vm124_vm1, %v397_v51, -inf }
 0x38b   : > { %399 = vmax.xlane.f32.xlu0 %v398_v53 }
 0x38d   : > { %v502_v54 = vpop.f32.mrb[12].mxu1 }
 0x38e   : > { %v508_v55 = vmul.f32 0.35355338, %v502_v54  ;;  %v715_v56 = vpop.f32.mrb[13].mxu1 }
 0x38f   : > { %v505_v57 = vpop.f32.mrb[14].mxu1 }
 0x390   : > { %v509_v58 = vadd.f32 %v508_v55, %v831_v9  ;;  %v716_v59 = vpop.f32.mrb[15].mxu1 }
 0x392   : > { %v510_v60 = vsel %vm124_vm1, %v509_v58, -inf }
 0x393   : > { %511 = vmax.xlane.f32.xlu1 %v510_v60 }
 0x410   : > { %v288_v61 = vpop.xlane.xlu1 %287 }
 0x411   : > { %v289_v62 = vsub.f32 %v285_v45, %v288_v61 }
 0x413   : > { %v290_v63 = vmul.f32 1.442695, %v289_v62 }
 0x415   : > { %751 = vpow2.f32 %v290_v63 }
 0x418   : > { %v400_v9 = vpop.xlane.xlu0 %399 }
 0x419   : > { %v401_v10 = vsub.f32 %v397_v51, %v400_v9 }
 0x41b   : > { %v402_v11 = vmul.f32 1.442695, %v401_v10 }
 0x41f   : > { %v752_v1 = vpop.eup %751 }
 0x420   : > { %v512_v3 = vpop.xlane.xlu1 %511  ;;  %v292_v4 = vsel %vm124_vm1, %v752_v1, 0.0 }
 0x421   : > { %v513_v5 = vsub.f32 %v509_v58, %v512_v3  ;;  %293 = vadd.xlane.f32.xlu1 %v292_v4 }
 0x423   : > { %v514_v6 = vmul.f32 1.442695, %v513_v5 }
 0x425   : > { %753 = vpow2.f32 %v514_v6 }
 0x426   : > { %755 = vpow2.f32 %v402_v11 }
 0x42f   : > { %v754_v7 = vpop.eup %753 }
 0x430   : > { %v516_v8 = vsel %vm124_vm1, %v754_v7, 0.0  ;;  %v756_v12 = vpop.eup %755 }
 0x431   : > { %517 = vadd.xlane.f32.xlu0 %v516_v8  ;;  %v404_v13 = vsel %vm124_vm1, %v756_v12, 0.0 }
 0x432   : > { %298 = vrot.lane.b32.xlu1 %v819_v2, %s781_s20 }
 0x447   : > { %410 = vrot.lane.b32.xlu0 %v819_v2, %s782_s21 }
 0x456   : > { %405 = vadd.xlane.f32.xlu1 %v404_v13 }
 0x467   : > { %522 = vrot.lane.b32.xlu1 %v819_v2, %s783_s22 }
 0x4ae   : > { %v294_v14 = vpop.xlane.xlu1 %293 }
 0x4af   : > { %757 = vrcp.f32 %v294_v14 }
 0x4b2   : > { %v299_v15 = vpop.permute.xlu1 %298 }
 0x4b3   : > { %v304_v16 = vsel %vm190_vm3, %v299_v15, 0 }
 0x4b4   : > { %694 = vmatpush3.bf16.msra.mxu0 %v304_v16 }
 0x4b5   : > { %705 = vmatprep.subr.bf16.mxu0 %v771_v0 }
 0x4b9   : > { %v758_v17 = vpop.eup %757 }
 0x4ba   : > { %v296_v18 = vmul.f32 %v758_v17, %v752_v1 }
 0x4bc   : > { %v297_v19 = vpack.c.bf16 %v296_v18, %v296_v18 }
 0x4be   : > { %696 = vmatmul.mubr.msk.bf16.vlgmr.msra.gmra.mrb[4].mxu0 %vm124_vm1, %v297_v19  ;;  %v518_v20 = vpop.xlane.xlu0 %517 }
 0x4bf   : > { %707 = vmatprep.mubr.msk.bf16.mxu0 %vm772_vm0, %v771_v0 }
 0x4c2   : > { %v411_v21 = vpop.permute.xlu0 %410 }
 0x4c3   : > { %v416_v2 = vsel %vm190_vm3, %v411_v21, 0 }
 0x4c4   : > { %706 = vmatpush3.bf16.msra.mxu0 %v416_v2 }
 0x4c5   : > { %717 = vmatprep.subr.bf16.mxu0 %v771_v0 }
 0x4e3   : > { %v406_v22 = vpop.xlane.xlu1 %405 }
 0x4e4   : > { %759 = vrcp.f32 %v406_v22 }
 0x4e5   : > { %761 = vrcp.f32 %v518_v20 }
 0x4e7   : > { %v523_v24 = vpop.permute.xlu1 %522 }
 0x4e8   : > { %v528_v26 = vsel %vm190_vm3, %v523_v24, 0 }
 0x4ee   : > { %v760_v23 = vpop.eup %759 }
 0x4ef   : > { %v408_v25 = vmul.f32 %v760_v23, %v756_v12  ;;  %v762_v28 = vpop.eup %761 }
 0x4f0   : > { %v520_v29 = vmul.f32 %v762_v28, %v754_v7 }
 0x4f1   : > { %v409_v27 = vpack.c.bf16 %v408_v25, %v408_v25 }
 0x4f2   : > { %v521_v30 = vpack.c.bf16 %v520_v29, %v520_v29 }
 0x4f3   : > { %708 = vmatmul.mubr.msk.bf16.vlgmr.msra.gmra.mrb[8].mxu0 %vm124_vm1, %v409_v27 }
 0x4f4   : > { %718 = vmatpush3.bf16.msra.mxu0 %v528_v26  ;;  %719 = vmatprep.mubr.msk.bf16.mxu0 %vm772_vm0, %v771_v0 }
 0x4fb   : > { %720 = vmatmul.mubr.msk.bf16.vlgmr.msra.gmra.mrb[12].mxu0 %vm124_vm1, %v521_v30 }
 0x591   : > { %v340_v31 = vpop.f32.mrb[4].mxu0 }
 0x592   : > { %571 = vrot.lane.b32.xlu1 %v340_v31, %s784_s23  ;;  %v697_v32 = vpop.f32.mrb[5].mxu0 }
 0x593   : > { %v343_v33 = vpop.f32.mrb[6].mxu0 }
 0x594   : > { %v698_v34 = vpop.f32.mrb[7].mxu0 }
 0x5c6   : > { %v452_v35 = vpop.f32.mrb[8].mxu0 }
 0x5c7   : > { %575 = vrot.lane.b32.xlu0 %v452_v35, %s785_s24  ;;  %v709_v37 = vpop.f32.mrb[9].mxu0 }
 0x5c8   : > { %v455_v38 = vpop.f32.mrb[10].mxu0 }
 0x5c9   : > { %v710_v39 = vpop.f32.mrb[11].mxu0 }
 0x5ce   : > { %v564_v40 = vpop.f32.mrb[12].mxu0 }
 0x5cf   : > { %579 = vrot.lane.b32.xlu1 %v564_v40, %s786_s25  ;;  %v721_v0 = vpop.f32.mrb[13].mxu0 }
 0x5d0   : > { %v567_v41 = vpop.f32.mrb[14].mxu0 }
 0x5d1   : > { %v722_v42 = vpop.f32.mrb[15].mxu0 }
 0x604   : > { %v572_v43 = vpop.permute.xlu1 %571 }
 0x605   : > { %v582_v45 = vsel %vm124_vm1, %v858_v36, %v572_v43 }
 0x639   : > { %v576_v44 = vpop.permute.xlu0 %575 }
 0x63a   : > { %v584_v46 = vsel %vm583_vm4, %v582_v45, %v576_v44 }
 0x641   : > { %v580_v47 = vpop.permute.xlu1 %579 }
 0x642   : > { %v586_v48 = vsel %vm585_vm5, %v584_v46, %v580_v47 }
 0x643   : > { %588 = vst.msk [vmem:[%s111_s28] sm:$0xff] %vm587_vm6, %v586_v48 }
 0x644 PF: > { %s11_s6 = sadd.s32 1, %s769_s6  }
 0x645   : > { %p8_p4 = scmp.ge.s32.totalorder %s11_s6, 4  }
 0x647   :  { %10 = sbr.rel (!%p8_p4) target bundleno = 1 (0x1), region = 54 }

// kernel: clip_forward.34
= control target key start
LH: loop header
LB: loop body
LE: loop exit
PB: predicated region body
PF: predicated region fallthrough
CT: control target
= control target key end

     0   :  { %vm35_vm0 = vcmask 261120   ;;  %v385_v15 = vmov 0.0   ;;  %vm386_vm1 = vmmov 0   ;;  %s503_s0 = inlined_call_operand.vmem [shape: f32[16,32], index: 0, kind: input, shape index: {}]   ;;  %s504_s3 = inlined_call_operand.vmem [shape: bf16[32,128], index: 3, kind: input, shape index: {}]   ;;  %s505_s1 = inlined_call_operand.vmem [shape: f32[1,32], index: 1, kind: input, shape index: {}]   ;;  %s506_s2 = inlined_call_operand.vmem [shape: f32[1,32], index: 2, kind: input, shape index: {}]   ;;  %s507_s5 = inlined_call_operand.vmem [shape: bf16[128,32], index: 5, kind: input, shape index: {}]   ;;  %s508_s4 = inlined_call_operand.vmem [shape: f32[1,128], index: 4, kind: input, shape index: {}]   ;;  %s509_s6 = inlined_call_operand.vmem [shape: f32[1,32], index: 6, kind: input, shape index: {}]   ;;  %s510_s7 = inlined_call_operand.vmem [shape: f32[16,32], index: 7, kind: output, shape index: {}]  }
   0x1   :  { %v430_v0 = vld [vmem:[%s503_s0] sm:$0xff]  ;;  %v435_v1 = vld [vmem:[%s503_s0 + $0x8] sm:$0xff]  ;;  %333 = vmatprep.subr.bf16.mxu0 %v385_v15  ;;  %81 = vst.msk [vmem:[#allocation3] sm:$0xff] %vm35_vm0, %v385_v15  ;;  %82 = vst.msk [vmem:[#allocation3 + $0x8] sm:$0xff] %vm35_vm0, %v385_v15  ;;  %341 = vmatprep.subr.bf16.mxu1 %v385_v15 }
   0x2   :  { %v36_v2 = vsel %vm35_vm0, %v430_v0, 0.0  ;;  %v39_v3 = vsel %vm35_vm0, %v435_v1, 0.0  ;;  %v363_v14 = vld [vmem:[%s504_s3] sm:$0xff]   ;;  %v364_v16 = vld [vmem:[%s504_s3 + $0x8] sm:$0xff]   ;;  %337 = vmatprep.mubr.msk.bf16.mxu0 %vm386_vm1, %v385_v15  ;;  %357 = vmatprep.mubr.msk.bf16.mxu1 %vm386_vm1, %v385_v15  ;;  %v367_v37 = vld [vmem:[%s507_s5 + $0x10] sm:$0xff]  }
   0x3   :  { %37 = vadd.xlane.f32.xlu0 %v36_v2  ;;  %334 = vmatpush3.bf16.msra.mxu0 %v363_v14  ;;  %v304_v25 = vld [vmem:[%s505_s1] ss:$0 sm:$0xff]  ;;  %v366_v36 = vld [vmem:[%s507_s5 + $0x8] sm:$0xff]   ;;  %v368_v38 = vld [vmem:[%s507_s5 + $0x18] sm:$0xff]  }
   0x4   :  { %335 = vmatprep.subr.bf16.mxu0 %v385_v15  ;;  %v305_v29 = vld [vmem:[%s506_s2] ss:$0 sm:$0xff]  ;;  %v370_v40 = vld [vmem:[%s507_s5 + $0x28] sm:$0xff]   ;;  %v371_v41 = vld [vmem:[%s507_s5 + $0x30] sm:$0xff]  }
   0x5   :  { %v365_v35 = vld [vmem:[%s507_s5] sm:$0xff]   ;;  %v372_v42 = vld [vmem:[%s507_s5 + $0x38] sm:$0xff]  }
   0x6   :  { %342 = vmatpush3.bf16.msra.mxu1 %v365_v35  ;;  %v369_v39 = vld [vmem:[%s507_s5 + $0x20] sm:$0xff]  }
   0x7   :  { %40 = vadd.xlane.f32.xlu0 %v39_v3  ;;  %336 = vmatpush3.bf16.msra.mxu0 %v364_v16  ;;  %v306_v43 = vld [vmem:[%s508_s4] ss:$0 sm:$0xff] }
   0x8   :  { %343 = vmatprep.subr.bf16.mxu1 %v385_v15  ;;  %v168_v63 = vld [vmem:[#allocation3] sm:$0xff]  ;;  %v169_v3 = vld [vmem:[#allocation3 + $0x8] sm:$0xff] }
   0xa   :  { %344 = vmatpush3.bf16.msra.mxu1 %v366_v36 }
   0xb   :  { %345 = vmatprep.subr.bf16.mxu1 %v385_v15 }
   0xe   :  { %346 = vmatpush3.bf16.msra.mxu1 %v367_v37 }
   0xf   :  { %347 = vmatprep.subr.bf16.mxu1 %v385_v15 }
  0x12   :  { %348 = vmatpush3.bf16.msra.mxu1 %v368_v38 }
  0x13   :  { %349 = vmatprep.subr.bf16.mxu1 %v385_v15 }
  0x16   :  { %350 = vmatpush3.bf16.msra.mxu1 %v369_v39 }
  0x17   :  { %351 = vmatprep.subr.bf16.mxu1 %v385_v15 }
  0x1a   :  { %352 = vmatpush3.bf16.msra.mxu1 %v370_v40 }
  0x1b   :  { %353 = vmatprep.subr.bf16.mxu1 %v385_v15 }
  0x1e   :  { %354 = vmatpush3.bf16.msra.mxu1 %v371_v41 }
  0x1f   :  { %355 = vmatprep.subr.bf16.mxu1 %v385_v15 }
  0x22   :  { %356 = vmatpush3.bf16.msra.mxu1 %v372_v42 }
  0x90   :  { %v38_v4 = vpop.xlane.xlu0 %37 }
  0x91   :  { %v43_v5 = vmul.f32 0.03125, %v38_v4 }
  0x93   :  { %v45_v6 = vsub.f32 %v430_v0, %v43_v5 }
  0x94   :  { %v41_v7 = vpop.xlane.xlu0 %40 }
  0x95   :  { %v44_v8 = vmul.f32 0.03125, %v41_v7  ;;  %v47_v9 = vmul.f32 %v45_v6, %v45_v6 }
  0x97   :  { %v46_v10 = vsub.f32 %v435_v1, %v44_v8  ;;  %v49_v11 = vsel %vm35_vm0, %v47_v9, 0.0 }
  0x98   :  { %50 = vadd.xlane.f32.xlu1 %v49_v11 }
  0x99   :  { %v48_v12 = vmul.f32 %v46_v10, %v46_v10 }
  0x9b   :  { %v52_v13 = vsel %vm35_vm0, %v48_v12, 0.0 }
  0x9c   :  { %53 = vadd.xlane.f32.xlu1 %v52_v13 }
 0x125   :  { %v51_v17 = vpop.xlane.xlu1 %50 }
 0x126   :  { %v55_v18 = vmul.f32 0.03125, %v51_v17 }
 0x128   :  { %v57_v19 = vadd.f32 1e-05, %v55_v18 }
 0x129   :  { %v54_v20 = vpop.xlane.xlu1 %53 }
 0x12a   :  { %373 = vrsqrt.f32 %v57_v19  ;;  %v56_v21 = vmul.f32 0.03125, %v54_v20 }
 0x12c   :  { %v58_v22 = vadd.f32 1e-05, %v56_v21 }
 0x12e   :  { %375 = vrsqrt.f32 %v58_v22 }
 0x134   :  { %v374_v23 = vpop.eup %373 }
 0x135   :  { %v61_v24 = vmul.f32 %v374_v23, %v45_v6 }
 0x137   :  { %v69_v27 = vmul.f32 %v304_v25, %v61_v24 }
 0x138   :  { %v376_v26 = vpop.eup %375 }
 0x139   :  { %v62_v28 = vmul.f32 %v376_v26, %v46_v10  ;;  %v77_v31 = vadd.f32 %v305_v29, %v69_v27  ;;  %v320_v10 = vld [vmem:[%s509_s6] ss:$0 sm:$0xff] }
 0x13b   :  { %v70_v30 = vmul.f32 %v304_v25, %v62_v28 }
 0x13d   :  { %v78_v32 = vadd.f32 %v305_v29, %v70_v30 }
 0x13f   :  { %v79_v33 = vpack.c.bf16 %v78_v32, %v77_v31 }
 0x141   :  { %80 = vst.msk [vmem:[#allocation2] sm:$0xff] %vm35_vm0, %v79_v33 }
 0x148   :  { %v83_v34 = vld [vmem:[#allocation2] sm:$0xff] }
 0x149   :  { %338 = vmatmul.mubr.msk.bf16.vlgmr.msra.gmra.mrb[0].mxu0 %vm35_vm0, %v83_v34 }
 0x21c   :  { %v145_v44 = vpop.f32.mrb[0].mxu0 }
 0x21d   :  { %v146_v45 = vadd.f32 %v306_v43, %v145_v44  ;;  %v339_v46 = vpop.f32.mrb[1].mxu0 }
 0x21e   :  { %v148_v47 = vpop.f32.mrb[2].mxu0 }
 0x21f   :  { %v310_v48 = vmul.f32 -1.702, %v146_v45  ;;  %v149_v49 = vadd.f32 %v306_v43, %v148_v47  ;;  %v340_v50 = vpop.f32.mrb[3].mxu0 }
 0x221   :  { %v156_v51 = vmul.f32 1.442695, %v310_v48  ;;  %v311_v52 = vmul.f32 -1.702, %v149_v49 }
 0x223   :  { %377 = vpow2.f32 %v156_v51  ;;  %v158_v53 = vmul.f32 1.442695, %v311_v52 }
 0x225   :  { %379 = vpow2.f32 %v158_v53 }
 0x22d   :  { %v378_v54 = vpop.eup %377 }
 0x22e   :  { %v160_v55 = vadd.f32 1.0, %v378_v54 }
 0x22f   :  { %v380_v56 = vpop.eup %379 }
 0x230   :  { %381 = vrcp.f32 %v160_v55  ;;  %v161_v57 = vadd.f32 1.0, %v380_v56 }
 0x232   :  { %383 = vrcp.f32 %v161_v57 }
 0x23a   :  { %v382_v58 = vpop.eup %381 }
 0x23b   :  { %v166_v60 = vmul.f32 %v382_v58, %v146_v45 }
 0x23c   :  { %v384_v59 = vpop.eup %383 }
 0x23d   :  { %v167_v61 = vmul.f32 %v384_v59, %v149_v49 }
 0x23f   :  { %v170_v62 = vpack.c.bf16 %v167_v61, %v166_v60 }
 0x241   :  { %358 = vmatmul.mubr.bf16.vlgmr.msra.gmra.mrb[0].mxu1 %v170_v62 }
 0x314   :  { %v269_v2 = vpop.f32.mrb[0].mxu1 }
 0x315   :  { %v276_v4 = vadd.f32 %v269_v2, %v168_v63  ;;  %v359_v5 = vpop.f32.mrb[1].mxu1 }
 0x316   :  { %v272_v6 = vpop.f32.mrb[2].mxu1 }
 0x317   :  { %278 = vst.msk [vmem:[#allocation3] sm:$0xff] %vm35_vm0, %v276_v4  ;;  %v277_v7 = vadd.f32 %v272_v6, %v169_v3  ;;  %v360_v8 = vpop.f32.mrb[3].mxu1 }
 0x319   :  { %279 = vst.msk [vmem:[#allocation3 + $0x8] sm:$0xff] %vm35_vm0, %v277_v7 }
 0x31e   :  { %v285_v9 = vld [vmem:[#allocation3] sm:$0xff] }
 0x31f   :  { %v287_v11 = vadd.f32 %v285_v9, %v430_v0 }
 0x320   :  { %v286_v12 = vld [vmem:[#allocation3 + $0x8] sm:$0xff] }
 0x321   :  { %v296_v13 = vadd.f32 %v320_v10, %v287_v11  ;;  %v288_v14 = vadd.f32 %v286_v12, %v435_v1 }
 0x323   :  { %298 = vst.msk [vmem:[%s510_s7] sm:$0xff] %vm35_vm0, %v296_v13  ;;  %v297_v15 = vadd.f32 %v320_v10, %v288_v14 }
 0x325   :  { %299 = vst.msk [vmem:[%s510_s7 + $0x8] sm:$0xff] %vm35_vm0, %v297_v15 }

</bundles_post_ra>
